<compile_context>
chip_gen: v5e
topology: v5e:2x2
jax: 0.10.0
libtpu: 0.0.40
codegen_flags: <defaults>
</compile_context>

<pallas_src>
import functools
import random
import numpy as np

import jax
import jax.numpy as jnp
from jax import lax
from jax.experimental import pallas as pl
from jax.experimental.pallas import tpu as pltpu

BN_EPS = 1e-5
_LANE = 128
_ROW_QUANT = 64          # row bucket quantum for small row counts
_TK_SEG = 8              # keypoints per segment-max output block


# ----------------------------------------------------------------------------
# generation-aware tiling budget
# ----------------------------------------------------------------------------

def _detect_vmem_bytes():
    try:
        info = pltpu.get_tpu_info()
        v = getattr(info, "vmem_capacity_bytes", None)
        if v:
            return int(v)
    except Exception:
        pass
    return 64 * 1024 * 1024


_PHYS_VMEM = _detect_vmem_bytes()
if _PHYS_VMEM >= 128 * 1024 * 1024:       # v5e / v6e: 128 MiB VMEM per core
    _TM_MAX = 2048
    _VMEM_LIMIT = 96 * 1024 * 1024
else:                                     # v7x: 64 MiB VMEM per core
    _TM_MAX = 1024
    _VMEM_LIMIT = 40 * 1024 * 1024


# ----------------------------------------------------------------------------
# small shape helpers
# ----------------------------------------------------------------------------

def _rup(n, m):
    return ((int(n) + m - 1) // m) * m


def _cpad(n):
    return _rup(n, _LANE)


def _row_bucket(n):
    n = max(int(n), 1)
    if n > _TM_MAX:
        return _rup(n, 512)
    return _rup(n, _ROW_QUANT)


def _pick_tm(rows_pad):
    if rows_pad <= _TM_MAX:
        return rows_pad
    for c in (2048, 1024, 512, 256, 128, 64):
        if c <= _TM_MAX and rows_pad % c == 0:
            return c
    return _ROW_QUANT


def _pad2(x, rows, cols):
    r, c = x.shape
    return jnp.pad(x, ((0, rows - r), (0, cols - c)))


# ----------------------------------------------------------------------------
# Kernel 1a: SINGLE-TILE fused (Linear -> ReLU -> BatchNorm1d[batch stats]) x L.
# One grid step: per layer, matmul (bf16 operands, f32 acc), ReLU, masked mean,
# centered variance, normalize — activations stay in one VMEM scratch buffer.
# ----------------------------------------------------------------------------

def _mlnn_single_kernel(dims_pad, tm):
    L = len(dims_pad) - 1

    def kernel(valid_ref, x_ref, *refs):
        prm = refs[:4 * L]                     # (w, b, gamma, beta) per layer
        o_ref = refs[4 * L]
        h_ref = refs[4 * L + 1]                # VMEM scratch [tm, cmax]

        nvalid = valid_ref[0]
        inv_n = 1.0 / jnp.maximum(nvalid, 1).astype(jnp.float32)
        row_ids = lax.broadcasted_iota(jnp.int32, (tm, 1), 0)
        row_valid = row_ids < nvalid

        for l in range(L):
            w_ref, b_ref, g_ref, be_ref = prm[4 * l:4 * l + 4]
            din = dims_pad[l]
            dout = dims_pad[l + 1]
            hin = x_ref[...] if l == 0 else h_ref[:, :din]
            z = jnp.dot(hin.astype(jnp.bfloat16), w_ref[...],
                        preferred_element_type=jnp.float32) + b_ref[...]
            z = jnp.maximum(z, 0.0)
            zm = jnp.where(row_valid, z, 0.0)
            mean = jnp.sum(zm, axis=0, keepdims=True) * inv_n
            d = jnp.where(row_valid, z - mean, 0.0)
            var = jnp.sum(d * d, axis=0, keepdims=True) * inv_n
            h_ref[:, :dout] = ((z - mean) * lax.rsqrt(var + BN_EPS)
                               * g_ref[...] + be_ref[...])

        o_ref[...] = h_ref[:, :dims_pad[L]]

    return kernel


@functools.lru_cache(maxsize=None)
def _mlnn_single_call(dims_pad, rows_pad):
    dims_pad = tuple(int(d) for d in dims_pad)
    L = len(dims_pad) - 1
    cmax = max(dims_pad)

    in_specs = [pl.BlockSpec((rows_pad, dims_pad[0]), lambda i, *_: (0, 0))]
    for l in range(L):
        din, dout = dims_pad[l], dims_pad[l + 1]
        in_specs += [
            pl.BlockSpec((din, dout), lambda i, *_: (0, 0)),
            pl.BlockSpec((1, dout), lambda i, *_: (0, 0)),
            pl.BlockSpec((1, dout), lambda i, *_: (0, 0)),
            pl.BlockSpec((1, dout), lambda i, *_: (0, 0)),
        ]

    grid_spec = pltpu.PrefetchScalarGridSpec(
        num_scalar_prefetch=1,
        grid=(1,),
        in_specs=in_specs,
        out_specs=pl.BlockSpec((rows_pad, dims_pad[-1]), lambda i, *_: (0, 0)),
        scratch_shapes=[pltpu.VMEM((rows_pad, cmax), jnp.float32)],
    )
    fn = pl.pallas_call(
        _mlnn_single_kernel(dims_pad, rows_pad),
        out_shape=jax.ShapeDtypeStruct((rows_pad, dims_pad[-1]), jnp.float32),
        grid_spec=grid_spec,
        compiler_params=pltpu.CompilerParams(
            dimension_semantics=("arbitrary",),
            vmem_limit_bytes=_VMEM_LIMIT),
    )
    return jax.jit(fn)


# ----------------------------------------------------------------------------
# Kernel 1b: MULTI-TILE path, one fused (input-affine -> matmul -> ReLU ->
# partial sum/sumsq stats) kernel per layer.  Row axis is 'parallel' (v7x gets
# both TensorCores); per-tile partial stats are reduced by a tiny host-side sum
# and folded into the NEXT layer's input affine (scale/shift).
# TODO(synk): multi-tile BN variance uses E[x^2]-E[x]^2 (f32); acceptable here.
# ----------------------------------------------------------------------------

def _layer_stats_kernel(tm):
    def kernel(valid_ref, x_ref, sc_ref, sh_ref, w_ref, b_ref, z_ref, st_ref):
        t = pl.program_id(0)
        nvalid = valid_ref[0]
        row_ids = t * tm + lax.broadcasted_iota(jnp.int32, (tm, 1), 0)
        row_valid = row_ids < nvalid

        h = x_ref[...] * sc_ref[...] + sh_ref[...]
        z = jnp.dot(h.astype(jnp.bfloat16), w_ref[...],
                    preferred_element_type=jnp.float32) + b_ref[...]
        z = jnp.maximum(z, 0.0)
        z_ref[...] = z

        zm = jnp.where(row_valid, z, 0.0)
        s1 = jnp.sum(zm, axis=0, keepdims=True)
        s2 = jnp.sum(zm * zm, axis=0, keepdims=True)
        st_ref[...] = jnp.concatenate([s1, s2], axis=0).reshape(1, 2, -1)

    return kernel


@functools.lru_cache(maxsize=None)
def _layer_stats_call(din, dout, rows_pad, tm):
    n_tiles = rows_pad // tm
    grid_spec = pltpu.PrefetchScalarGridSpec(
        num_scalar_prefetch=1,
        grid=(n_tiles,),
        in_specs=[
            pl.BlockSpec((tm, din), lambda t, *_: (t, 0)),
            pl.BlockSpec((1, din), lambda t, *_: (0, 0)),
            pl.BlockSpec((1, din), lambda t, *_: (0, 0)),
            pl.BlockSpec((din, dout), lambda t, *_: (0, 0)),
            pl.BlockSpec((1, dout), lambda t, *_: (0, 0)),
        ],
        out_specs=(
            pl.BlockSpec((tm, dout), lambda t, *_: (t, 0)),
            pl.BlockSpec((1, 2, dout), lambda t, *_: (t, 0, 0)),
        ),
    )
    fn = pl.pallas_call(
        _layer_stats_kernel(tm),
        out_shape=(jax.ShapeDtypeStruct((rows_pad, dout), jnp.float32),
                   jax.ShapeDtypeStruct((n_tiles, 2, dout), jnp.float32)),
        grid_spec=grid_spec,
        compiler_params=pltpu.CompilerParams(
            dimension_semantics=("parallel",),
            vmem_limit_bytes=_VMEM_LIMIT),
    )
    return jax.jit(fn)


def _affine_kernel(x_ref, sc_ref, sh_ref, o_ref):
    o_ref[...] = x_ref[...] * sc_ref[...] + sh_ref[...]


@functools.lru_cache(maxsize=None)
def _affine_call(d, rows_pad, tm):
    n_tiles = rows_pad // tm
    fn = pl.pallas_call(
        _affine_kernel,
        out_shape=jax.ShapeDtypeStruct((rows_pad, d), jnp.float32),
        grid=(n_tiles,),
        in_specs=[pl.BlockSpec((tm, d), lambda t: (t, 0)),
                  pl.BlockSpec((1, d), lambda t: (0, 0)),
                  pl.BlockSpec((1, d), lambda t: (0, 0))],
        out_specs=pl.BlockSpec((tm, d), lambda t: (t, 0)),
        compiler_params=pltpu.CompilerParams(
            dimension_semantics=("parallel",),
            vmem_limit_bytes=_VMEM_LIMIT),
    )
    return jax.jit(fn)


def mlnn_stack(x, layers, valid_rows):
    """Fused multi_layer_neural_network_fn on a padded [rows_pad, C_pad] input."""
    dims_pad = (int(x.shape[1]),) + tuple(int(w.shape[1]) for (w, _, _, _) in layers)
    rows_pad = int(x.shape[0])
    valid = jnp.asarray([int(valid_rows)], jnp.int32)

    if rows_pad <= _TM_MAX:
        fn = _mlnn_single_call(dims_pad, rows_pad)
        flat = []
        for (w, b, g, be) in layers:
            flat += [w, b, g, be]
        return fn(valid, x, *flat)

    # multi-tile path: per-layer fused kernel, BN folded into the next layer.
    tm = _pick_tm(rows_pad)
    n = float(max(int(valid_rows), 1))
    scale = jnp.ones((1, dims_pad[0]), jnp.float32)
    shift = jnp.zeros((1, dims_pad[0]), jnp.float32)
    h = x
    for (w, b, g, be) in layers:
        din, dout = int(w.shape[0]), int(w.shape[1])
        z, st = _layer_stats_call(din, dout, rows_pad, tm)(valid, h, scale, shift, w, b)
        s = jnp.sum(st, axis=0)                          # [2, dout]
        mean = s[0:1, :] / n
        var = jnp.maximum(s[1:2, :] / n - mean * mean, 0.0)
        scale = g * lax.rsqrt(var + BN_EPS)
        shift = be - mean * scale
        h = z
    return _affine_call(dims_pad[-1], rows_pad, tm)(h, scale, shift)


# ----------------------------------------------------------------------------
# Kernel 2: segment max (max_aggregation_fn).  Edges are destination-sorted by
# construction; per-keypoint-block start row-block offsets AND row-block counts
# are scalar-prefetched, so each grid step only streams its own rows and dead
# iterations re-use the previous block (no DMA) and skip the masked-max body.
# Zero-initialized accumulator reproduces scatter_max-into-zeros semantics.
# ----------------------------------------------------------------------------

def _segmax_kernel(tk):
    def kernel(starts_ref, nblk_ref, idx_ref, feat_ref, o_ref):
        del starts_ref  # used only by the index maps
        b = pl.program_id(0)
        t = pl.program_id(1)

        @pl.when(t == 0)
        def _():
            o_ref[...] = jnp.zeros_like(o_ref)

        @pl.when(t < nblk_ref[b])
        def _():
            base = b * tk
            idx = idx_ref[...]                 # [te, 1] int32 (padding rows = -1)
            feat = feat_ref[...]               # [te, d]
            acc = o_ref[...]
            rows = []
            for j in range(tk):
                m = idx == (base + j)
                rows.append(jnp.max(jnp.where(m, feat, -jnp.inf),
                                    axis=0, keepdims=True))
            o_ref[...] = jnp.maximum(acc, jnp.concatenate(rows, axis=0))

    return kernel


@functools.lru_cache(maxsize=None)
def _segmax_call(e_pad, te, d, k_pad, t_max):
    n_kb = k_pad // _TK_SEG

    def row_map(b, t, starts, nblk):
        # clamp so dead iterations (t >= nblk[b]) repeat the last valid block
        tt = jnp.minimum(t, jnp.maximum(nblk[b] - 1, 0))
        return (starts[b] + tt, 0)

    grid_spec = pltpu.PrefetchScalarGridSpec(
        num_scalar_prefetch=2,
        grid=(n_kb, t_max),
        in_specs=[
            pl.BlockSpec((te, 1), row_map),
            pl.BlockSpec((te, d), row_map),
        ],
        out_specs=pl.BlockSpec((_TK_SEG, d), lambda b, t, starts, nblk: (b, 0)),
    )
    fn = pl.pallas_call(
        _segmax_kernel(_TK_SEG),
        out_shape=jax.ShapeDtypeStruct((k_pad, d), jnp.float32),
        grid_spec=grid_spec,
        compiler_params=pltpu.CompilerParams(
            dimension_semantics=("parallel", "arbitrary"),
            vmem_limit_bytes=_VMEM_LIMIT),
    )
    return jax.jit(fn)


def segment_max(features, idx_np, num_valid, num_keypoints):
    """max_aggregation_fn semantics: per-keypoint max of features, floored at 0."""
    e_pad, d = int(features.shape[0]), int(features.shape[1])
    num_valid = int(num_valid)
    num_keypoints = int(num_keypoints)

    # size te to segment density ( ~ _TK_SEG * average degree )
    avg_deg = max(1.0, num_valid / max(num_keypoints, 1))
    target = _TK_SEG * avg_deg
    cands = [c for c in (256, 128, 64, 32, 16, 8) if e_pad % c == 0]
    te = cands[0]
    for c in cands:                      # descending: last c >= target is smallest
        if c >= target:
            te = c

    k_pad = _row_bucket(num_keypoints)
    n_kb = k_pad // _TK_SEG

    idx_sorted = np.asarray(idx_np, np.int32)[:num_valid]
    idx_full = np.full((e_pad, 1), -1, np.int32)
    idx_full[:num_valid, 0] = idx_sorted

    starts = np.zeros((n_kb,), np.int32)
    nblk = np.zeros((n_kb,), np.int32)
    for b in range(n_kb):
        lo = int(np.searchsorted(idx_sorted, b * _TK_SEG, side='left'))
        hi = int(np.searchsorted(idx_sorted, (b + 1) * _TK_SEG, side='left'))
        if hi > lo:
            starts[b] = lo // te
            nblk[b] = -(-hi // te) - lo // te

    n_rb = e_pad // te
    t_max = int(max(1, nblk.max())) if n_kb else 1
    t_max = 1 << (t_max - 1).bit_length()        # bucket grid extents (fewer compiles)
    t_max = max(1, min(t_max, n_rb))

    fn = _segmax_call(e_pad, te, d, k_pad, t_max)
    return fn(jnp.asarray(starts), jnp.asarray(nblk), jnp.asarray(idx_full), features)


# ----------------------------------------------------------------------------
# Kernel 3: fused (Linear -> ReLU) MLP + global row max (AggregationLayer).
# ----------------------------------------------------------------------------

def _mlp_max_kernel(n_layers, tm):
    def kernel(valid_ref, x_ref, *refs):
        prm = refs[:2 * n_layers]
        o_ref = refs[2 * n_layers]
        t = pl.program_id(0)

        @pl.when(t == 0)
        def _():
            o_ref[...] = jnp.zeros_like(o_ref)

        nvalid = valid_ref[0]
        row_ids = t * tm + lax.broadcasted_iota(jnp.int32, (tm, 1), 0)
        row_valid = row_ids < nvalid
        h = x_ref[...]
        for l in range(n_layers):
            h = jnp.maximum(
                jnp.dot(h.astype(jnp.bfloat16), prm[2 * l][...],
                        preferred_element_type=jnp.float32) + prm[2 * l + 1][...], 0.0)
        # all activations are ReLU outputs (>= 0): masking padded rows with 0 is
        # safe for the global max (requires activate_final=True, as in the ref).
        h = jnp.where(row_valid, h, 0.0)
        o_ref[...] = jnp.maximum(o_ref[...], jnp.max(h, axis=0, keepdims=True))

    return kernel


@functools.lru_cache(maxsize=None)
def _mlp_max_call(dims_pad, rows_pad):
    L = len(dims_pad) - 1
    tm = _pick_tm(rows_pad)
    n_tiles = rows_pad // tm
    in_specs = [pl.BlockSpec((tm, dims_pad[0]), lambda t, *_: (t, 0))]
    for l in range(L):
        in_specs += [pl.BlockSpec((dims_pad[l], dims_pad[l + 1]), lambda t, *_: (0, 0)),
                     pl.BlockSpec((1, dims_pad[l + 1]), lambda t, *_: (0, 0))]
    grid_spec = pltpu.PrefetchScalarGridSpec(
        num_scalar_prefetch=1,
        grid=(n_tiles,),
        in_specs=in_specs,
        out_specs=pl.BlockSpec((1, dims_pad[-1]), lambda t, *_: (0, 0)),
    )
    fn = pl.pallas_call(
        _mlp_max_kernel(L, tm),
        out_shape=jax.ShapeDtypeStruct((1, dims_pad[-1]), jnp.float32),
        grid_spec=grid_spec,
        compiler_params=pltpu.CompilerParams(
            dimension_semantics=("arbitrary",),
            vmem_limit_bytes=_VMEM_LIMIT),
    )
    return jax.jit(fn)


def mlp_max(x, layers, valid_rows):
    dims_pad = (int(x.shape[1]),) + tuple(int(w.shape[1]) for (w, _) in layers)
    fn = _mlp_max_call(dims_pad, int(x.shape[0]))
    flat = []
    for (w, b) in layers:
        flat += [w, b]
    return fn(jnp.asarray([int(valid_rows)], jnp.int32), x, *flat)


# ----------------------------------------------------------------------------
# Kernel 4: fused decoder = sin/cos positional encoding + MLP head.  g_latent
# is folded into the first layer's bias on the host (bias_eff = b0 + g @ Wg),
# so the kernel does two 128-wide matmuls + L-1 hidden matmuls per tile.
# ----------------------------------------------------------------------------

def _decoder_kernel(n_rest):
    def kernel(x_ref, w0_ref, b0_ref, *refs):
        prm = refs[:2 * n_rest]
        o_ref = refs[2 * n_rest]

        v = x_ref[...]
        s = jnp.sin(v).astype(jnp.bfloat16)
        c = jnp.cos(v).astype(jnp.bfloat16)
        z = (jnp.dot(s, w0_ref[0:128, :], preferred_element_type=jnp.float32)
             + jnp.dot(c, w0_ref[128:256, :], preferred_element_type=jnp.float32)
             + b0_ref[...])
        h = jnp.maximum(z, 0.0)
        for l in range(n_rest):
            z = jnp.dot(h.astype(jnp.bfloat16), prm[2 * l][...],
                        preferred_element_type=jnp.float32) + prm[2 * l + 1][...]
            if l < n_rest - 1:
                h = jnp.maximum(z, 0.0)
            else:
                e = jnp.exp(-jnp.abs(z))            # numerically stable sigmoid
                h = jnp.where(z >= 0.0, 1.0 / (1.0 + e), e / (1.0 + e))
        o_ref[...] = h

    return kernel


@functools.lru_cache(maxsize=None)
def _decoder_call(hp, rest_shapes, rows_pad):
    n_rest = len(rest_shapes)
    tm = _pick_tm(rows_pad)
    n_tiles = rows_pad // tm
    in_specs = [pl.BlockSpec((tm, 128), lambda t: (t, 0)),
                pl.BlockSpec((256, hp), lambda t: (0, 0)),
                pl.BlockSpec((1, hp), lambda t: (0, 0))]
    for (din, dout) in rest_shapes:
        in_specs += [pl.BlockSpec((din, dout), lambda t: (0, 0)),
                     pl.BlockSpec((1, dout), lambda t: (0, 0))]
    out_pad = rest_shapes[-1][1]
    fn = pl.pallas_call(
        _decoder_kernel(n_rest),
        out_shape=jax.ShapeDtypeStruct((rows_pad, out_pad), jnp.float32),
        grid=(n_tiles,),
        in_specs=in_specs,
        out_specs=pl.BlockSpec((tm, out_pad), lambda t: (t, 0)),
        compiler_params=pltpu.CompilerParams(
            dimension_semantics=("parallel",),
            vmem_limit_bytes=_VMEM_LIMIT),
    )
    return jax.jit(fn)


def decode(net, coords_b, freqs, g_latent):
    P, C = coords_b.shape
    F = int(freqs.shape[0])
    scaled = (coords_b[:, :, None] * freqs[None, None, :]).reshape(P, C * F)
    rows_pad = _row_bucket(P)
    x = _pad2(scaled, rows_pad, 128)
    # fold the (per-batch-item constant) g_latent contribution into the bias
    b_eff = net['b0'] + jnp.dot(g_latent.astype(jnp.bfloat16), net['wg'],
                                preferred_element_type=jnp.float32)
    hp = int(net['w0'].shape[1])
    rest_shapes = tuple((int(w.shape[0]), int(w.shape[1])) for (w, _) in net['rest'])
    fn = _decoder_call(hp, rest_shapes, rows_pad)
    flat = []
    for (w, b) in net['rest']:
        flat += [w, b]
    out = fn(x, net['w0'], b_eff, *flat)
    return out[:P, :1]


# ----------------------------------------------------------------------------
# Host-side graph construction (pure numpy port of the reference helpers).
# ----------------------------------------------------------------------------

def _gen_disjointed_rnn_local_graph_v3(points_xyz, center_xyz, radius, num_neighbors,
                                       neighbors_downsample_method='random', scale=None):
    if scale is not None:
        scale = np.array(scale)
        points_xyz = points_xyz / scale
        center_xyz = center_xyz / scale
    # Brute-force radius search (replaces sklearn BallTree; identical neighbor sets).
    d2 = np.sum((center_xyz[:, None, :] - points_xyz[None, :, :]) ** 2, axis=-1)
    indices = [np.where(d2[i] <= radius * radius)[0] for i in range(center_xyz.shape[0])]
    if num_neighbors > 0 and neighbors_downsample_method == 'random':
        indices = [nb if nb.size <= num_neighbors
                   else np.random.choice(nb, num_neighbors, replace=False) for nb in indices]
    vertices_v = np.concatenate(indices)
    vertices_i = np.concatenate(
        [i * np.ones(nb.size, dtype=np.int32) for i, nb in enumerate(indices)])
    return np.array([vertices_v, vertices_i]).transpose()


def _multi_layer_downsampling_random(points_xyz, base_voxel_size, levels=(1,), add_rnd3d=False):
    xmin, ymin, zmin = np.amin(points_xyz, axis=0)
    xyz_offset = np.asarray([[xmin, ymin, zmin]])
    vertex_coord_list = [points_xyz]
    keypoint_indices_list = []
    last_level = 0
    for level in levels:
        last_points_xyz = vertex_coord_list[-1]
        if np.isclose(last_level, level):
            vertex_coord_list.append(np.copy(last_points_xyz))
            keypoint_indices_list.append(np.expand_dims(np.arange(len(last_points_xyz)), axis=1))
        else:
            if not add_rnd3d:
                xyz_idx = (last_points_xyz - xyz_offset) // (base_voxel_size * level)
            else:
                xyz_idx = (last_points_xyz - xyz_offset
                           + base_voxel_size * level * np.random.random((1, 3))) // (base_voxel_size * level)
            xyz_idx = xyz_idx.astype(np.int32)
            dim_x, dim_y, dim_z = np.amax(xyz_idx, axis=0) + 1
            keys = xyz_idx[:, 0] + xyz_idx[:, 1] * dim_x + xyz_idx[:, 2] * dim_y * dim_x
            voxels_idx = {}
            for pidx in range(len(last_points_xyz)):
                voxels_idx.setdefault(keys[pidx], []).append(pidx)
            ds_xyz, ds_idx = [], []
            for key in voxels_idx:
                c = random.choice(voxels_idx[key])
                ds_xyz.append(last_points_xyz[c])
                ds_idx.append(c)
            vertex_coord_list.append(np.array(ds_xyz))
            keypoint_indices_list.append(np.expand_dims(np.array(ds_idx), axis=1))
        last_level = level
    return vertex_coord_list, keypoint_indices_list


def _gen_multi_level_local_graph_v3(points_xyz, base_voxel_size, level_configs,
                                    add_rnd3d=False, downsample_method='random'):
    # TODO(synk): only downsample_method='random' supported (the 'center' path needs open3d).
    scales = [c['graph_scale'] for c in level_configs]
    vertex_coord_list, keypoint_indices_list = _multi_layer_downsampling_random(
        points_xyz, base_voxel_size, scales, add_rnd3d=add_rnd3d)
    edges_list = []
    for config in level_configs:
        gl = config['graph_level']
        vertices = _gen_disjointed_rnn_local_graph_v3(
            vertex_coord_list[gl], vertex_coord_list[gl + 1], **config['graph_gen_kwargs'])
        edges_list.append(vertices)
    return vertex_coord_list, keypoint_indices_list, edges_list


# ----------------------------------------------------------------------------
# Parameter initialization (deterministic, in-script; weights stored pre-padded
# to 128-lane multiples and in bf16 so every matmul sees MXU-native operands).
# ----------------------------------------------------------------------------

def _init_linear(key, din, dout):
    kw, kb = jax.random.split(key)
    bound = 1.0 / np.sqrt(din)
    w = jax.random.uniform(kw, (din, dout), jnp.float32, -bound, bound)
    b = jax.random.uniform(kb, (1, dout), jnp.float32, -bound, bound)
    return w, b


def _init_linear_xavier(key, din, dout):
    kw, kb = jax.random.split(key)
    std = float(np.sqrt(2.0 / (din + dout)))
    w = std * jax.random.normal(kw, (din, dout), jnp.float32)
    b = 0.001 * jax.random.normal(kb, (1, dout), jnp.float32)
    return w, b


def _init_mlnn(key, Ks):
    layers = []
    for i in range(1, len(Ks)):
        key, sub = jax.random.split(key)
        w, b = _init_linear(sub, Ks[i - 1], Ks[i])
        dip, dop = _cpad(Ks[i - 1]), _cpad(Ks[i])
        layers.append((
            _pad2(w, dip, dop).astype(jnp.bfloat16),
            _pad2(b, 1, dop),
            _pad2(jnp.ones((1, Ks[i]), jnp.float32), 1, dop),   # BN gamma
            jnp.zeros((1, dop), jnp.float32),                   # BN beta
        ))
    return layers


def _init_mlp(key, dims):
    layers = []
    for (din, dout) in dims:
        key, sub = jax.random.split(key)
        w, b = _init_linear_xavier(sub, din, dout)
        layers.append((_pad2(w, _cpad(din), _cpad(dout)).astype(jnp.bfloat16),
                       _pad2(b, 1, _cpad(dout))))
    return layers


def init_params(key, in_features, hidden_layers, hidden_features, pc_features,
                graph_net_layers=3, pos_freq_const=10, pos_freq_num=30):
    keys = jax.random.split(key, 16)
    encoder = {
        'psp': {'point_linears': _init_mlnn(keys[0], [4, 32, 64, 128, 300]),
                'out_linears': _init_mlnn(keys[1], [300, 300, 300])},
        'graph_nets': [],
    }
    for i in range(graph_net_layers):
        k0, k1, k2 = jax.random.split(keys[2 + i], 3)
        encoder['graph_nets'].append({
            'auto_offset': _init_mlnn(k0, [300, 64, 3]),
            'edge': _init_mlnn(k1, [303, 300, 300]),
            'update': _init_mlnn(k2, [300, 300, 300]),
        })
    # AggregationLayer: MLP(300, 300, pc_features, num_layers=2, activate_final=True)
    encoder['agg'] = _init_mlp(keys[8], [(300, 300), (300, 300), (300, pc_features)])

    # TODO(synk): PositionalEncoding class is not defined in the reference source;
    # a NeRF-style sin/cos encoding with pos_freq_num log-spaced frequencies is used,
    # producing exactly in_features * pos_freq_num * 2 features.
    m = in_features * pos_freq_num
    assert m <= 128 and pc_features <= 128
    hp = _cpad(hidden_features)
    d_in_true = 2 * m + pc_features
    k_first, k_rest = jax.random.split(keys[9])
    w_dense, b_dense = _init_linear_xavier(k_first, d_in_true, hidden_features)
    # first decoder layer weight laid out as [sin | cos] 128-row blocks, plus a
    # separate g_latent block folded into the bias on the host.
    w_sc = jnp.zeros((2 * 128, hp), jnp.float32)
    w_sc = w_sc.at[0:m, :hidden_features].set(w_dense[0:m])
    w_sc = w_sc.at[128:128 + m, :hidden_features].set(w_dense[m:2 * m])
    w_g = jnp.zeros((128, hp), jnp.float32)
    w_g = w_g.at[:pc_features, :hidden_features].set(w_dense[2 * m:])

    rest = []
    rest_dims = [(hidden_features, hidden_features)] * (hidden_layers - 1) + [(hidden_features, 1)]
    kn = jax.random.split(k_rest, len(rest_dims))
    for i, (din, dout) in enumerate(rest_dims):
        w, b = _init_linear_xavier(kn[i], din, dout)
        rest.append((_pad2(w, _cpad(din), _cpad(dout)).astype(jnp.bfloat16),
                     _pad2(b, 1, _cpad(dout))))

    net = {'w0': w_sc.astype(jnp.bfloat16),
           'b0': _pad2(b_dense, 1, hp),
           'wg': w_g.astype(jnp.bfloat16),
           'rest': rest}

    freqs = jnp.asarray(
        np.pi * (float(pos_freq_const) ** (np.arange(pos_freq_num) / pos_freq_num)),
        jnp.float32)
    return {'encoder': encoder, 'net': net, 'pos_freqs': freqs}


# ----------------------------------------------------------------------------
# Forward pass (thin JAX glue around the fused Pallas kernels)
# ----------------------------------------------------------------------------

def pointgnn_encoder(enc, input_v, vcl, kil, el):
    coords0 = jnp.asarray(vcl[0], jnp.float32)
    coords1 = jnp.asarray(vcl[1], jnp.float32)
    kpi0 = np.asarray(kil[0]).astype(np.int64)
    set_idx = np.asarray(el[0]).astype(np.int64)     # [S, 2] (point_idx, set_idx)
    edges = np.asarray(el[1]).astype(np.int64)       # [E, 2] (src, dst)
    K0 = int(np.asarray(kil[0]).shape[0])
    K1 = int(np.asarray(kil[1]).shape[0])
    S, E = int(set_idx.shape[0]), int(edges.shape[0])
    # level-1 graph is built on the same vertex set produced by PointSetPooling
    assert K0 == K1

    # --- PointSetPooling ---
    p_feat = input_v[set_idx[:, 0]]                                  # [S, 1]
    rel = coords0[set_idx[:, 0]] - coords0[kpi0[set_idx[:, 1], 0]]   # [S, 3]
    x = jnp.concatenate([p_feat, rel], axis=-1)                      # [S, 4]
    x = _pad2(x, _row_bucket(S), _cpad(4))
    h = mlnn_stack(x, enc['psp']['point_linears'], S)                # [S_pad, 384]
    sf = segment_max(h, set_idx[:, 1], S, K0)                        # [K_pad, 384]
    pf = mlnn_stack(sf, enc['psp']['out_linears'], K0)               # [K_pad, 384]

    # --- GraphNetAutoCenter x graph_net_layers ---
    e_rows = _row_bucket(E)
    for gp in enc['graph_nets']:
        off = mlnn_stack(pf, gp['auto_offset'], K1)[:K1, :3]
        new_coords = coords1 + off
        s_feat = pf[edges[:, 0]]
        diff = coords1[edges[:, 0]] - new_coords[edges[:, 1]]
        e_in = jnp.concatenate([s_feat[:, :300], diff], axis=-1)     # [E, 303]
        e_in = _pad2(e_in, e_rows, _cpad(303))
        ef = mlnn_stack(e_in, gp['edge'], E)                         # [E_pad, 384]
        agg_in = segment_max(ef, edges[:, 1], E, K1)                 # [K_pad, 384]
        upd = mlnn_stack(agg_in, gp['update'], K1)
        pf = upd + pf

    # --- AggregationLayer: fused MLP + global_max_pool ---
    return mlp_max(pf, enc['agg'], K1)                               # [1, 128]


def point_gnn_sr_forward(params, lowres_pos, lowres_feats, coords, config):
    B, P, _ = coords.shape
    freqs = params['pos_freqs']
    outs = []
    for b in range(B):
        vcl, kil, el = _gen_multi_level_local_graph_v3(
            np.asarray(lowres_pos[b]), **config['graph_gen_kwargs'])
        input_v = jnp.asarray(lowres_feats[b], jnp.float32).reshape(-1, 1)
        g_latent = pointgnn_encoder(params['encoder'], input_v, vcl, kil, el)
        outs.append(decode(params['net'], coords[b], freqs, g_latent))
    return jnp.stack(outs, axis=0)                                   # [B, P, 1]


# ----------------------------------------------------------------------------

if __name__ == "__main__":
    random.seed(0)
    np.random.seed(0)

    B, N, P = 2, 48, 64
    in_features = 3
    hidden_layers, hidden_features, pc_features = 2, 32, 16

    key = jax.random.PRNGKey(0)
    k1, k2, k3 = jax.random.split(key, 3)
    lowres_pos = jax.random.uniform(k1, (B, N, 3), jnp.float32) * 2.0
    lowres_feats = jax.random.uniform(k2, (B, N), jnp.float32)
    coords = jax.random.uniform(k3, (B, P, in_features), jnp.float32)

    params = init_params(jax.random.PRNGKey(1), in_features, hidden_layers,
                         hidden_features, pc_features, graph_net_layers=3,
                         pos_freq_const=10, pos_freq_num=30)

    config = {
        'graph_gen_method': 'multi_level_local_graph_v3',
        'graph_gen_kwargs': {
            'base_voxel_size': 0.5,
            'add_rnd3d': False,
            'downsample_method': 'random',
            'level_configs': [
                {'graph_level': 0,
                 'graph_gen_method': 'disjointed_rnn_local_graph_v3',
                 'graph_gen_kwargs': {'radius': 0.6, 'num_neighbors': -1},
                 'graph_scale': 1},
                {'graph_level': 1,
                 'graph_gen_method': 'disjointed_rnn_local_graph_v3',
                 'graph_gen_kwargs': {'radius': 0.9, 'num_neighbors': -1},
                 'graph_scale': 1},
            ],
        },
    }

    out = point_gnn_sr_forward(params, lowres_pos, lowres_feats, coords, config)
    out = jax.block_until_ready(out)
    assert out.shape == (B, P, 1), out.shape
    assert bool(jnp.all(jnp.isfinite(out)))
    print("KERNEL_OK")
</pallas_src>

<mosaic_0001>
module attributes {stable_mosaic.version = 11 : i64} {
  func.func @kernel(%arg0: i32, %arg1: memref<1xi32, #tpu.memory_space<smem>>, %arg2: memref<192x128xf32, #tpu.memory_space<vmem>>, %arg3: memref<128x128xbf16, #tpu.memory_space<vmem>>, %arg4: memref<1x128xf32, #tpu.memory_space<vmem>>, %arg5: memref<1x128xf32, #tpu.memory_space<vmem>>, %arg6: memref<1x128xf32, #tpu.memory_space<vmem>>, %arg7: memref<128x128xbf16, #tpu.memory_space<vmem>>, %arg8: memref<1x128xf32, #tpu.memory_space<vmem>>, %arg9: memref<1x128xf32, #tpu.memory_space<vmem>>, %arg10: memref<1x128xf32, #tpu.memory_space<vmem>>, %arg11: memref<128x128xbf16, #tpu.memory_space<vmem>>, %arg12: memref<1x128xf32, #tpu.memory_space<vmem>>, %arg13: memref<1x128xf32, #tpu.memory_space<vmem>>, %arg14: memref<1x128xf32, #tpu.memory_space<vmem>>, %arg15: memref<128x384xbf16, #tpu.memory_space<vmem>>, %arg16: memref<1x384xf32, #tpu.memory_space<vmem>>, %arg17: memref<1x384xf32, #tpu.memory_space<vmem>>, %arg18: memref<1x384xf32, #tpu.memory_space<vmem>>, %arg19: memref<192x384xf32, #tpu.memory_space<vmem>>, %arg20: memref<192x384xf32, #tpu.memory_space<vmem>>) attributes {dimension_semantics = [#tpu.dimension_semantics<arbitrary>], iteration_bounds = array<i64: 1>, scalar_prefetch = 1 : i64, scratch_operands = 1 : i64, tpu.core_type = #tpu.core_type<tc>, window_params = [{pipeline_mode = #tpu.pipeline_mode<synchronous>, transform_indices = @transform_0, window_bounds = array<i64: 192, 128>}, {pipeline_mode = #tpu.pipeline_mode<synchronous>, transform_indices = @transform_1, window_bounds = array<i64: 128, 128>}, {pipeline_mode = #tpu.pipeline_mode<synchronous>, transform_indices = @transform_2, window_bounds = array<i64: 1, 128>}, {pipeline_mode = #tpu.pipeline_mode<synchronous>, transform_indices = @transform_3, window_bounds = array<i64: 1, 128>}, {pipeline_mode = #tpu.pipeline_mode<synchronous>, transform_indices = @transform_4, window_bounds = array<i64: 1, 128>}, {pipeline_mode = #tpu.pipeline_mode<synchronous>, transform_indices = @transform_5, window_bounds = array<i64: 128, 128>}, {pipeline_mode = #tpu.pipeline_mode<synchronous>, transform_indices = @transform_6, window_bounds = array<i64: 1, 128>}, {pipeline_mode = #tpu.pipeline_mode<synchronous>, transform_indices = @transform_7, window_bounds = array<i64: 1, 128>}, {pipeline_mode = #tpu.pipeline_mode<synchronous>, transform_indices = @transform_8, window_bounds = array<i64: 1, 128>}, {pipeline_mode = #tpu.pipeline_mode<synchronous>, transform_indices = @transform_9, window_bounds = array<i64: 128, 128>}, {pipeline_mode = #tpu.pipeline_mode<synchronous>, transform_indices = @transform_10, window_bounds = array<i64: 1, 128>}, {pipeline_mode = #tpu.pipeline_mode<synchronous>, transform_indices = @transform_11, window_bounds = array<i64: 1, 128>}, {pipeline_mode = #tpu.pipeline_mode<synchronous>, transform_indices = @transform_12, window_bounds = array<i64: 1, 128>}, {pipeline_mode = #tpu.pipeline_mode<synchronous>, transform_indices = @transform_13, window_bounds = array<i64: 128, 384>}, {pipeline_mode = #tpu.pipeline_mode<synchronous>, transform_indices = @transform_14, window_bounds = array<i64: 1, 384>}, {pipeline_mode = #tpu.pipeline_mode<synchronous>, transform_indices = @transform_15, window_bounds = array<i64: 1, 384>}, {pipeline_mode = #tpu.pipeline_mode<synchronous>, transform_indices = @transform_16, window_bounds = array<i64: 1, 384>}, {pipeline_mode = #tpu.pipeline_mode<synchronous>, transform_indices = @transform_17, window_bounds = array<i64: 192, 384>}]} {
    %c0 = arith.constant 0 : index
    %0 = memref.load %arg1[%c0] : memref<1xi32, #tpu.memory_space<smem>>
    %c1_i32 = arith.constant 1 : i32
    %1 = arith.maxsi %0, %c1_i32 : i32
    %2 = arith.sitofp %1 : i32 to f32
    %cst = arith.constant 1.000000e+00 : f32
    %3 = arith.divf %cst, %2 : f32
    %4 = tpu.iota {dimensions = array<i32: 0>} : vector<192x1xi32>
    %5 = vector.broadcast %0 : i32 to vector<192x1xi32>
    %6 = arith.cmpi slt, %4, %5 : vector<192x1xi32>
    %c0_0 = arith.constant 0 : index
    %c0_1 = arith.constant 0 : index
    %7 = vector.load %arg2[%c0_0, %c0_1] : memref<192x128xf32, #tpu.memory_space<vmem>>, vector<192x128xf32>
    %8 = arith.truncf %7 : vector<192x128xf32> to vector<192x128xbf16>
    %c0_2 = arith.constant 0 : index
    %c0_3 = arith.constant 0 : index
    %9 = vector.load %arg3[%c0_2, %c0_3] : memref<128x128xbf16, #tpu.memory_space<vmem>>, vector<128x128xbf16>
    %cst_4 = arith.constant dense<0.000000e+00> : vector<192x128xf32>
    %10 = tpu.matmul %8, %9, %cst_4 {dimension_numbers = #tpu.dot_dimension_numbers<[1], [0], [0], [1], [0, 0, 1, 1], [], []>} : vector<192x128xbf16>, vector<128x128xbf16>, vector<192x128xf32> -> vector<192x128xf32>
    %c0_5 = arith.constant 0 : index
    %c0_6 = arith.constant 0 : index
    %11 = vector.load %arg4[%c0_5, %c0_6] : memref<1x128xf32, #tpu.memory_space<vmem>>, vector<1x128xf32>
    %12 = vector.broadcast %11 : vector<1x128xf32> to vector<192x128xf32>
    %13 = arith.addf %10, %12 : vector<192x128xf32>
    %cst_7 = arith.constant 0.000000e+00 : f32
    %14 = vector.broadcast %cst_7 : f32 to vector<192x128xf32>
    %15 = arith.maximumf %13, %14 : vector<192x128xf32>
    %cst_8 = arith.constant 0.000000e+00 : f32
    %16 = vector.shape_cast %6 : vector<192x1xi1> to vector<192x1xi1>
    %17 = vector.broadcast %16 : vector<192x1xi1> to vector<192x128xi1>
    %18 = vector.broadcast %cst_8 : f32 to vector<192x128xf32>
    %19 = arith.select %17, %15, %18 : vector<192x128xi1>, vector<192x128xf32>
    %cst_9 = arith.constant dense<0.000000e+00> : vector<128xf32>
    %20 = vector.multi_reduction <add>, %19, %cst_9 [0] : vector<192x128xf32> to vector<128xf32>
    %21 = vector.shape_cast %20 : vector<128xf32> to vector<1x128xf32>
    %22 = vector.broadcast %3 : f32 to vector<1x128xf32>
    %23 = arith.mulf %21, %22 : vector<1x128xf32>
    %24 = vector.broadcast %23 : vector<1x128xf32> to vector<192x128xf32>
    %25 = arith.subf %15, %24 : vector<192x128xf32>
    %cst_10 = arith.constant 0.000000e+00 : f32
    %26 = vector.shape_cast %6 : vector<192x1xi1> to vector<192x1xi1>
    %27 = vector.broadcast %26 : vector<192x1xi1> to vector<192x128xi1>
    %28 = vector.broadcast %cst_10 : f32 to vector<192x128xf32>
    %29 = arith.select %27, %25, %28 : vector<192x128xi1>, vector<192x128xf32>
    %30 = arith.mulf %29, %29 : vector<192x128xf32>
    %cst_11 = arith.constant dense<0.000000e+00> : vector<128xf32>
    %31 = vector.multi_reduction <add>, %30, %cst_11 [0] : vector<192x128xf32> to vector<128xf32>
    %32 = vector.shape_cast %31 : vector<128xf32> to vector<1x128xf32>
    %33 = vector.broadcast %3 : f32 to vector<1x128xf32>
    %34 = arith.mulf %32, %33 : vector<1x128xf32>
    %35 = vector.broadcast %23 : vector<1x128xf32> to vector<192x128xf32>
    %36 = arith.subf %15, %35 : vector<192x128xf32>
    %cst_12 = arith.constant 9.99999974E-6 : f32
    %37 = vector.broadcast %cst_12 : f32 to vector<1x128xf32>
    %38 = arith.addf %34, %37 : vector<1x128xf32>
    %39 = math.rsqrt %38 : vector<1x128xf32>
    %40 = vector.broadcast %39 : vector<1x128xf32> to vector<192x128xf32>
    %41 = arith.mulf %36, %40 : vector<192x128xf32>
    %c0_13 = arith.constant 0 : index
    %c0_14 = arith.constant 0 : index
    %42 = vector.load %arg5[%c0_13, %c0_14] : memref<1x128xf32, #tpu.memory_space<vmem>>, vector<1x128xf32>
    %43 = vector.broadcast %42 : vector<1x128xf32> to vector<192x128xf32>
    %44 = arith.mulf %41, %43 : vector<192x128xf32>
    %c0_15 = arith.constant 0 : index
    %c0_16 = arith.constant 0 : index
    %45 = vector.load %arg6[%c0_15, %c0_16] : memref<1x128xf32, #tpu.memory_space<vmem>>, vector<1x128xf32>
    %46 = vector.broadcast %45 : vector<1x128xf32> to vector<192x128xf32>
    %47 = arith.addf %44, %46 : vector<192x128xf32>
    %c0_17 = arith.constant 0 : index
    %c0_18 = arith.constant 0 : index
    %48 = vector.load %arg20[%c0_17, %c0_18] : memref<192x384xf32, #tpu.memory_space<vmem>>, vector<192x128xf32>
    tpu.vector_store %arg20[%c0_17, %c0_18], %47 {strides = array<i32>} : memref<192x384xf32, #tpu.memory_space<vmem>>, vector<192x128xf32>,
    %c0_19 = arith.constant 0 : index
    %c0_20 = arith.constant 0 : index
    %49 = vector.load %arg20[%c0_19, %c0_20] : memref<192x384xf32, #tpu.memory_space<vmem>>, vector<192x128xf32>
    %50 = arith.truncf %49 : vector<192x128xf32> to vector<192x128xbf16>
    %c0_21 = arith.constant 0 : index
    %c0_22 = arith.constant 0 : index
    %51 = vector.load %arg7[%c0_21, %c0_22] : memref<128x128xbf16, #tpu.memory_space<vmem>>, vector<128x128xbf16>
    %cst_23 = arith.constant dense<0.000000e+00> : vector<192x128xf32>
    %52 = tpu.matmul %50, %51, %cst_23 {dimension_numbers = #tpu.dot_dimension_numbers<[1], [0], [0], [1], [0, 0, 1, 1], [], []>} : vector<192x128xbf16>, vector<128x128xbf16>, vector<192x128xf32> -> vector<192x128xf32>
    %c0_24 = arith.constant 0 : index
    %c0_25 = arith.constant 0 : index
    %53 = vector.load %arg8[%c0_24, %c0_25] : memref<1x128xf32, #tpu.memory_space<vmem>>, vector<1x128xf32>
    %54 = vector.broadcast %53 : vector<1x128xf32> to vector<192x128xf32>
    %55 = arith.addf %52, %54 : vector<192x128xf32>
    %cst_26 = arith.constant 0.000000e+00 : f32
    %56 = vector.broadcast %cst_26 : f32 to vector<192x128xf32>
    %57 = arith.maximumf %55, %56 : vector<192x128xf32>
    %cst_27 = arith.constant 0.000000e+00 : f32
    %58 = vector.shape_cast %6 : vector<192x1xi1> to vector<192x1xi1>
    %59 = vector.broadcast %58 : vector<192x1xi1> to vector<192x128xi1>
    %60 = vector.broadcast %cst_27 : f32 to vector<192x128xf32>
    %61 = arith.select %59, %57, %60 : vector<192x128xi1>, vector<192x128xf32>
    %cst_28 = arith.constant dense<0.000000e+00> : vector<128xf32>
    %62 = vector.multi_reduction <add>, %61, %cst_28 [0] : vector<192x128xf32> to vector<128xf32>
    %63 = vector.shape_cast %62 : vector<128xf32> to vector<1x128xf32>
    %64 = vector.broadcast %3 : f32 to vector<1x128xf32>
    %65 = arith.mulf %63, %64 : vector<1x128xf32>
    %66 = vector.broadcast %65 : vector<1x128xf32> to vector<192x128xf32>
    %67 = arith.subf %57, %66 : vector<192x128xf32>
    %cst_29 = arith.constant 0.000000e+00 : f32
    %68 = vector.shape_cast %6 : vector<192x1xi1> to vector<192x1xi1>
    %69 = vector.broadcast %68 : vector<192x1xi1> to vector<192x128xi1>
    %70 = vector.broadcast %cst_29 : f32 to vector<192x128xf32>
    %71 = arith.select %69, %67, %70 : vector<192x128xi1>, vector<192x128xf32>
    %72 = arith.mulf %71, %71 : vector<192x128xf32>
    %cst_30 = arith.constant dense<0.000000e+00> : vector<128xf32>
    %73 = vector.multi_reduction <add>, %72, %cst_30 [0] : vector<192x128xf32> to vector<128xf32>
    %74 = vector.shape_cast %73 : vector<128xf32> to vector<1x128xf32>
    %75 = vector.broadcast %3 : f32 to vector<1x128xf32>
    %76 = arith.mulf %74, %75 : vector<1x128xf32>
    %77 = vector.broadcast %65 : vector<1x128xf32> to vector<192x128xf32>
    %78 = arith.subf %57, %77 : vector<192x128xf32>
    %cst_31 = arith.constant 9.99999974E-6 : f32
    %79 = vector.broadcast %cst_31 : f32 to vector<1x128xf32>
    %80 = arith.addf %76, %79 : vector<1x128xf32>
    %81 = math.rsqrt %80 : vector<1x128xf32>
    %82 = vector.broadcast %81 : vector<1x128xf32> to vector<192x128xf32>
    %83 = arith.mulf %78, %82 : vector<192x128xf32>
    %c0_32 = arith.constant 0 : index
    %c0_33 = arith.constant 0 : index
    %84 = vector.load %arg9[%c0_32, %c0_33] : memref<1x128xf32, #tpu.memory_space<vmem>>, vector<1x128xf32>
    %85 = vector.broadcast %84 : vector<1x128xf32> to vector<192x128xf32>
    %86 = arith.mulf %83, %85 : vector<192x128xf32>
    %c0_34 = arith.constant 0 : index
    %c0_35 = arith.constant 0 : index
    %87 = vector.load %arg10[%c0_34, %c0_35] : memref<1x128xf32, #tpu.memory_space<vmem>>, vector<1x128xf32>
    %88 = vector.broadcast %87 : vector<1x128xf32> to vector<192x128xf32>
    %89 = arith.addf %86, %88 : vector<192x128xf32>
    %c0_36 = arith.constant 0 : index
    %c0_37 = arith.constant 0 : index
    %90 = vector.load %arg20[%c0_36, %c0_37] : memref<192x384xf32, #tpu.memory_space<vmem>>, vector<192x128xf32>
    tpu.vector_store %arg20[%c0_36, %c0_37], %89 {strides = array<i32>} : memref<192x384xf32, #tpu.memory_space<vmem>>, vector<192x128xf32>,
    %c0_38 = arith.constant 0 : index
    %c0_39 = arith.constant 0 : index
    %91 = vector.load %arg20[%c0_38, %c0_39] : memref<192x384xf32, #tpu.memory_space<vmem>>, vector<192x128xf32>
    %92 = arith.truncf %91 : vector<192x128xf32> to vector<192x128xbf16>
    %c0_40 = arith.constant 0 : index
    %c0_41 = arith.constant 0 : index
    %93 = vector.load %arg11[%c0_40, %c0_41] : memref<128x128xbf16, #tpu.memory_space<vmem>>, vector<128x128xbf16>
    %cst_42 = arith.constant dense<0.000000e+00> : vector<192x128xf32>
    %94 = tpu.matmul %92, %93, %cst_42 {dimension_numbers = #tpu.dot_dimension_numbers<[1], [0], [0], [1], [0, 0, 1, 1], [], []>} : vector<192x128xbf16>, vector<128x128xbf16>, vector<192x128xf32> -> vector<192x128xf32>
    %c0_43 = arith.constant 0 : index
    %c0_44 = arith.constant 0 : index
    %95 = vector.load %arg12[%c0_43, %c0_44] : memref<1x128xf32, #tpu.memory_space<vmem>>, vector<1x128xf32>
    %96 = vector.broadcast %95 : vector<1x128xf32> to vector<192x128xf32>
    %97 = arith.addf %94, %96 : vector<192x128xf32>
    %cst_45 = arith.constant 0.000000e+00 : f32
    %98 = vector.broadcast %cst_45 : f32 to vector<192x128xf32>
    %99 = arith.maximumf %97, %98 : vector<192x128xf32>
    %cst_46 = arith.constant 0.000000e+00 : f32
    %100 = vector.shape_cast %6 : vector<192x1xi1> to vector<192x1xi1>
    %101 = vector.broadcast %100 : vector<192x1xi1> to vector<192x128xi1>
    %102 = vector.broadcast %cst_46 : f32 to vector<192x128xf32>
    %103 = arith.select %101, %99, %102 : vector<192x128xi1>, vector<192x128xf32>
    %cst_47 = arith.constant dense<0.000000e+00> : vector<128xf32>
    %104 = vector.multi_reduction <add>, %103, %cst_47 [0] : vector<192x128xf32> to vector<128xf32>
    %105 = vector.shape_cast %104 : vector<128xf32> to vector<1x128xf32>
    %106 = vector.broadcast %3 : f32 to vector<1x128xf32>
    %107 = arith.mulf %105, %106 : vector<1x128xf32>
    %108 = vector.broadcast %107 : vector<1x128xf32> to vector<192x128xf32>
    %109 = arith.subf %99, %108 : vector<192x128xf32>
    %cst_48 = arith.constant 0.000000e+00 : f32
    %110 = vector.shape_cast %6 : vector<192x1xi1> to vector<192x1xi1>
    %111 = vector.broadcast %110 : vector<192x1xi1> to vector<192x128xi1>
    %112 = vector.broadcast %cst_48 : f32 to vector<192x128xf32>
    %113 = arith.select %111, %109, %112 : vector<192x128xi1>, vector<192x128xf32>
    %114 = arith.mulf %113, %113 : vector<192x128xf32>
    %cst_49 = arith.constant dense<0.000000e+00> : vector<128xf32>
    %115 = vector.multi_reduction <add>, %114, %cst_49 [0] : vector<192x128xf32> to vector<128xf32>
    %116 = vector.shape_cast %115 : vector<128xf32> to vector<1x128xf32>
    %117 = vector.broadcast %3 : f32 to vector<1x128xf32>
    %118 = arith.mulf %116, %117 : vector<1x128xf32>
    %119 = vector.broadcast %107 : vector<1x128xf32> to vector<192x128xf32>
    %120 = arith.subf %99, %119 : vector<192x128xf32>
    %cst_50 = arith.constant 9.99999974E-6 : f32
    %121 = vector.broadcast %cst_50 : f32 to vector<1x128xf32>
    %122 = arith.addf %118, %121 : vector<1x128xf32>
    %123 = math.rsqrt %122 : vector<1x128xf32>
    %124 = vector.broadcast %123 : vector<1x128xf32> to vector<192x128xf32>
    %125 = arith.mulf %120, %124 : vector<192x128xf32>
    %c0_51 = arith.constant 0 : index
    %c0_52 = arith.constant 0 : index
    %126 = vector.load %arg13[%c0_51, %c0_52] : memref<1x128xf32, #tpu.memory_space<vmem>>, vector<1x128xf32>
    %127 = vector.broadcast %126 : vector<1x128xf32> to vector<192x128xf32>
    %128 = arith.mulf %125, %127 : vector<192x128xf32>
    %c0_53 = arith.constant 0 : index
    %c0_54 = arith.constant 0 : index
    %129 = vector.load %arg14[%c0_53, %c0_54] : memref<1x128xf32, #tpu.memory_space<vmem>>, vector<1x128xf32>
    %130 = vector.broadcast %129 : vector<1x128xf32> to vector<192x128xf32>
    %131 = arith.addf %128, %130 : vector<192x128xf32>
    %c0_55 = arith.constant 0 : index
    %c0_56 = arith.constant 0 : index
    %132 = vector.load %arg20[%c0_55, %c0_56] : memref<192x384xf32, #tpu.memory_space<vmem>>, vector<192x128xf32>
    tpu.vector_store %arg20[%c0_55, %c0_56], %131 {strides = array<i32>} : memref<192x384xf32, #tpu.memory_space<vmem>>, vector<192x128xf32>,
    %c0_57 = arith.constant 0 : index
    %c0_58 = arith.constant 0 : index
    %133 = vector.load %arg20[%c0_57, %c0_58] : memref<192x384xf32, #tpu.memory_space<vmem>>, vector<192x128xf32>
    %134 = arith.truncf %133 : vector<192x128xf32> to vector<192x128xbf16>
    %c0_59 = arith.constant 0 : index
    %c0_60 = arith.constant 0 : index
    %135 = vector.load %arg15[%c0_59, %c0_60] : memref<128x384xbf16, #tpu.memory_space<vmem>>, vector<128x384xbf16>
    %cst_61 = arith.constant dense<0.000000e+00> : vector<192x384xf32>
    %136 = tpu.matmul %134, %135, %cst_61 {dimension_numbers = #tpu.dot_dimension_numbers<[1], [0], [0], [1], [0, 0, 1, 1], [], []>} : vector<192x128xbf16>, vector<128x384xbf16>, vector<192x384xf32> -> vector<192x384xf32>
    %c0_62 = arith.constant 0 : index
    %c0_63 = arith.constant 0 : index
    %137 = vector.load %arg16[%c0_62, %c0_63] : memref<1x384xf32, #tpu.memory_space<vmem>>, vector<1x384xf32>
    %138 = vector.broadcast %137 : vector<1x384xf32> to vector<192x384xf32>
    %139 = arith.addf %136, %138 : vector<192x384xf32>
    %cst_64 = arith.constant 0.000000e+00 : f32
    %140 = vector.broadcast %cst_64 : f32 to vector<192x384xf32>
    %141 = arith.maximumf %139, %140 : vector<192x384xf32>
    %cst_65 = arith.constant 0.000000e+00 : f32
    %142 = vector.shape_cast %6 : vector<192x1xi1> to vector<192x1xi1>
    %143 = vector.broadcast %142 : vector<192x1xi1> to vector<192x384xi1>
    %144 = vector.broadcast %cst_65 : f32 to vector<192x384xf32>
    %145 = arith.select %143, %141, %144 : vector<192x384xi1>, vector<192x384xf32>
    %cst_66 = arith.constant dense<0.000000e+00> : vector<384xf32>
    %146 = vector.multi_reduction <add>, %145, %cst_66 [0] : vector<192x384xf32> to vector<384xf32>
    %147 = vector.shape_cast %146 : vector<384xf32> to vector<1x384xf32>
    %148 = vector.broadcast %3 : f32 to vector<1x384xf32>
    %149 = arith.mulf %147, %148 : vector<1x384xf32>
    %150 = vector.broadcast %149 : vector<1x384xf32> to vector<192x384xf32>
    %151 = arith.subf %141, %150 : vector<192x384xf32>
    %cst_67 = arith.constant 0.000000e+00 : f32
    %152 = vector.shape_cast %6 : vector<192x1xi1> to vector<192x1xi1>
    %153 = vector.broadcast %152 : vector<192x1xi1> to vector<192x384xi1>
    %154 = vector.broadcast %cst_67 : f32 to vector<192x384xf32>
    %155 = arith.select %153, %151, %154 : vector<192x384xi1>, vector<192x384xf32>
    %156 = arith.mulf %155, %155 : vector<192x384xf32>
    %cst_68 = arith.constant dense<0.000000e+00> : vector<384xf32>
    %157 = vector.multi_reduction <add>, %156, %cst_68 [0] : vector<192x384xf32> to vector<384xf32>
    %158 = vector.shape_cast %157 : vector<384xf32> to vector<1x384xf32>
    %159 = vector.broadcast %3 : f32 to vector<1x384xf32>
    %160 = arith.mulf %158, %159 : vector<1x384xf32>
    %161 = vector.broadcast %149 : vector<1x384xf32> to vector<192x384xf32>
    %162 = arith.subf %141, %161 : vector<192x384xf32>
    %cst_69 = arith.constant 9.99999974E-6 : f32
    %163 = vector.broadcast %cst_69 : f32 to vector<1x384xf32>
    %164 = arith.addf %160, %163 : vector<1x384xf32>
    %165 = math.rsqrt %164 : vector<1x384xf32>
    %166 = vector.broadcast %165 : vector<1x384xf32> to vector<192x384xf32>
    %167 = arith.mulf %162, %166 : vector<192x384xf32>
    %c0_70 = arith.constant 0 : index
    %c0_71 = arith.constant 0 : index
    %168 = vector.load %arg17[%c0_70, %c0_71] : memref<1x384xf32, #tpu.memory_space<vmem>>, vector<1x384xf32>
    %169 = vector.broadcast %168 : vector<1x384xf32> to vector<192x384xf32>
    %170 = arith.mulf %167, %169 : vector<192x384xf32>
    %c0_72 = arith.constant 0 : index
    %c0_73 = arith.constant 0 : index
    %171 = vector.load %arg18[%c0_72, %c0_73] : memref<1x384xf32, #tpu.memory_space<vmem>>, vector<1x384xf32>
    %172 = vector.broadcast %171 : vector<1x384xf32> to vector<192x384xf32>
    %173 = arith.addf %170, %172 : vector<192x384xf32>
    %c0_74 = arith.constant 0 : index
    %c0_75 = arith.constant 0 : index
    %174 = vector.load %arg20[%c0_74, %c0_75] : memref<192x384xf32, #tpu.memory_space<vmem>>, vector<192x384xf32>
    tpu.vector_store %arg20[%c0_74, %c0_75], %173 {strides = array<i32>} : memref<192x384xf32, #tpu.memory_space<vmem>>, vector<192x384xf32>,
    %c0_76 = arith.constant 0 : index
    %c0_77 = arith.constant 0 : index
    %175 = vector.load %arg20[%c0_76, %c0_77] : memref<192x384xf32, #tpu.memory_space<vmem>>, vector<192x384xf32>
    %c0_78 = arith.constant 0 : index
    %c0_79 = arith.constant 0 : index
    %176 = vector.load %arg19[%c0_78, %c0_79] : memref<192x384xf32, #tpu.memory_space<vmem>>, vector<192x384xf32>
    tpu.vector_store %arg19[%c0_78, %c0_79], %175 {strides = array<i32>} : memref<192x384xf32, #tpu.memory_space<vmem>>, vector<192x384xf32>,
    return
  }
  func.func @transform_0(%arg0: i32, %arg1: memref<1xi32, #tpu.memory_space<smem>>) -> (i32, i32) {
    %c0_i32 = arith.constant 0 : i32
    %c0_i32_0 = arith.constant 0 : i32
    %c0_i32_1 = arith.constant 0 : i32
    return %c0_i32, %c0_i32_0 : i32, i32
  }
  func.func @transform_1(%arg0: i32, %arg1: memref<1xi32, #tpu.memory_space<smem>>) -> (i32, i32) {
    %c0_i32 = arith.constant 0 : i32
    %c0_i32_0 = arith.constant 0 : i32
    %c0_i32_1 = arith.constant 0 : i32
    return %c0_i32, %c0_i32_0 : i32, i32
  }
  func.func @transform_2(%arg0: i32, %arg1: memref<1xi32, #tpu.memory_space<smem>>) -> (i32, i32) {
    %c0_i32 = arith.constant 0 : i32
    %c0_i32_0 = arith.constant 0 : i32
    %c0_i32_1 = arith.constant 0 : i32
    return %c0_i32, %c0_i32_0 : i32, i32
  }
  func.func @transform_3(%arg0: i32, %arg1: memref<1xi32, #tpu.memory_space<smem>>) -> (i32, i32) {
    %c0_i32 = arith.constant 0 : i32
    %c0_i32_0 = arith.constant 0 : i32
    %c0_i32_1 = arith.constant 0 : i32
    return %c0_i32, %c0_i32_0 : i32, i32
  }
  func.func @transform_4(%arg0: i32, %arg1: memref<1xi32, #tpu.memory_space<smem>>) -> (i32, i32) {
    %c0_i32 = arith.constant 0 : i32
    %c0_i32_0 = arith.constant 0 : i32
    %c0_i32_1 = arith.constant 0 : i32
    return %c0_i32, %c0_i32_0 : i32, i32
  }
  func.func @transform_5(%arg0: i32, %arg1: memref<1xi32, #tpu.memory_space<smem>>) -> (i32, i32) {
    %c0_i32 = arith.constant 0 : i32
    %c0_i32_0 = arith.constant 0 : i32
    %c0_i32_1 = arith.constant 0 : i32
    return %c0_i32, %c0_i32_0 : i32, i32
  }
  func.func @transform_6(%arg0: i32, %arg1: memref<1xi32, #tpu.memory_space<smem>>) -> (i32, i32) {
    %c0_i32 = arith.constant 0 : i32
    %c0_i32_0 = arith.constant 0 : i32
    %c0_i32_1 = arith.constant 0 : i32
    return %c0_i32, %c0_i32_0 : i32, i32
  }
  func.func @transform_7(%arg0: i32, %arg1: memref<1xi32, #tpu.memory_space<smem>>) -> (i32, i32) {
    %c0_i32 = arith.constant 0 : i32
    %c0_i32_0 = arith.constant 0 : i32
    %c0_i32_1 = arith.constant 0 : i32
    return %c0_i32, %c0_i32_0 : i32, i32
  }
  func.func @transform_8(%arg0: i32, %arg1: memref<1xi32, #tpu.memory_space<smem>>) -> (i32, i32) {
    %c0_i32 = arith.constant 0 : i32
    %c0_i32_0 = arith.constant 0 : i32
    %c0_i32_1 = arith.constant 0 : i32
    return %c0_i32, %c0_i32_0 : i32, i32
  }
  func.func @transform_9(%arg0: i32, %arg1: memref<1xi32, #tpu.memory_space<smem>>) -> (i32, i32) {
    %c0_i32 = arith.constant 0 : i32
    %c0_i32_0 = arith.constant 0 : i32
    %c0_i32_1 = arith.constant 0 : i32
    return %c0_i32, %c0_i32_0 : i32, i32
  }
  func.func @transform_10(%arg0: i32, %arg1: memref<1xi32, #tpu.memory_space<smem>>) -> (i32, i32) {
    %c0_i32 = arith.constant 0 : i32
    %c0_i32_0 = arith.constant 0 : i32
    %c0_i32_1 = arith.constant 0 : i32
    return %c0_i32, %c0_i32_0 : i32, i32
  }
  func.func @transform_11(%arg0: i32, %arg1: memref<1xi32, #tpu.memory_space<smem>>) -> (i32, i32) {
    %c0_i32 = arith.constant 0 : i32
    %c0_i32_0 = arith.constant 0 : i32
    %c0_i32_1 = arith.constant 0 : i32
    return %c0_i32, %c0_i32_0 : i32, i32
  }
  func.func @transform_12(%arg0: i32, %arg1: memref<1xi32, #tpu.memory_space<smem>>) -> (i32, i32) {
    %c0_i32 = arith.constant 0 : i32
    %c0_i32_0 = arith.constant 0 : i32
    %c0_i32_1 = arith.constant 0 : i32
    return %c0_i32, %c0_i32_0 : i32, i32
  }
  func.func @transform_13(%arg0: i32, %arg1: memref<1xi32, #tpu.memory_space<smem>>) -> (i32, i32) {
    %c0_i32 = arith.constant 0 : i32
    %c0_i32_0 = arith.constant 0 : i32
    %c0_i32_1 = arith.constant 0 : i32
    return %c0_i32, %c0_i32_0 : i32, i32
  }
  func.func @transform_14(%arg0: i32, %arg1: memref<1xi32, #tpu.memory_space<smem>>) -> (i32, i32) {
    %c0_i32 = arith.constant 0 : i32
    %c0_i32_0 = arith.constant 0 : i32
    %c0_i32_1 = arith.constant 0 : i32
    return %c0_i32, %c0_i32_0 : i32, i32
  }
  func.func @transform_15(%arg0: i32, %arg1: memref<1xi32, #tpu.memory_space<smem>>) -> (i32, i32) {
    %c0_i32 = arith.constant 0 : i32
    %c0_i32_0 = arith.constant 0 : i32
    %c0_i32_1 = arith.constant 0 : i32
    return %c0_i32, %c0_i32_0 : i32, i32
  }
  func.func @transform_16(%arg0: i32, %arg1: memref<1xi32, #tpu.memory_space<smem>>) -> (i32, i32) {
    %c0_i32 = arith.constant 0 : i32
    %c0_i32_0 = arith.constant 0 : i32
    %c0_i32_1 = arith.constant 0 : i32
    return %c0_i32, %c0_i32_0 : i32, i32
  }
  func.func @transform_17(%arg0: i32, %arg1: memref<1xi32, #tpu.memory_space<smem>>) -> (i32, i32) {
    %c0_i32 = arith.constant 0 : i32
    %c0_i32_0 = arith.constant 0 : i32
    %c0_i32_1 = arith.constant 0 : i32
    return %c0_i32, %c0_i32_0 : i32, i32
  }
}

</mosaic_0001>

<bundles_post_ra>
// kernel: tpu_custom_call.1
= control target key start
LH: loop header
LB: loop body
LE: loop exit
PB: predicated region body
PF: predicated region fallthrough
CT: control target
= control target key end

     0   :  { %s7164_s0 = inlined_call_operand.<no memory space> [shape: s32[1], index: 0, kind: input, shape index: {}]   ;;  %s7165_s1 = inlined_call_operand.hbm [shape: f32[192,128], index: 1, kind: input, shape index: {}]   ;;  %s7166_s2 = inlined_call_operand.hbm [shape: bf16[128,128], index: 2, kind: input, shape index: {}]   ;;  %s7167_s3 = inlined_call_operand.hbm [shape: f32[1,128], index: 3, kind: input, shape index: {}]   ;;  %s7168_s4 = inlined_call_operand.hbm [shape: f32[1,128], index: 4, kind: input, shape index: {}]   ;;  %s7169_s5 = inlined_call_operand.hbm [shape: f32[1,128], index: 5, kind: input, shape index: {}]   ;;  %s7170_s6 = inlined_call_operand.hbm [shape: bf16[128,128], index: 6, kind: input, shape index: {}]   ;;  %s7171_s7 = inlined_call_operand.hbm [shape: f32[1,128], index: 7, kind: input, shape index: {}]   ;;  %s7172_s8 = inlined_call_operand.hbm [shape: f32[1,128], index: 8, kind: input, shape index: {}]   ;;  %s7173_s9 = inlined_call_operand.hbm [shape: f32[1,128], index: 9, kind: input, shape index: {}]   ;;  %s7174_s10 = inlined_call_operand.hbm [shape: bf16[128,128], index: 10, kind: input, shape index: {}]   ;;  %s7175_s11 = inlined_call_operand.vmem [shape: f32[1,128], index: 11, kind: input, shape index: {}]   ;;  %s7176_s12 = inlined_call_operand.vmem [shape: f32[1,128], index: 12, kind: input, shape index: {}]   ;;  %s7177_s13 = inlined_call_operand.vmem [shape: f32[1,128], index: 13, kind: input, shape index: {}]   ;;  %s7178_s14 = inlined_call_operand.hbm [shape: bf16[128,384], index: 14, kind: input, shape index: {}]   ;;  %s7179_s15 = inlined_call_operand.vmem [shape: f32[1,384], index: 15, kind: input, shape index: {}]   ;;  %s7180_s16 = inlined_call_operand.vmem [shape: f32[1,384], index: 16, kind: input, shape index: {}]   ;;  %s7181_s17 = inlined_call_operand.vmem [shape: f32[1,384], index: 17, kind: input, shape index: {}]   ;;  %s7182_s18 = inlined_call_operand.hbm [shape: f32[192,384], index: 18, kind: output, shape index: {}]  }
   0x1   :  { %7547 = sst [smem:[#allocation108_spill]] %s7164_s0 }
   0x2   :  { %7548 = sst [smem:[#allocation109_spill]] %s7165_s1 }
   0x3   :  { %7549 = sst [smem:[#allocation110_spill]] %s7166_s2 }
   0x4   :  { %24 = vsyncpa [#allocation6], 0 }
   0x5   :  { %25 = vsyncpa [#allocation9], 0 }
   0x6   :  { %26 = vsyncpa [#allocation12], 0 }
   0x7   :  { %27 = vsyncpa [#allocation15], 0 }
   0x8   :  { %28 = vsyncpa [#allocation18], 0 }
   0x9   :  { %29 = vsyncpa [#allocation21], 0  ;;  %s7550_s29 = sld [smem:[#allocation110_spill]] }
   0xf   :  { %s48_s30 = sshll.u32 %s7550_s29, 4  ;;  %s49_s30 = int_to_ptr.hbm [resolvable:$true] %s48_s30 }
  0x10   :  { %30 = vsyncpa [#allocation7], 0  ;;  %s3800_s0 = smov [#allocation8]   ;;  %s73_s21 = sshll.u32 %s7168_s4, 4  ;;  %s74_s21 = int_to_ptr.hbm [resolvable:$true] %s73_s21 }
  0x11   :  { %s50_s19 = sshll.u32 %s3800_s0, 4  ;;  %s3801_s22 = smov 64   ;;  %s51_s19 = int_to_ptr.vmem [resolvable:$true] %s50_s19 }
  0x12   :  { %s3802_s2 = smov 4   ;;  %s3803_s23 = smov [#allocation11]  }
  0x13   :  { %56 = dma.hbm_to_vmem [thread:$0]  %s49_s30, 1024, %s51_s19, [#allocation9], %s3801_s22, %s3801_s22, %s3802_s2  }
  0x14   :  { %s75_s24 = sshll.u32 %s3803_s23, 4  ;;  %s94_s27 = sshll.u32 %s7170_s6, 4  ;;  %s76_s24 = int_to_ptr.vmem [resolvable:$true] %s75_s24  ;;  %s95_s27 = int_to_ptr.hbm [resolvable:$true] %s94_s27 }
  0x15   :  { %78 = dma.hbm_to_vmem [thread:$0]  %s74_s21, 16, %s76_s24, [#allocation12]  }
  0x16   :  { %s119_s4 = sshll.u32 %s7172_s8, 4  ;;  %s3804_s0 = smov [#allocation14]   ;;  %s120_s4 = int_to_ptr.hbm [resolvable:$true] %s119_s4 }
  0x17   :  { %s96_s1 = sshll.u32 %s3804_s0, 4  ;;  %s3805_s30 = smov [#allocation17]   ;;  %s97_s1 = int_to_ptr.vmem [resolvable:$true] %s96_s1 }
  0x18   :  { %102 = dma.hbm_to_vmem [thread:$0]  %s95_s27, 1024, %s97_s1, [#allocation15], %s3801_s22, %s3801_s22, %s3802_s2  }
  0x19   :  { %s121_s19 = sshll.u32 %s3805_s30, 4  ;;  %s140_s6 = sshll.u32 %s7174_s10, 4  ;;  %s122_s19 = int_to_ptr.vmem [resolvable:$true] %s121_s19  ;;  %s141_s6 = int_to_ptr.hbm [resolvable:$true] %s140_s6 }
  0x1a   :  { %124 = dma.hbm_to_vmem [thread:$0]  %s120_s4, 16, %s122_s19, [#allocation18]  }
  0x1b   :  { %s7551_s8 = sld [smem:[#allocation109_spill]]  ;;  %s3806_s26 = smov [#allocation20]  }
  0x1c   :  { %s142_s28 = sshll.u32 %s3806_s26, 4  ;;  %s3807_s27 = smov [#allocation5]   ;;  %s143_s28 = int_to_ptr.vmem [resolvable:$true] %s142_s28 }
  0x1d   :  { %148 = dma.hbm_to_vmem [thread:$0]  %s141_s6, 1024, %s143_s28, [#allocation21], %s3801_s22, %s3801_s22, %s3802_s2  }
  0x1e   :  { %s37_s29 = sshll.u32 %s3807_s27, 4  ;;  %s3808_s0 = smov 128   ;;  %s38_s29 = int_to_ptr.vmem [resolvable:$true] %s37_s29 }
  0x1f   :  { %s3809_s10 = smov 8   ;;  %s62_s30 = sshll.u32 %s7167_s3, 4  ;;  %s63_s30 = int_to_ptr.hbm [resolvable:$true] %s62_s30 }
  0x20   :  { %s3810_s19 = smov [#allocation10]   ;;  %s84_s24 = sshll.u32 %s7169_s5, 4  ;;  %s85_s24 = int_to_ptr.hbm [resolvable:$true] %s84_s24 }
  0x21   :  { %s35_s25 = sshll.u32 %s7551_s8, 4  ;;  %s64_s20 = sshll.u32 %s3810_s19, 4  ;;  %s36_s25 = int_to_ptr.hbm [resolvable:$true] %s35_s25  ;;  %s65_s20 = int_to_ptr.vmem [resolvable:$true] %s64_s20 }
  0x22   :  { %43 = dma.hbm_to_vmem [thread:$0]  %s36_s25, 3072, %s38_s29, [#allocation6], %s3808_s0, %s3808_s0, %s3809_s10  }
  0x23   :  { %67 = dma.hbm_to_vmem [thread:$0]  %s63_s30, 16, %s65_s20, [#allocation9]  }
  0x24   :  { %s3811_s22 = smov [#allocation13]   ;;  %s108_s25 = sshll.u32 %s7171_s7, 4  ;;  %s109_s25 = int_to_ptr.hbm [resolvable:$true] %s108_s25 }
  0x25   :  { %s86_s2 = sshll.u32 %s3811_s22, 4  ;;  %s130_s28 = sshll.u32 %s7173_s9, 4  ;;  %s87_s2 = int_to_ptr.vmem [resolvable:$true] %s86_s2  ;;  %s131_s28 = int_to_ptr.hbm [resolvable:$true] %s130_s28 }
  0x26   :  { %89 = dma.hbm_to_vmem [thread:$0]  %s85_s24, 16, %s87_s2, [#allocation12]  }
  0x27   :  { %s3812_s27 = smov [#allocation16]   ;;  %s3813_s5 = smov [#allocation19]  }
  0x28   :  { %s110_s29 = sshll.u32 %s3812_s27, 4  ;;  %s132_s0 = sshll.u32 %s3813_s5, 4  ;;  %s111_s29 = int_to_ptr.vmem [resolvable:$true] %s110_s29  ;;  %s133_s0 = int_to_ptr.vmem [resolvable:$true] %s132_s0 }
  0x29   :  { %113 = dma.hbm_to_vmem [thread:$0]  %s109_s25, 16, %s111_s29, [#allocation15]  }
  0x2a   :  { %s159_s4 = sshll.u32 %s7178_s14, 4  ;;  %s3814_s7 = smov [#allocation22]   ;;  %s160_s4 = int_to_ptr.hbm [resolvable:$true] %s159_s4 }
  0x2b   :  { %135 = dma.hbm_to_vmem [thread:$0]  %s131_s28, 16, %s133_s0, [#allocation18]  }
  0x2c   :  { %s161_s30 = sshll.u32 %s3814_s7, 4  ;;  %s3815_s19 = smov 192   ;;  %s162_s30 = int_to_ptr.vmem [resolvable:$true] %s161_s30 }
  0x2d   :  { %s3816_s20 = smov 12  }
  0x2e   :  { %167 = dma.hbm_to_vmem [thread:$0]  %s160_s4, 3072, %s162_s30, [#allocation21], %s3815_s19, %s3815_s19, %s3816_s20  }
  0x2f   :  { %3786 = dma.done.wait [#allocation6], 3072  }
  0x30   :  { %3787 = vsyncadd [#allocation6], 4294964224 }
  0x31   :  { %3788 = dma.done.wait [#allocation9], 1040  }
  0x32   :  { %3789 = vsyncadd [#allocation9], 4294966256 }
  0x33   :  { %3790 = dma.done.wait [#allocation12], 32  }
  0x34   :  { %3791 = vsyncadd [#allocation12], 4294967264 }
  0x35   :  { %3792 = dma.done.wait [#allocation15], 1040  }
  0x36   :  { %3793 = vsyncadd [#allocation15], 4294966256 }
  0x37   :  { %3794 = dma.done.wait [#allocation18], 32  }
  0x38   :  { %3795 = vsyncadd [#allocation18], 4294967264 }
  0x39   :  { %3796 = dma.done.wait [#allocation21], 4096  }
  0x3a   :  { %3797 = vsyncadd [#allocation21], 4294963200  ;;  %v3396_v0 = vld [vmem:[#allocation8 + $0x38] sm:$0xff]  ;;  %v3395_v1 = vld [vmem:[#allocation8 + $0x30] sm:$0xff]  ;;  %s7552_s23 = sld [smem:[#allocation108_spill]]  ;;  %s3179_s7 = sshll.u32 %s7182_s18, 4  ;;  %s3180_s7 = int_to_ptr.hbm [resolvable:$true] %s3179_s7 }
  0x3b   :  { %392 = vmatpush.bf16.msra.mxu0 %v3396_v0  ;;  %3437 = vmatpush.bf16.msra.mxu2 %v3396_v0  ;;  %v3394_v2 = vld [vmem:[#allocation8 + $0x28] sm:$0xff]  ;;  %v3393_v3 = vld [vmem:[#allocation8 + $0x20] sm:$0xff]  ;;  %v3392_v4 = vld [vmem:[#allocation8 + $0x18] sm:$0xff]  ;;  %s3818_s30 = smov 384   ;;  %s3819_s19 = smov 24  }
  0x3c   :  { %v3391_v5 = vld [vmem:[#allocation8 + $0x10] sm:$0xff]  ;;  %v3390_v6 = vld [vmem:[#allocation8 + $0x8] sm:$0xff]  ;;  %v3389_v7 = vld [vmem:[#allocation8] sm:$0xff] }
  0x3d   :  { %v288_v8 = vld [vmem:[#allocation5] sm:$0xff]  ;;  %v289_v9 = vld [vmem:[#allocation5 + $0x8] sm:$0xff]  ;;  %v290_v14 = vld [vmem:[#allocation5 + $0x10] sm:$0xff] }
  0x3e   :  { %v300_v10 = vld [vmem:[#allocation5 + $0x60] sm:$0xff]  ;;  %v301_v11 = vld [vmem:[#allocation5 + $0x68] sm:$0xff]  ;;  %v312_v12 = vpack.c.bf16 %v289_v9, %v288_v8  ;;  %v291_v15 = vld [vmem:[#allocation5 + $0x18] sm:$0xff] }
  0x3f   :  { %393 = vmatpush.bf16.msra.mxu0 %v3395_v1  ;;  %3438 = vmatpush.bf16.msra.mxu2 %v3395_v1  ;;  %v318_v13 = vpack.c.bf16 %v301_v11, %v300_v10  ;;  %v302_v16 = vld [vmem:[#allocation5 + $0x70] sm:$0xff]  ;;  %v303_v17 = vld [vmem:[#allocation5 + $0x78] sm:$0xff]  ;;  %v313_v18 = vpack.c.bf16 %v291_v15, %v290_v14  ;;  %v292_v20 = vld [vmem:[#allocation5 + $0x20] sm:$0xff] }
  0x40   :  { %v319_v19 = vpack.c.bf16 %v303_v17, %v302_v16  ;;  %v293_v21 = vld [vmem:[#allocation5 + $0x28] sm:$0xff]  ;;  %v304_v22 = vld [vmem:[#allocation5 + $0x80] sm:$0xff]  ;;  %v294_v26 = vld [vmem:[#allocation5 + $0x30] sm:$0xff]  ;;  %p219_p0 = scmp.gt.s32.totalorder %s7552_s23, 1  ;;  %v3997_v16 = vstv %s7552_s23 }
  0x41   :  { %v305_v23 = vld [vmem:[#allocation5 + $0x88] sm:$0xff]  ;;  %v314_v24 = vpack.c.bf16 %v293_v21, %v292_v20  ;;  %v295_v27 = vld [vmem:[#allocation5 + $0x38] sm:$0xff]  ;;  %v306_v28 = vld [vmem:[#allocation5 + $0x90] sm:$0xff] }
  0x42   :  { %v320_v25 = vpack.c.bf16 %v305_v23, %v304_v22  ;;  %v307_v29 = vld [vmem:[#allocation5 + $0x98] sm:$0xff]  ;;  %v315_v30 = vpack.c.bf16 %v295_v27, %v294_v26  ;;  %v296_v32 = vld [vmem:[#allocation5 + $0x40] sm:$0xff]  ;;  %v297_v33 = vld [vmem:[#allocation5 + $0x48] sm:$0xff]  ;;  %s220_s22 = scalar_select %p219_p0, %s7552_s23, 1 }
  0x43   :  { %394 = vmatpush.bf16.msra.mxu0 %v3394_v2  ;;  %3439 = vmatpush.bf16.msra.mxu2 %v3394_v2  ;;  %v321_v31 = vpack.c.bf16 %v307_v29, %v306_v28  ;;  %v308_v34 = vld [vmem:[#allocation5 + $0xa0] sm:$0xff]  ;;  %v309_v35 = vld [vmem:[#allocation5 + $0xa8] sm:$0xff]  ;;  %v316_v36 = vpack.c.bf16 %v297_v33, %v296_v32  ;;  %v298_v38 = vld [vmem:[#allocation5 + $0x50] sm:$0xff] }
  0x44   :  { %v322_v37 = vpack.c.bf16 %v309_v35, %v308_v34  ;;  %v299_v39 = vld [vmem:[#allocation5 + $0x58] sm:$0xff]  ;;  %v310_v40 = vld [vmem:[#allocation5 + $0xb0] sm:$0xff]  ;;  %s221_s2 = scvt.s32.f32 %s220_s22 }
  0x45   :  { %v311_v41 = vld [vmem:[#allocation5 + $0xb8] sm:$0xff]  ;;  %v317_v42 = vpack.c.bf16 %v299_v39, %v298_v38  ;;  %v7561_v38 = vmov 0 }
  0x46   :  { %v323_v43 = vpack.c.bf16 %v311_v41, %v310_v40  ;;  %v222_v52 = vstv %s221_s2 }
  0x47   :  { %395 = vmatpush.bf16.msra.mxu0 %v3393_v3  ;;  %3440 = vmatpush.bf16.msra.mxu2 %v3393_v3  ;;  %3484 = vrcp.f32 %v222_v52  ;;  %v234_v60 = vand.u32 2147483648, %v222_v52  ;;  %vm228_vm0 = vweird.f32 %v222_v52  ;;  %v232_v63 = vand.u32 2147483647, %v222_v52 }
  0x49   :  { %v235_v0 = vor.u32 1.1754944e-38, %v234_v60  ;;  %vm233_vm3 = vcmp.eq.f32.partialorder %v232_v63, 8.507059e+37  ;;  %v7567_v63 = vmov 0 }
  0x4b   :  { %396 = vmatpush.bf16.msra.mxu0 %v3392_v4  ;;  %3441 = vmatpush.bf16.msra.mxu2 %v3392_v4 }
  0x4d   :  { %v3485_v54 = vpop.eup %3484 }
  0x4e   :  { %v224_v56 = vmul.f32 %v3485_v54, %v222_v52  ;;  %vm229_vm1 = vweird.f32 %v3485_v54 }
  0x4f   :  { %397 = vmatpush.bf16.msra.mxu0 %v3391_v5  ;;  %3442 = vmatpush.bf16.msra.mxu2 %v3391_v5  ;;  %vm230_vm2 = vmor %vm228_vm0, %vm229_vm1 }
  0x50   :  { %v225_v58 = vsub.f32 1.0, %v224_v56  ;;  %v7565_v56 = vmov 0 }
  0x52   :  { %v226_v59 = vmul.f32 %v3485_v54, %v225_v58 }
  0x53   :  { %398 = vmatpush.bf16.msra.mxu0 %v3390_v6  ;;  %3443 = vmatpush.bf16.msra.mxu2 %v3390_v6  ;;  %v238_v6 = vlaneseq }
  0x54   :  { %v227_v61 = vadd.f32 %v3485_v54, %v226_v59 }
  0x55   :  { %v3979_v8 = vshrl.u32 %v238_v6, 7 }
  0x56   :  { %v231_v1 = vsel %vm230_vm2, %v3485_v54, %v227_v61 }
  0x57   :  { %399 = vmatpush.bf16.msra.mxu0 %v3389_v7  ;;  %3444 = vmatpush.bf16.msra.mxu2 %v3389_v7  ;;  %v236_v3 = vsel %vm233_vm3, %v235_v0, %v231_v1  ;;  %v3977_v7 = vld [vmem:[#allocation10] ss:$0 sm:$0xff]  ;;  %v240_v10 = vadd.s32 8, %v3979_v8  ;;  %v241_v14 = vadd.s32 16, %v3979_v8  ;;  %v242_v20 = vadd.s32 24, %v3979_v8 }
  0x58   :  { %3453 = vpush %v236_v3  ;;  %vm4016_vm5 = vcmp.lt.s32.totalorder %v3979_v8, %v3997_v16  ;;  %v243_v26 = vadd.s32 32, %v3979_v8  ;;  %v245_v39 = vadd.s32 48, %v3979_v8  ;;  %v248_v0 = vadd.s32 72, %v3979_v8 }
  0x59   :  { %vm4004_vm4 = vcmp.lt.s32.totalorder %v240_v10, %v3997_v16  ;;  %vm4021_vm6 = vcmp.lt.s32.totalorder %v241_v14, %v3997_v16  ;;  %vm4035_vm7 = vcmp.lt.s32.totalorder %v242_v20, %v3997_v16  ;;  %v7569_v10 = vmov 0 }
  0x5a   :  { %400 = vmatmul.bf16.vlgmr.msra.gmra.mxu0 %v312_v12  ;;  %430 = vmatmul.bf16.vlgmr.msra.gmra.mxu2 %v318_v13  ;;  %vm4053_vm8 = vcmp.lt.s32.totalorder %v243_v26, %v3997_v16  ;;  %vm4083_vm10 = vcmp.lt.s32.totalorder %v245_v39, %v3997_v16  ;;  %vm4122_vm13 = vcmp.lt.s32.totalorder %v248_v0, %v3997_v16 }
  0x5b   :  { %v7562_v38 = vsel %vm4053_vm8, 4294967295, %v7561_v38  ;;  %v7566_v56 = vsel %vm4083_vm10, 4294967295, %v7565_v56 }
  0x6a   :  { %405 = vmatmul.bf16.gmra.mxu0 %v313_v18  ;;  %435 = vmatmul.bf16.gmra.mxu2 %v319_v19  ;;  %v7553_v19 = vmov 0 }
  0x6b   :  { %v7554_v19 = vsel %vm4004_vm4, 4294967295, %v7553_v19 }
  0x7a   :  { %410 = vmatmul.bf16.gmra.mxu0 %v314_v24  ;;  %440 = vmatmul.bf16.gmra.mxu2 %v320_v25  ;;  %v7555_v24 = vmov 0  ;;  %v7557_v25 = vmov 0 }
  0x7b   :  { %v7556_v24 = vsel %vm4016_vm5, 4294967295, %v7555_v24  ;;  %v7558_v25 = vsel %vm4021_vm6, 4294967295, %v7557_v25 }
  0x89   :  { %s3454_s25 = spop %3453 }
  0x8a   :  { %415 = vmatmul.bf16.gmra.mxu0 %v315_v30  ;;  %445 = vmatmul.bf16.gmra.mxu2 %v321_v31  ;;  %v7559_v30 = vmov 0  ;;  %v244_v31 = vadd.s32 40, %v3979_v8 }
  0x8b   :  { %v7560_v30 = vsel %vm4035_vm7, 4294967295, %v7559_v30 }
  0x8c   :  { %vm4067_vm9 = vcmp.lt.s32.totalorder %v244_v31, %v3997_v16 }
  0x9a   :  { %420 = vmatmul.bf16.gmra.mxu0 %v316_v36  ;;  %450 = vmatmul.bf16.gmra.mxu2 %v322_v37 }
  0xaa   :  { %425 = vmatmul.bf16.gmra.mxu0 %v317_v42  ;;  %455 = vmatmul.bf16.gmra.mxu2 %v323_v43 }
  0xd7   :  { %v401_v44 = vpop.f32.mrf.mxu0 }
  0xd8   :  { %v3986_v12 = vadd.f32 %v3977_v7, %v401_v44  ;;  %v7563_v44 = vmov 0 }
  0xd9   :  { %v7564_v44 = vsel %vm4067_vm9, 4294967295, %v7563_v44 }
  0xda   :  { %v461_v21 = vmax.f32 %v3986_v12, 0.0 }
  0xdc   :  { %v533_v33 = vsel %vm4016_vm5, %v461_v21, 0.0 }
  0xdd   :  { %v3957_v45 = vpop.f32.mrf.mxu2 }
  0xdf   :  { %v403_v46 = vpop.f32.mrf.mxu0 }
  0xe0   :  { %v3982_v9 = vadd.f32 %v3977_v7, %v403_v46  ;;  %v246_v46 = vadd.s32 56, %v3979_v8 }
  0xe2   :  { %v7213_v17 = vmax.f32 %v3982_v9, 0.0  ;;  %vm4097_vm11 = vcmp.lt.s32.totalorder %v246_v46, %v3997_v16  ;;  %v251_v46 = vadd.s32 96, %v3979_v8 }
  0xe3   :  { %v7568_v63 = vsel %vm4097_vm11, 4294967295, %v7567_v63 }
  0xe4   :  { %v534_v27 = vsel %vm4004_vm4, %v7213_v17, 0.0  ;;  %vm4170_vm0 = vcmp.lt.s32.totalorder %v251_v46, %v3997_v16 }
  0xe5   :  { %v3959_v47 = vpop.f32.mrf.mxu2  ;;  %v557_v37 = vadd.f32 %v534_v27, %v533_v33  ;;  %v7571_v27 = vmov 0 }
  0xe6   :  { %v7572_v27 = vsel %vm4122_vm13, 4294967295, %v7571_v27 }
  0xe7   :  { %v406_v48 = vpop.f32.mrf.mxu0  ;;  %7573 = vst [vmem:[#allocation31_spill] sm:$0xff] %v7572_v27 }
  0xe8   :  { %v3989_v13 = vadd.f32 %v3977_v7, %v406_v48 }
  0xea   :  { %v7209_v22 = vmax.f32 %v3989_v13, 0.0 }
  0xec   :  { %v535_v34 = vsel %vm4021_vm6, %v7209_v22, 0.0 }
  0xed   :  { %v3964_v49 = vpop.f32.mrf.mxu2  ;;  %v558_v43 = vadd.f32 %v557_v37, %v535_v34  ;;  %v7574_v34 = vmov 0  ;;  %v250_v37 = vadd.s32 88, %v3979_v8 }
  0xef   :  { %v408_v50 = vpop.f32.mrf.mxu0  ;;  %vm4159_vm15 = vcmp.lt.s32.totalorder %v250_v37, %v3997_v16  ;;  %v7583_v37 = vmov 0 }
  0xf0   :  { %v4001_v18 = vadd.f32 %v3977_v7, %v408_v50 }
  0xf2   :  { %v7204_v28 = vmax.f32 %v4001_v18, 0.0 }
  0xf4   :  { %v536_v40 = vsel %vm4035_vm7, %v7204_v28, 0.0 }
  0xf5   :  { %v3969_v51 = vpop.f32.mrf.mxu2  ;;  %v559_v54 = vadd.f32 %v558_v43, %v536_v40  ;;  %v4139_v40 = vadd.f32 %v3977_v7, %v3957_v45 }
  0xf7   :  { %v411_v53 = vpop.f32.mrf.mxu0 }
  0xf8   :  { %v4012_v23 = vadd.f32 %v3977_v7, %v411_v53 }
  0xfa   :  { %v7203_v35 = vmax.f32 %v4012_v23, 0.0 }
  0xfc   :  { %v537_v50 = vsel %vm4053_vm8, %v7203_v35, 0.0 }
  0xfd   :  { %v3971_v55 = vpop.f32.mrf.mxu2  ;;  %v560_v61 = vadd.f32 %v559_v54, %v537_v50 }
  0xff   :  { %v413_v57 = vpop.f32.mrf.mxu0 }
 0x100   :  { %v4032_v29 = vadd.f32 %v3977_v7, %v413_v57  ;;  %v247_v57 = vadd.s32 64, %v3979_v8 }
 0x102   :  { %v7200_v41 = vmax.f32 %v4032_v29, 0.0  ;;  %vm4111_vm12 = vcmp.lt.s32.totalorder %v247_v57, %v3997_v16  ;;  %v4148_v57 = vadd.f32 %v3977_v7, %v3959_v47  ;;  %v4166_v47 = vadd.f32 %v3977_v7, %v3964_v49 }
 0x103   :  { %v7570_v10 = vsel %vm4111_vm12, 4294967295, %v7569_v10 }
 0x104   :  { %v538_v58 = vsel %vm4067_vm9, %v7200_v41, 0.0 }
 0x105   :  { %v3973_v62 = vpop.f32.mrf.mxu2  ;;  %v561_v6 = vadd.f32 %v560_v61, %v538_v58  ;;  %v252_v61 = vadd.s32 104, %v3979_v8 }
 0x107   :  { %v416_v2 = vpop.f32.mrf.mxu0  ;;  %vm4185_vm1 = vcmp.lt.s32.totalorder %v252_v61, %v3997_v16  ;;  %v255_v61 = vadd.s32 128, %v3979_v8 }
 0x108   :  { %v4050_v36 = vadd.f32 %v3977_v7, %v416_v2  ;;  %v7584_v37 = vsel %vm4185_vm1, 4294967295, %v7583_v37 }
 0x109   :  { %7585 = vst [vmem:[#allocation35_spill] sm:$0xff] %v7584_v37 }
 0x10a   :  { %v7196_v52 = vmax.f32 %v4050_v36, 0.0 }
 0x10c   :  { %v539_v2 = vsel %vm4083_vm10, %v7196_v52, 0.0 }
 0x10d   :  { %v3975_v5 = vpop.f32.mrf.mxu2  ;;  %v562_v26 = vadd.f32 %v561_v6, %v539_v2  ;;  %v7221_v2 = vmax.f32 %v4139_v40, 0.0 }
 0x10f   :  { %v418_v4 = vpop.f32.mrf.mxu0 }
 0x110   :  { %v4064_v42 = vadd.f32 %v3977_v7, %v418_v4 }
 0x112   :  { %v7194_v59 = vmax.f32 %v4064_v42, 0.0 }
 0x114   :  { %v540_v14 = vsel %vm4097_vm11, %v7194_v59, 0.0  ;;  %v258_v59 = vadd.s32 152, %v3979_v8 }
 0x115   :  { %v3992_v15 = vpop.f32.mrf.mxu2  ;;  %v563_v33 = vadd.f32 %v562_v26, %v540_v14  ;;  %v253_v14 = vadd.s32 112, %v3979_v8 }
 0x117   :  { %v421_v11 = vpop.f32.mrf.mxu0  ;;  %vm4200_vm2 = vcmp.lt.s32.totalorder %v253_v14, %v3997_v16  ;;  %v7589_v14 = vmov 0 }
 0x118   :  { %v4080_v53 = vadd.f32 %v3977_v7, %v421_v11  ;;  %v249_v11 = vadd.s32 80, %v3979_v8 }
 0x11a   :  { %v7190_v3 = vmax.f32 %v4080_v53, 0.0  ;;  %vm4132_vm14 = vcmp.lt.s32.totalorder %v249_v11, %v3997_v16  ;;  %v7580_v11 = vmov 0 }
 0x11b   :  { %v7575_v34 = vsel %vm4132_vm14, 4294967295, %v7574_v34  ;;  %v7581_v11 = vsel %vm4170_vm0, 4294967295, %v7580_v11 }
 0x11c   :  { %v541_v31 = vsel %vm4111_vm12, %v7190_v3, 0.0  ;;  %7576 = vst [vmem:[#allocation32_spill] sm:$0xff] %v7575_v34 }
 0x11d   :  { %v4072_v48 = vpop.f32.mrf.mxu2  ;;  %v564_v50 = vadd.f32 %v563_v33, %v541_v31  ;;  %7582 = vst [vmem:[#allocation34_spill] sm:$0xff] %v7581_v11  ;;  %v7186_v31 = vmax.f32 %v4148_v57, 0.0  ;;  %v4178_v33 = vadd.f32 %v3977_v7, %v3969_v51  ;;  %v7191_v51 = vmax.f32 %v4166_v47, 0.0 }
 0x11f   :  { %v423_v32 = vpop.f32.mrf.mxu0 }
 0x120   :  { %v4094_v60 = vadd.f32 %v3977_v7, %v423_v32 }
 0x122   :  { %v7187_v20 = vmax.f32 %v4094_v60, 0.0 }
 0x124   :  { %v542_v43 = vsel %vm4122_vm13, %v7187_v20, 0.0  ;;  %v4227_v20 = vadd.f32 %v3977_v7, %v3975_v5  ;;  %v4242_v5 = vadd.f32 %v3977_v7, %v3992_v15  ;;  %v4257_v15 = vadd.f32 %v3977_v7, %v4072_v48 }
 0x125   :  { %v453_v39 = vpop.f32.mrf.mxu2  ;;  %v565_v0 = vadd.f32 %v564_v50, %v542_v43  ;;  %v254_v43 = vadd.s32 120, %v3979_v8  ;;  %v545_v50 = vsel %vm4170_vm0, %v7221_v2, 0.0  ;;  %v7601_v48 = vmov 0 }
 0x126   :  { %v7208_v52 = vmax.f32 %v4227_v20, 0.0  ;;  %v4271_v41 = vadd.f32 %v3977_v7, %v453_v39  ;;  %v7219_v39 = vmax.f32 %v4257_v15, 0.0 }
 0x127   :  { %v426_v1 = vpop.f32.mrf.mxu0  ;;  %vm4215_vm3 = vcmp.lt.s32.totalorder %v254_v43, %v3997_v16  ;;  %v257_v43 = vadd.s32 144, %v3979_v8 }
 0x128   :  { %v4108_v4 = vadd.f32 %v3977_v7, %v426_v1  ;;  %v7577_v1 = vmov 0  ;;  %v7590_v14 = vsel %vm4215_vm3, 4294967295, %v7589_v14 }
 0x129   :  { %v7578_v1 = vsel %vm4159_vm15, 4294967295, %v7577_v1  ;;  %7591 = vst [vmem:[#allocation37_spill] sm:$0xff] %v7590_v14 }
 0x12a   :  { %v7185_v32 = vmax.f32 %v4108_v4, 0.0  ;;  %7579 = vst [vmem:[#allocation33_spill] sm:$0xff] %v7578_v1 }
 0x12c   :  { %v543_v58 = vsel %vm4132_vm14, %v7185_v32, 0.0  ;;  %v256_v32 = vadd.s32 136, %v3979_v8 }
 0x12d   :  { %v566_v26 = vadd.f32 %v565_v0, %v543_v58  ;;  %v7586_v58 = vmov 0 }
 0x12e   :  { %v7587_v58 = vsel %vm4200_vm2, 4294967295, %v7586_v58 }
 0x12f   :  { %v428_v54 = vpop.f32.mrf.mxu0  ;;  %7588 = vst [vmem:[#allocation36_spill] sm:$0xff] %v7587_v58 }
 0x130   :  { %v4155_v45 = vadd.f32 %v3977_v7, %v428_v54  ;;  %v4197_v54 = vadd.f32 %v3977_v7, %v3971_v55  ;;  %v4212_v55 = vadd.f32 %v3977_v7, %v3973_v62  ;;  %v7592_v62 = vmov 0 }
 0x132   :  { %v7184_v6 = vmax.f32 %v4155_v45, 0.0 }
 0x134   :  { %v544_v49 = vsel %vm4159_vm15, %v7184_v6, 0.0  ;;  %v7195_v6 = vmax.f32 %v4178_v33, 0.0 }
 0x135   :  { %v567_v46 = vadd.f32 %v566_v26, %v544_v49  ;;  %v456_v26 = vpop.f32.mrf.mxu2  ;;  %v546_v49 = vsel %vm4185_vm1, %v7186_v31, 0.0  ;;  %v7199_v31 = vmax.f32 %v4197_v54, 0.0  ;;  %vm4230_vm1 = vcmp.lt.s32.totalorder %v255_v61, %v3997_v16 }
 0x136   :  { %v7593_v62 = vsel %vm4230_vm1, 4294967295, %v7592_v62  ;;  %v7595_v61 = vmov 0 }
 0x137   :  { %v568_v0 = vadd.f32 %v567_v46, %v545_v50  ;;  %v547_v50 = vsel %vm4200_vm2, %v7191_v51, 0.0  ;;  %7594 = vst [vmem:[#allocation38_spill] sm:$0xff] %v7593_v62  ;;  %v7205_v51 = vmax.f32 %v4212_v55, 0.0  ;;  %vm4245_vm2 = vcmp.lt.s32.totalorder %v256_v32, %v3997_v16 }
 0x138   :  { %v7596_v61 = vsel %vm4245_vm2, 4294967295, %v7595_v61  ;;  %v7598_v32 = vmov 0 }
 0x139   :  { %v569_v46 = vadd.f32 %v568_v0, %v546_v49  ;;  %v3404_v0 = vld [vmem:[#allocation14 + $0x38] sm:$0xff]  ;;  %v548_v49 = vsel %vm4215_vm3, %v7195_v6, 0.0  ;;  %7597 = vst [vmem:[#allocation39_spill] sm:$0xff] %v7596_v61  ;;  %v549_v6 = vsel %vm4230_vm1, %v7199_v31, 0.0  ;;  %vm4260_vm3 = vcmp.lt.s32.totalorder %v257_v43, %v3997_v16 }
 0x13a   :  { %909 = vmatpush.bf16.msra.mxu1 %v3404_v0  ;;  %3445 = vmatpush.bf16.msra.mxu3 %v3404_v0  ;;  %v7599_v32 = vsel %vm4260_vm3, 4294967295, %v7598_v32  ;;  %v7212_v31 = vmax.f32 %v4242_v5, 0.0  ;;  %vm4274_vm1 = vcmp.lt.s32.totalorder %v258_v59, %v3997_v16  ;;  %v260_v43 = vadd.s32 168, %v3979_v8 }
 0x13b   :  { %v570_v3 = vadd.f32 %v569_v46, %v547_v50  ;;  %v3403_v50 = vld [vmem:[#allocation14 + $0x30] sm:$0xff]  ;;  %7600 = vst [vmem:[#allocation40_spill] sm:$0xff] %v7599_v32  ;;  %v7602_v48 = vsel %vm4274_vm1, 4294967295, %v7601_v48  ;;  %v7604_v59 = vmov 0 }
 0x13c   :  { %7603 = vst [vmem:[#allocation41_spill] sm:$0xff] %v7602_v48 }
 0x13d   :  { %v571_v46 = vadd.f32 %v570_v3, %v548_v49  ;;  %v259_v3 = vadd.s32 160, %v3979_v8  ;;  %v550_v49 = vsel %vm4245_vm2, %v7205_v51, 0.0  ;;  %v458_v28 = vpop.f32.mrf.mxu2  ;;  %v4285_v51 = vadd.f32 %v3977_v7, %v456_v26 }
 0x13e   :  { %910 = vmatpush.bf16.msra.mxu1 %v3403_v50  ;;  %3446 = vmatpush.bf16.msra.mxu3 %v3403_v50  ;;  %v552_v50 = vsel %vm4274_vm1, %v7212_v31, 0.0  ;;  %v4299_v22 = vadd.f32 %v3977_v7, %v458_v28  ;;  %v7607_v26 = vmov 0  ;;  %v7610_v28 = vmov 0 }
 0x13f   :  { %v572_v0 = vadd.f32 %v571_v46, %v549_v6  ;;  %v3402_v6 = vld [vmem:[#allocation14 + $0x28] sm:$0xff]  ;;  %v551_v46 = vsel %vm4260_vm3, %v7208_v52, 0.0  ;;  %vm4288_vm2 = vcmp.lt.s32.totalorder %v259_v3, %v3997_v16  ;;  %v7218_v52 = vmax.f32 %v4271_v41, 0.0 }
 0x140   :  { %v7605_v59 = vsel %vm4288_vm2, 4294967295, %v7604_v59  ;;  %vm4302_vm3 = vcmp.lt.s32.totalorder %v260_v43, %v3997_v16  ;;  %v553_v31 = vsel %vm4288_vm2, %v7219_v39, 0.0  ;;  %v7220_v17 = vmax.f32 %v4285_v51, 0.0 }
 0x141   :  { %v573_v35 = vadd.f32 %v572_v0, %v550_v49  ;;  %7606 = vst [vmem:[#allocation42_spill] sm:$0xff] %v7605_v59  ;;  %v261_v49 = vadd.s32 176, %v3979_v8  ;;  %v7608_v26 = vsel %vm4302_vm3, 4294967295, %v7607_v26  ;;  %v7222_v43 = vmax.f32 %v4299_v22, 0.0 }
 0x142   :  { %7609 = vst [vmem:[#allocation43_spill] sm:$0xff] %v7608_v26  ;;  %911 = vmatpush.bf16.msra.mxu1 %v3402_v6  ;;  %3447 = vmatpush.bf16.msra.mxu3 %v3402_v6 }
 0x143   :  { %v574_v0 = vadd.f32 %v573_v35, %v551_v46  ;;  %v262_v35 = vadd.s32 184, %v3979_v8  ;;  %v3401_v46 = vld [vmem:[#allocation14 + $0x20] sm:$0xff]  ;;  %vm4313_vm1 = vcmp.lt.s32.totalorder %v261_v49, %v3997_v16  ;;  %v554_v8 = vsel %vm4302_vm3, %v7218_v52, 0.0 }
 0x144   :  { %v7611_v28 = vsel %vm4313_vm1, 4294967295, %v7610_v28  ;;  %v555_v49 = vsel %vm4313_vm1, %v7220_v17, 0.0  ;;  %v4335_v17 = vstv %s3454_s25 }
 0x145   :  { %v575_v3 = vadd.f32 %v574_v0, %v552_v50  ;;  %7612 = vst [vmem:[#allocation44_spill] sm:$0xff] %v7611_v28  ;;  %vm4323_vm0 = vcmp.lt.s32.totalorder %v262_v35, %v3997_v16  ;;  %v7613_v0 = vmov 0  ;;  %v3399_v16 = vld [vmem:[#allocation14 + $0x10] sm:$0xff] }
 0x146   :  { %v7614_v0 = vsel %vm4323_vm0, 4294967295, %v7613_v0  ;;  %912 = vmatpush.bf16.msra.mxu1 %v3401_v46  ;;  %3448 = vmatpush.bf16.msra.mxu3 %v3401_v46  ;;  %v3398_v46 = vld [vmem:[#allocation14 + $0x8] sm:$0xff]  ;;  %7616 = vst [vmem:[#allocation46_spill] sm:$0xff] %v4335_v17 }
 0x147   :  { %v576_v7 = vadd.f32 %v575_v3, %v553_v31  ;;  %7615 = vst [vmem:[#allocation45_spill] sm:$0xff] %v7614_v0  ;;  %v3400_v31 = vld [vmem:[#allocation14 + $0x18] sm:$0xff]  ;;  %v556_v3 = vsel %vm4323_vm0, %v7222_v43, 0.0 }
 0x149   :  { %v577_v6 = vadd.f32 %v576_v7, %v554_v8 }
 0x14a   :  { %913 = vmatpush.bf16.msra.mxu1 %v3400_v31  ;;  %3449 = vmatpush.bf16.msra.mxu3 %v3400_v31 }
 0x14b   :  { %v578_v50 = vadd.f32 %v577_v6, %v555_v49  ;;  %v3397_v6 = vld [vmem:[#allocation14] sm:$0xff] }
 0x14d   :  { %v579_v7 = vadd.f32 %v578_v50, %v556_v3 }
 0x14e   :  { %914 = vmatpush.bf16.msra.mxu1 %v3399_v16  ;;  %3450 = vmatpush.bf16.msra.mxu3 %v3399_v16 }
 0x14f   :  { %v580_v35 = vrot.slane %v579_v7, 4 }
 0x151   :  { %v581_v8 = vadd.f32 %v580_v35, %v579_v7  ;;  %v7618_v7 = vmax.f32 %v3982_v9, 0.0 }
 0x152   :  { %915 = vmatpush.bf16.msra.mxu1 %v3398_v46  ;;  %3451 = vmatpush.bf16.msra.mxu3 %v3398_v46 }
 0x153   :  { %v582_v52 = vrot.slane %v581_v8, 2 }
 0x155   :  { %v583_v39 = vadd.f32 %v582_v52, %v581_v8  ;;  %v7617_v52 = vmax.f32 %v4139_v40, 0.0  ;;  %v7620_v40 = vmax.f32 %v4001_v18, 0.0 }
 0x156   :  { %916 = vmatpush.bf16.msra.mxu1 %v3397_v6  ;;  %3452 = vmatpush.bf16.msra.mxu3 %v3397_v6 }
 0x157   :  { %v584_v49 = vrot.slane %v583_v39, 1 }
 0x159   :  { %v585_v2 = vadd.f32 %v584_v49, %v583_v39  ;;  %v7619_v39 = vmax.f32 %v3989_v13, 0.0  ;;  %v7621_v13 = vmax.f32 %v4012_v23, 0.0  ;;  %v7622_v49 = vmax.f32 %v4032_v29, 0.0 }
 0x15a   :  { %v7623_v23 = vmax.f32 %v4050_v36, 0.0  ;;  %v7624_v29 = vmax.f32 %v4064_v42, 0.0  ;;  %v7625_v36 = vmax.f32 %v4080_v53, 0.0  ;;  %v7626_v42 = vmax.f32 %v4094_v60, 0.0 }
 0x15b   :  { %v4338_v31 = vmul.f32 %v4335_v17, %v585_v2  ;;  %v7627_v53 = vmax.f32 %v4108_v4, 0.0  ;;  %v7628_v60 = vmax.f32 %v4155_v45, 0.0 }
 0x15d   :  { %v4343_v50 = vsub.f32 %v461_v21, %v4338_v31  ;;  %v4348_v3 = vsub.f32 %v7617_v52, %v4338_v31  ;;  %v4353_v16 = vsub.f32 %v7618_v7, %v4338_v31  ;;  %v4358_v2 = vsub.f32 %v7619_v39, %v4338_v31 }
 0x15e   :  { %v4369_v35 = vsub.f32 %v7620_v40, %v4338_v31  ;;  %v4374_v46 = vsub.f32 %v7621_v13, %v4338_v31  ;;  %v4382_v52 = vsub.f32 %v7622_v49, %v4338_v31  ;;  %v4398_v49 = vsub.f32 %v7624_v29, %v4338_v31 }
 0x15f   :  { %v612_v12 = vsel %vm4016_vm5, %v4343_v50, 0.0  ;;  %v613_v21 = vsel %vm4004_vm4, %v4353_v16, 0.0  ;;  %v614_v6 = vsel %vm4021_vm6, %v4358_v2, 0.0  ;;  %v4414_v29 = vsub.f32 %v7626_v42, %v4338_v31 }
 0x160   :  { %v636_v9 = vmul.f32 %v612_v12, %v612_v12  ;;  %v637_v8 = vmul.f32 %v613_v21, %v613_v21  ;;  %v615_v18 = vsel %vm4035_vm7, %v4369_v35, 0.0  ;;  %v638_v7 = vmul.f32 %v614_v6, %v614_v6 }
 0x161   :  { %v4390_v12 = vsub.f32 %v7623_v23, %v4338_v31  ;;  %v616_v21 = vsel %vm4053_vm8, %v4374_v46, 0.0  ;;  %v639_v40 = vmul.f32 %v615_v18, %v615_v18  ;;  %v4406_v23 = vsub.f32 %v7625_v36, %v4338_v31 }
 0x162   :  { %v660_v39 = vadd.f32 %v637_v8, %v636_v9  ;;  %v617_v9 = vsel %vm4067_vm9, %v4382_v52, 0.0  ;;  %v640_v8 = vmul.f32 %v616_v21, %v616_v21  ;;  %v619_v21 = vsel %vm4097_vm11, %v4398_v49, 0.0 }
 0x163   :  { %v618_v18 = vsel %vm4083_vm10, %v4390_v12, 0.0  ;;  %v4422_v36 = vsub.f32 %v7627_v53, %v4338_v31  ;;  %v4430_v42 = vsub.f32 %v7628_v60, %v4338_v31 }
 0x164   :  { %v661_v13 = vadd.f32 %v660_v39, %v638_v7  ;;  %v641_v7 = vmul.f32 %v617_v9, %v617_v9  ;;  %v620_v9 = vsel %vm4111_vm12, %v4406_v23, 0.0 }
 0x165   :  { %v622_v4 = vsel %vm4132_vm14, %v4422_v36, 0.0  ;;  %v623_v45 = vsel %vm4159_vm15, %v4430_v42, 0.0  ;;  %vm7631_vm14 = vnez %v7581_v11  ;;  %vm7633_vm15 = vnez %v7584_v37 }
 0x166   :  { %v662_v6 = vadd.f32 %v661_v13, %v639_v40  ;;  %v642_v40 = vmul.f32 %v618_v18, %v618_v18  ;;  %v621_v18 = vsel %vm4122_vm13, %v4414_v29, 0.0 }
 0x167   :  { %v645_v53 = vmul.f32 %v621_v18, %v621_v18  ;;  %v647_v18 = vmul.f32 %v623_v45, %v623_v45 }
 0x168   :  { %v663_v39 = vadd.f32 %v662_v6, %v640_v8  ;;  %v643_v8 = vmul.f32 %v619_v21, %v619_v21  ;;  %v7629_v21 = vmax.f32 %v4148_v57, 0.0  ;;  %v7632_v57 = vmax.f32 %v4178_v33, 0.0 }
 0x169   :  { %v7636_v33 = vmax.f32 %v4212_v55, 0.0  ;;  %v7640_v55 = vmax.f32 %v4242_v5, 0.0  ;;  %v7644_v5 = vmax.f32 %v4271_v41, 0.0  ;;  %v7647_v41 = vmax.f32 %v4299_v22, 0.0 }
 0x16a   :  { %v664_v13 = vadd.f32 %v663_v39, %v641_v7  ;;  %v644_v7 = vmul.f32 %v620_v9, %v620_v9  ;;  %v7630_v9 = vmax.f32 %v4166_v47, 0.0  ;;  %v7634_v47 = vmax.f32 %v4197_v54, 0.0 }
 0x16b   :  { %v7638_v54 = vmax.f32 %v4227_v20, 0.0  ;;  %v7642_v20 = vmax.f32 %v4257_v15, 0.0  ;;  %v7646_v15 = vmax.f32 %v4285_v51, 0.0 }
 0x16c   :  { %v665_v6 = vadd.f32 %v664_v13, %v642_v40  ;;  %v4441_v40 = vsub.f32 %v7629_v21, %v4338_v31  ;;  %v646_v13 = vmul.f32 %v622_v4, %v622_v4  ;;  %v4465_v21 = vsub.f32 %v7634_v47, %v4338_v31 }
 0x16d   :  { %v4489_v47 = vsub.f32 %v7640_v55, %v4338_v31  ;;  %v4513_v55 = vsub.f32 %v7646_v15, %v4338_v31 }
 0x16e   :  { %v666_v39 = vadd.f32 %v665_v6, %v643_v8  ;;  %v4449_v8 = vsub.f32 %v7630_v9, %v4338_v31  ;;  %v624_v6 = vsel %vm7631_vm14, %v4348_v3, 0.0  ;;  %vm7635_vm14 = vnez %v7587_v58 }
 0x16f   :  { %v648_v4 = vmul.f32 %v624_v6, %v624_v6  ;;  %v4473_v9 = vsub.f32 %v7636_v33, %v4338_v31  ;;  %v4497_v33 = vsub.f32 %v7642_v20, %v4338_v31  ;;  %v4521_v20 = vsub.f32 %v7647_v41, %v4338_v31 }
 0x170   :  { %v667_v43 = vadd.f32 %v666_v39, %v644_v7  ;;  %v4457_v39 = vsub.f32 %v7632_v57, %v4338_v31  ;;  %v626_v45 = vsel %vm7635_vm14, %v4449_v8, 0.0  ;;  %v4481_v57 = vsub.f32 %v7638_v54, %v4338_v31 }
 0x171   :  { %vm7639_vm14 = vnez %v7593_v62  ;;  %v4505_v54 = vsub.f32 %v7644_v5, %v4338_v31  ;;  %v634_v51 = vsel %vm4313_vm1, %v4513_v55, 0.0 }
 0x172   :  { %v668_v60 = vadd.f32 %v667_v43, %v645_v53  ;;  %v625_v43 = vsel %vm7633_vm15, %v4441_v40, 0.0  ;;  %vm7637_vm15 = vnez %v7590_v14 }
 0x173   :  { %v627_v6 = vsel %vm7637_vm15, %v4457_v39, 0.0  ;;  %vm7641_vm15 = vnez %v7596_v61 }
 0x174   :  { %v669_v7 = vadd.f32 %v668_v60, %v646_v13  ;;  %v649_v13 = vmul.f32 %v625_v43, %v625_v43  ;;  %v628_v43 = vsel %vm7639_vm14, %v4465_v21, 0.0  ;;  %vm7643_vm14 = vnez %v7599_v32 }
 0x176   :  { %v670_v53 = vadd.f32 %v669_v7, %v647_v18  ;;  %v650_v18 = vmul.f32 %v626_v45, %v626_v45  ;;  %v629_v45 = vsel %vm7641_vm15, %v4473_v9, 0.0  ;;  %vm7645_vm15 = vnez %v7602_v48 }
 0x178   :  { %v671_v60 = vadd.f32 %v670_v53, %v648_v4  ;;  %v651_v4 = vmul.f32 %v627_v6, %v627_v6  ;;  %v630_v6 = vsel %vm7643_vm14, %v4481_v57, 0.0 }
 0x17a   :  { %v672_v7 = vadd.f32 %v671_v60, %v649_v13  ;;  %v652_v13 = vmul.f32 %v628_v43, %v628_v43  ;;  %v631_v43 = vsel %vm7645_vm15, %v4489_v47, 0.0 }
 0x17c   :  { %v673_v53 = vadd.f32 %v672_v7, %v650_v18  ;;  %v653_v18 = vmul.f32 %v629_v45, %v629_v45  ;;  %v632_v45 = vsel %vm4288_vm2, %v4497_v33, 0.0 }
 0x17e   :  { %v674_v60 = vadd.f32 %v673_v53, %v651_v4  ;;  %v654_v4 = vmul.f32 %v630_v6, %v630_v6  ;;  %v633_v6 = vsel %vm4302_vm3, %v4505_v54, 0.0 }
 0x17f   :  { %v657_v5 = vmul.f32 %v633_v6, %v633_v6 }
 0x180   :  { %v675_v7 = vadd.f32 %v674_v60, %v652_v13  ;;  %v655_v13 = vmul.f32 %v631_v43, %v631_v43  ;;  %v635_v43 = vsel %vm4323_vm0, %v4521_v20, 0.0 }
 0x181   :  { %v659_v31 = vmul.f32 %v635_v43, %v635_v43 }
 0x182   :  { %v676_v53 = vadd.f32 %v675_v7, %v653_v18  ;;  %v656_v18 = vmul.f32 %v632_v45, %v632_v45 }
 0x184   :  { %v677_v60 = vadd.f32 %v676_v53, %v654_v4  ;;  %v658_v4 = vmul.f32 %v634_v51, %v634_v51 }
 0x186   :  { %v678_v7 = vadd.f32 %v677_v60, %v655_v13 }
 0x188   :  { %v679_v15 = vadd.f32 %v678_v7, %v656_v18 }
 0x18a   :  { %v680_v22 = vadd.f32 %v679_v15, %v657_v5  ;;  %v4533_v5 = vld [vmem:[#allocation11] ss:$0 sm:$0xff] }
 0x18c   :  { %v681_v53 = vadd.f32 %v680_v22, %v658_v4 }
 0x18e   :  { %v682_v41 = vadd.f32 %v681_v53, %v659_v31 }
 0x190   :  { %v683_v59 = vrot.slane %v682_v41, 4 }
 0x192   :  { %v684_v26 = vadd.f32 %v683_v59, %v682_v41 }
 0x194   :  { %v685_v48 = vrot.slane %v684_v26, 2 }
 0x196   :  { %v686_v45 = vadd.f32 %v685_v48, %v684_v26 }
 0x198   :  { %v687_v13 = vrot.slane %v686_v45, 1 }
 0x19a   :  { %v688_v60 = vadd.f32 %v687_v13, %v686_v45 }
 0x19c   :  { %v689_v28 = vmul.f32 %v688_v60, %v4335_v17 }
 0x19e   :  { %v690_v32 = vadd.f32 1e-05, %v689_v28  ;;  %v4541_v28 = vld [vmem:[#allocation13] ss:$0 sm:$0xff] }
 0x1a0   :  { %3486 = vrsqrt.f32 %v690_v32  ;;  %vm697_vm1 = vweird.f32 %v690_v32 }
 0x1a6   :  { %v3487_v6 = vpop.eup %3486 }
 0x1a7   :  { %v692_v18 = vmul.f32 %v3487_v6, %v690_v32  ;;  %vm698_vm0 = vweird.f32 %v3487_v6 }
 0x1a8   :  { %vm699_vm3 = vmor %vm697_vm1, %vm698_vm0  ;;  %vm7648_vm0 = vnez %v7575_v34  ;;  %vm7649_vm1 = vnez %v7578_v1 }
 0x1a9   :  { %v693_v7 = vmul.f32 %v3487_v6, %v692_v18 }
 0x1ab   :  { %v694_v0 = vmul.f32 0.5, %v693_v7 }
 0x1ad   :  { %v695_v61 = vsub.f32 1.5, %v694_v0 }
 0x1af   :  { %v696_v51 = vmul.f32 %v3487_v6, %v695_v61 }
 0x1b1   :  { %v4535_v59 = vsel %vm699_vm3, %v3487_v6, %v696_v51  ;;  %vm7650_vm3 = vnez %v7581_v11 }
 0x1b2   :  { %v701_v48 = vmul.f32 %v4535_v59, %v4343_v50  ;;  %v702_v26 = vmul.f32 %v4535_v59, %v4353_v16  ;;  %v713_v15 = vmul.f32 %v4535_v59, %v4348_v3  ;;  %v714_v61 = vmul.f32 %v4535_v59, %v4441_v40 }
 0x1b3   :  { %v703_v40 = vmul.f32 %v4535_v59, %v4358_v2  ;;  %v704_v41 = vmul.f32 %v4535_v59, %v4369_v35  ;;  %v715_v45 = vmul.f32 %v4535_v59, %v4449_v8  ;;  %v716_v13 = vmul.f32 %v4535_v59, %v4457_v39 }
 0x1b4   :  { %v729_v32 = vmul.f32 %v4533_v5, %v701_v48  ;;  %v730_v0 = vmul.f32 %v4533_v5, %v702_v26  ;;  %v741_v43 = vmul.f32 %v4533_v5, %v713_v15  ;;  %v742_v4 = vmul.f32 %v4533_v5, %v714_v61 }
 0x1b5   :  { %v731_v60 = vmul.f32 %v4533_v5, %v703_v40  ;;  %v732_v6 = vmul.f32 %v4533_v5, %v704_v41  ;;  %v743_v18 = vmul.f32 %v4533_v5, %v715_v45  ;;  %v709_v2 = vmul.f32 %v4535_v59, %v4406_v23 }
 0x1b6   :  { %v757_v50 = vadd.f32 %v4541_v28, %v729_v32  ;;  %v758_v16 = vadd.f32 %v4541_v28, %v730_v0  ;;  %v769_v22 = vadd.f32 %v4541_v28, %v741_v43  ;;  %v770_v31 = vadd.f32 %v4541_v28, %v742_v4 }
 0x1b7   :  { %v744_v7 = vmul.f32 %v4533_v5, %v716_v13  ;;  %v710_v35 = vmul.f32 %v4535_v59, %v4414_v29  ;;  %v759_v51 = vadd.f32 %v4541_v28, %v731_v60  ;;  %v737_v8 = vmul.f32 %v4533_v5, %v709_v2 }
 0x1b8   :  { %v829_v3 = vpack.c.bf16 %v758_v16, %v757_v50  ;;  %v835_v53 = vpack.c.bf16 %v770_v31, %v769_v22  ;;  %v721_v39 = vmul.f32 %v4535_v59, %v4497_v33  ;;  %v722_v48 = vmul.f32 %v4535_v59, %v4505_v54 }
 0x1b9   :  { %v760_v26 = vadd.f32 %v4541_v28, %v732_v6  ;;  %v738_v15 = vmul.f32 %v4533_v5, %v710_v35  ;;  %v711_v23 = vmul.f32 %v4535_v59, %v4422_v36  ;;  %v712_v29 = vmul.f32 %v4535_v59, %v4430_v42 }
 0x1ba   :  { %917 = vmatmul.bf16.vlgmr.msra.gmra.mxu1 %v829_v3  ;;  %947 = vmatmul.bf16.vlgmr.msra.gmra.mxu3 %v835_v53  ;;  %v771_v61 = vadd.f32 %v4541_v28, %v743_v18  ;;  %v765_v32 = vadd.f32 %v4541_v28, %v737_v8  ;;  %v749_v0 = vmul.f32 %v4533_v5, %v721_v39 }
 0x1bb   :  { %v750_v33 = vmul.f32 %v4533_v5, %v722_v48  ;;  %v766_v54 = vadd.f32 %v4541_v28, %v738_v15  ;;  %v739_v43 = vmul.f32 %v4533_v5, %v711_v23  ;;  %v740_v4 = vmul.f32 %v4533_v5, %v712_v29 }
 0x1bc   :  { %v723_v36 = vmul.f32 %v4535_v59, %v4513_v55  ;;  %v772_v50 = vadd.f32 %v4541_v28, %v744_v7  ;;  %v777_v42 = vadd.f32 %v4541_v28, %v749_v0  ;;  %v724_v22 = vmul.f32 %v4535_v59, %v4521_v20 }
 0x1bd   :  { %v778_v16 = vadd.f32 %v4541_v28, %v750_v33  ;;  %v833_v31 = vpack.c.bf16 %v766_v54, %v765_v32  ;;  %v767_v3 = vadd.f32 %v4541_v28, %v739_v43  ;;  %v768_v53 = vadd.f32 %v4541_v28, %v740_v4 }
 0x1be   :  { %v751_v40 = vmul.f32 %v4533_v5, %v723_v36  ;;  %v752_v45 = vmul.f32 %v4533_v5, %v724_v22  ;;  %v830_v60 = vpack.c.bf16 %v760_v26, %v759_v51  ;;  %v836_v6 = vpack.c.bf16 %v772_v50, %v771_v61 }
 0x1bf   :  { %v839_v41 = vpack.c.bf16 %v778_v16, %v777_v42  ;;  %v834_v55 = vpack.c.bf16 %v768_v53, %v767_v3  ;;  %v705_v2 = vmul.f32 %v4535_v59, %v4374_v46  ;;  %v706_v7 = vmul.f32 %v4535_v59, %v4382_v52 }
 0x1c0   :  { %v779_v13 = vadd.f32 %v4541_v28, %v751_v40  ;;  %v780_v18 = vadd.f32 %v4541_v28, %v752_v45  ;;  %v717_v35 = vmul.f32 %v4535_v59, %v4465_v21  ;;  %v718_v8 = vmul.f32 %v4535_v59, %v4473_v9 }
 0x1c1   :  { %v733_v51 = vmul.f32 %v4533_v5, %v705_v2  ;;  %v734_v39 = vmul.f32 %v4533_v5, %v706_v7  ;;  %v707_v9 = vmul.f32 %v4535_v59, %v4390_v12  ;;  %v708_v61 = vmul.f32 %v4535_v59, %v4398_v49 }
 0x1c2   :  { %v840_v20 = vpack.c.bf16 %v780_v18, %v779_v13  ;;  %v745_v48 = vmul.f32 %v4533_v5, %v717_v35  ;;  %v746_v26 = vmul.f32 %v4533_v5, %v718_v8  ;;  %v719_v32 = vmul.f32 %v4535_v59, %v4481_v57 }
 0x1c3   :  { %v761_v15 = vadd.f32 %v4541_v28, %v733_v51  ;;  %v762_v46 = vadd.f32 %v4541_v28, %v734_v39  ;;  %v720_v0 = vmul.f32 %v4535_v59, %v4489_v47  ;;  %v735_v33 = vmul.f32 %v4533_v5, %v707_v9 }
 0x1c4   :  { %v773_v52 = vadd.f32 %v4541_v28, %v745_v48  ;;  %v774_v23 = vadd.f32 %v4541_v28, %v746_v26  ;;  %v736_v54 = vmul.f32 %v4533_v5, %v708_v61  ;;  %v747_v43 = vmul.f32 %v4533_v5, %v719_v32 }
 0x1c5   :  { %v831_v21 = vpack.c.bf16 %v762_v46, %v761_v15  ;;  %v748_v4 = vmul.f32 %v4533_v5, %v720_v0  ;;  %v763_v36 = vadd.f32 %v4541_v28, %v735_v33 }
 0x1c6   :  { %v837_v29 = vpack.c.bf16 %v774_v23, %v773_v52  ;;  %v764_v12 = vadd.f32 %v4541_v28, %v736_v54  ;;  %v775_v49 = vadd.f32 %v4541_v28, %v747_v43 }
 0x1c7   :  { %v776_v50 = vadd.f32 %v4541_v28, %v748_v4 }
 0x1c8   :  { %v832_v57 = vpack.c.bf16 %v764_v12, %v763_v36 }
 0x1c9   :  { %v838_v42 = vpack.c.bf16 %v776_v50, %v775_v49 }
 0x1ca   :  { %922 = vmatmul.bf16.gmra.mxu1 %v830_v60  ;;  %952 = vmatmul.bf16.gmra.mxu3 %v836_v6  ;;  %v4645_v6 = vld [vmem:[#allocation16] ss:$0 sm:$0xff] }
 0x1da   :  { %927 = vmatmul.bf16.gmra.mxu1 %v831_v21  ;;  %957 = vmatmul.bf16.gmra.mxu3 %v837_v29 }
 0x1ea   :  { %932 = vmatmul.bf16.gmra.mxu1 %v832_v57  ;;  %962 = vmatmul.bf16.gmra.mxu3 %v838_v42 }
 0x1fa   :  { %937 = vmatmul.bf16.gmra.mxu1 %v833_v31  ;;  %967 = vmatmul.bf16.gmra.mxu3 %v839_v41 }
 0x20a   :  { %942 = vmatmul.bf16.gmra.mxu1 %v834_v55  ;;  %972 = vmatmul.bf16.gmra.mxu3 %v840_v20 }
 0x237   :  { %v918_v47 = vpop.f32.mrf.mxu1 }
 0x238   :  { %v4651_v2 = vadd.f32 %v4645_v6, %v918_v47 }
 0x23a   :  { %v7271_v39 = vmax.f32 %v4651_v2, 0.0 }
 0x23c   :  { %v1002_v21 = vsel %vm4016_vm5, %v7271_v39, 0.0 }
 0x23d   :  { %v948_v59 = vpop.f32.mrf.mxu3 }
 0x23f   :  { %v920_v16 = vpop.f32.mrf.mxu1 }
 0x240   :  { %v4648_v18 = vadd.f32 %v4645_v6, %v920_v16 }
 0x242   :  { %v7269_v8 = vmax.f32 %v4648_v18, 0.0 }
 0x244   :  { %v1003_v15 = vsel %vm4004_vm4, %v7269_v8, 0.0 }
 0x245   :  { %v950_v5 = vpop.f32.mrf.mxu3  ;;  %v1026_v32 = vadd.f32 %v1003_v15, %v1002_v21 }
 0x247   :  { %v923_v22 = vpop.f32.mrf.mxu1 }
 0x248   :  { %v4654_v7 = vadd.f32 %v4645_v6, %v923_v22 }
 0x24a   :  { %v7268_v48 = vmax.f32 %v4654_v7, 0.0 }
 0x24c   :  { %v1004_v29 = vsel %vm4021_vm6, %v7268_v48, 0.0 }
 0x24d   :  { %v4635_v3 = vpop.f32.mrf.mxu3  ;;  %v1027_v43 = vadd.f32 %v1026_v32, %v1004_v29 }
 0x24f   :  { %v925_v53 = vpop.f32.mrf.mxu1 }
 0x250   :  { %v4660_v51 = vadd.f32 %v4645_v6, %v925_v53 }
 0x252   :  { %v7267_v46 = vmax.f32 %v4660_v51, 0.0 }
 0x254   :  { %v1005_v0 = vsel %vm4035_vm7, %v7267_v46, 0.0 }
 0x255   :  { %v4637_v40 = vpop.f32.mrf.mxu3  ;;  %v1028_v50 = vadd.f32 %v1027_v43, %v1005_v0  ;;  %v4730_v0 = vadd.f32 %v4645_v6, %v948_v59 }
 0x257   :  { %v928_v45 = vpop.f32.mrf.mxu1 }
 0x258   :  { %v4665_v26 = vadd.f32 %v4645_v6, %v928_v45 }
 0x25a   :  { %v7262_v9 = vmax.f32 %v4665_v26, 0.0 }
 0x25c   :  { %v1006_v36 = vsel %vm4053_vm8, %v7262_v9, 0.0 }
 0x25d   :  { %v4639_v28 = vpop.f32.mrf.mxu3  ;;  %v1029_v16 = vadd.f32 %v1028_v50, %v1006_v36 }
 0x25f   :  { %v930_v13 = vpop.f32.mrf.mxu1 }
 0x260   :  { %v4673_v52 = vadd.f32 %v4645_v6, %v930_v13 }
 0x262   :  { %v7259_v33 = vmax.f32 %v4673_v52, 0.0 }
 0x264   :  { %v1007_v57 = vsel %vm4067_vm9, %v7259_v33, 0.0 }
 0x265   :  { %v4641_v60 = vpop.f32.mrf.mxu3 }
 0x267   :  { %v933_v31 = vpop.f32.mrf.mxu1 }
 0x268   :  { %v4685_v61 = vadd.f32 %v4645_v6, %v933_v31  ;;  %v1030_v31 = vadd.f32 %v1029_v16, %v1007_v57  ;;  %v4737_v57 = vadd.f32 %v4645_v6, %v950_v5 }
 0x26a   :  { %v7258_v12 = vmax.f32 %v4685_v61, 0.0  ;;  %v7248_v5 = vmax.f32 %v4737_v57, 0.0 }
 0x26c   :  { %v1008_v53 = vsel %vm4083_vm10, %v7258_v12, 0.0 }
 0x26d   :  { %v4643_v41 = vpop.f32.mrf.mxu3  ;;  %v1031_v15 = vadd.f32 %v1030_v31, %v1008_v53  ;;  %v990_v53 = vmax.f32 %v4730_v0, 0.0  ;;  %v4749_v31 = vadd.f32 %v4645_v6, %v4635_v3 }
 0x26f   :  { %v935_v55 = vpop.f32.mrf.mxu1  ;;  %v1014_v0 = vsel %vm7650_vm3, %v990_v53, 0.0  ;;  %v7249_v3 = vmax.f32 %v4749_v31, 0.0  ;;  %vm7652_vm3 = vnez %v7587_v58 }
 0x270   :  { %v4693_v54 = vadd.f32 %v4645_v6, %v935_v55 }
 0x272   :  { %v7256_v42 = vmax.f32 %v4693_v54, 0.0 }
 0x274   :  { %v1009_v55 = vsel %vm4097_vm11, %v7256_v42, 0.0 }
 0x275   :  { %v4656_v35 = vpop.f32.mrf.mxu3  ;;  %v1032_v29 = vadd.f32 %v1031_v15, %v1009_v55 }
 0x277   :  { %v938_v20 = vpop.f32.mrf.mxu1 }
 0x278   :  { %v4701_v49 = vadd.f32 %v4645_v6, %v938_v20 }
 0x27a   :  { %v7254_v45 = vmax.f32 %v4701_v49, 0.0 }
 0x27d   :  { %v968_v4 = vpop.f32.mrf.mxu3 }
 0x27f   :  { %v940_v23 = vpop.f32.mrf.mxu1 }
 0x280   :  { %v4709_v47 = vadd.f32 %v4645_v6, %v940_v23  ;;  %v1010_v23 = vsel %vm4111_vm12, %v7254_v45, 0.0 }
 0x281   :  { %v1033_v36 = vadd.f32 %v1032_v29, %v1010_v23  ;;  %v4755_v23 = vadd.f32 %v4645_v6, %v4637_v40 }
 0x282   :  { %v7252_v20 = vmax.f32 %v4709_v47, 0.0 }
 0x284   :  { %v1011_v43 = vsel %vm4122_vm13, %v7252_v20, 0.0 }
 0x285   :  { %v970_v32 = vpop.f32.mrf.mxu3  ;;  %v1034_v59 = vadd.f32 %v1033_v36, %v1011_v43  ;;  %v4766_v36 = vadd.f32 %v4645_v6, %v4639_v28  ;;  %v1016_v28 = vsel %vm7652_vm3, %v7249_v3, 0.0  ;;  %vm7654_vm3 = vnez %v7593_v62 }
 0x287   :  { %v943_v22 = vpop.f32.mrf.mxu1 }
 0x288   :  { %v4717_v13 = vadd.f32 %v4645_v6, %v943_v22 }
 0x28a   :  { %v7251_v21 = vmax.f32 %v4717_v13, 0.0 }
 0x28c   :  { %v1012_v16 = vsel %vm7648_vm0, %v7251_v21, 0.0  ;;  %vm7651_vm0 = vnez %v7584_v37 }
 0x28d   :  { %v1035_v15 = vadd.f32 %v1034_v59, %v1012_v16  ;;  %v1015_v40 = vsel %vm7651_vm0, %v7248_v5, 0.0  ;;  %v7250_v59 = vmax.f32 %v4755_v23, 0.0  ;;  %vm7653_vm0 = vnez %v7590_v14 }
 0x28f   :  { %v945_v50 = vpop.f32.mrf.mxu1  ;;  %v1017_v5 = vsel %vm7653_vm0, %v7250_v59, 0.0  ;;  %v7655_v59 = vld [vmem:[#allocation39_spill] sm:$0xff] }
 0x290   :  { %v4744_v22 = vadd.f32 %v4645_v6, %v945_v50  ;;  %v973_v50 = vpop.f32.mrf.mxu3  ;;  %vm7656_vm0 = vnez %v7655_v59 }
 0x292   :  { %v7247_v55 = vmax.f32 %v4744_v22, 0.0 }
 0x294   :  { %v1013_v29 = vsel %vm7649_vm1, %v7247_v55, 0.0  ;;  %v7253_v55 = vmax.f32 %v4766_v36, 0.0 }
 0x295   :  { %v1036_v43 = vadd.f32 %v1035_v15, %v1013_v29  ;;  %v4775_v15 = vadd.f32 %v4645_v6, %v4641_v60 }
 0x296   :  { %v1018_v3 = vsel %vm7654_vm3, %v7253_v55, 0.0  ;;  %v7657_v55 = vld [vmem:[#allocation40_spill] sm:$0xff] }
 0x297   :  { %v1037_v16 = vadd.f32 %v1036_v43, %v1014_v0  ;;  %v4784_v43 = vadd.f32 %v4645_v6, %v4643_v41  ;;  %v7255_v60 = vmax.f32 %v4775_v15, 0.0 }
 0x299   :  { %v1038_v29 = vadd.f32 %v1037_v16, %v1015_v40  ;;  %v4793_v16 = vadd.f32 %v4645_v6, %v4656_v35  ;;  %v7257_v41 = vmax.f32 %v4784_v43, 0.0  ;;  %v1019_v21 = vsel %vm7656_vm0, %v7255_v60, 0.0  ;;  %v7658_v60 = vld [vmem:[#allocation41_spill] sm:$0xff] }
 0x29b   :  { %v1039_v0 = vadd.f32 %v1038_v29, %v1016_v28  ;;  %v4801_v29 = vadd.f32 %v4645_v6, %v968_v4  ;;  %v7261_v35 = vmax.f32 %v4793_v16, 0.0  ;;  %v1020_v45 = vsel %vm7643_vm14, %v7257_v41, 0.0  ;;  %v7659_v41 = vld [vmem:[#allocation42_spill] sm:$0xff] }
 0x29d   :  { %v1040_v40 = vadd.f32 %v1039_v0, %v1017_v5  ;;  %v4809_v5 = vadd.f32 %v4645_v6, %v970_v32  ;;  %v975_v0 = vpop.f32.mrf.mxu3  ;;  %v7266_v4 = vmax.f32 %v4801_v29, 0.0  ;;  %v1021_v42 = vsel %vm7645_vm15, %v7261_v35, 0.0 }
 0x29f   :  { %v1041_v28 = vadd.f32 %v1040_v40, %v1018_v3  ;;  %v4817_v3 = vadd.f32 %v4645_v6, %v973_v50  ;;  %v7270_v32 = vmax.f32 %v4809_v5, 0.0  ;;  %v1022_v12 = vsel %vm4288_vm2, %v7266_v4, 0.0 }
 0x2a1   :  { %v1042_v20 = vadd.f32 %v1041_v28, %v1019_v21  ;;  %v4825_v21 = vadd.f32 %v4645_v6, %v975_v0  ;;  %v7272_v50 = vmax.f32 %v4817_v3, 0.0  ;;  %v7662_v6 = vld [vmem:[#allocation44_spill] sm:$0xff] }
 0x2a2   :  { %vm7663_vm15 = vnez %v7662_v6 }
 0x2a3   :  { %v1043_v40 = vadd.f32 %v1042_v20, %v1020_v45  ;;  %v7660_v45 = vld [vmem:[#allocation43_spill] sm:$0xff]  ;;  %v7275_v35 = vmax.f32 %v4825_v21, 0.0 }
 0x2a4   :  { %vm7661_vm14 = vnez %v7660_v45  ;;  %v3407_v45 = vld [vmem:[#allocation20 + $0x10] sm:$0xff] }
 0x2a5   :  { %v1044_v28 = vadd.f32 %v1043_v40, %v1021_v42  ;;  %v1023_v20 = vsel %vm7661_vm14, %v7270_v32, 0.0  ;;  %v1024_v42 = vsel %vm7663_vm15, %v7272_v50, 0.0  ;;  %v7664_v40 = vld [vmem:[#allocation45_spill] sm:$0xff] }
 0x2a6   :  { %vm7665_vm2 = vnez %v7664_v40 }
 0x2a7   :  { %v1045_v33 = vadd.f32 %v1044_v28, %v1022_v12  ;;  %v1025_v4 = vsel %vm7665_vm2, %v7275_v35, 0.0 }
 0x2a9   :  { %v1046_v9 = vadd.f32 %v1045_v33, %v1023_v20  ;;  %v7666_v20 = vmax.f32 %v4651_v2, 0.0 }
 0x2ab   :  { %v1047_v0 = vadd.f32 %v1046_v9, %v1024_v42 }
 0x2ad   :  { %v1048_v12 = vadd.f32 %v1047_v0, %v1025_v4  ;;  %v7667_v4 = vmax.f32 %v4648_v18, 0.0 }
 0x2af   :  { %v1049_v28 = vrot.slane %v1048_v12, 4 }
 0x2b1   :  { %v1050_v46 = vadd.f32 %v1049_v28, %v1048_v12  ;;  %v7671_v28 = vmax.f32 %v4673_v52, 0.0  ;;  %v7673_v52 = vmax.f32 %v4693_v54, 0.0  ;;  %v7675_v54 = vmax.f32 %v4709_v47, 0.0 }
 0x2b2   :  { %v7677_v47 = vmax.f32 %v4744_v22, 0.0 }
 0x2b3   :  { %v1051_v48 = vrot.slane %v1050_v46, 2 }
 0x2b5   :  { %v1052_v8 = vadd.f32 %v1051_v48, %v1050_v46  ;;  %v7668_v48 = vmax.f32 %v4654_v7, 0.0  ;;  %v7669_v46 = vmax.f32 %v4660_v51, 0.0  ;;  %v7670_v7 = vmax.f32 %v4665_v26, 0.0 }
 0x2b6   :  { %v7672_v26 = vmax.f32 %v4685_v61, 0.0  ;;  %v7674_v61 = vmax.f32 %v4701_v49, 0.0  ;;  %v7676_v49 = vmax.f32 %v4717_v13, 0.0 }
 0x2b7   :  { %v1053_v32 = vrot.slane %v1052_v8, 1 }
 0x2b9   :  { %v1054_v39 = vadd.f32 %v1053_v32, %v1052_v8 }
 0x2bb   :  { %v4846_v33 = vmul.f32 %v1054_v39, %v4335_v17 }
 0x2bd   :  { %v4851_v50 = vsub.f32 %v7666_v20, %v4846_v33  ;;  %v4854_v9 = vsub.f32 %v990_v53, %v4846_v33  ;;  %v4859_v42 = vsub.f32 %v7667_v4, %v4846_v33  ;;  %v4864_v8 = vsub.f32 %v7668_v48, %v4846_v33 }
 0x2be   :  { %v4875_v53 = vsub.f32 %v7669_v46, %v4846_v33  ;;  %v4880_v0 = vsub.f32 %v7670_v7, %v4846_v33  ;;  %v4888_v20 = vsub.f32 %v7671_v28, %v4846_v33  ;;  %v4904_v28 = vsub.f32 %v7673_v52, %v4846_v33 }
 0x2bf   :  { %v1080_v39 = vsel %vm4016_vm5, %v4851_v50, 0.0  ;;  %v1081_v2 = vsel %vm4004_vm4, %v4859_v42, 0.0  ;;  %v1082_v12 = vsel %vm4021_vm6, %v4864_v8, 0.0  ;;  %v4920_v52 = vsub.f32 %v7675_v54, %v4846_v33 }
 0x2c0   :  { %v1104_v18 = vmul.f32 %v1080_v39, %v1080_v39  ;;  %v1105_v32 = vmul.f32 %v1081_v2, %v1081_v2  ;;  %v1083_v51 = vsel %vm4035_vm7, %v4875_v53, 0.0  ;;  %v1106_v4 = vmul.f32 %v1082_v12, %v1082_v12 }
 0x2c1   :  { %v4896_v39 = vsub.f32 %v7672_v26, %v4846_v33  ;;  %v1084_v2 = vsel %vm4053_vm8, %v4880_v0, 0.0  ;;  %v1107_v46 = vmul.f32 %v1083_v51, %v1083_v51  ;;  %v4912_v26 = vsub.f32 %v7674_v61, %v4846_v33 }
 0x2c2   :  { %v1128_v48 = vadd.f32 %v1105_v32, %v1104_v18  ;;  %v1085_v18 = vsel %vm4067_vm9, %v4888_v20, 0.0  ;;  %v1108_v32 = vmul.f32 %v1084_v2, %v1084_v2  ;;  %v1087_v2 = vsel %vm4097_vm11, %v4904_v28, 0.0 }
 0x2c3   :  { %v1086_v51 = vsel %vm4083_vm10, %v4896_v39, 0.0  ;;  %v4928_v61 = vsub.f32 %v7676_v49, %v4846_v33  ;;  %v4936_v54 = vsub.f32 %v7677_v47, %v4846_v33  ;;  %vm7678_vm11 = vnez %v7575_v34 }
 0x2c4   :  { %v1129_v7 = vadd.f32 %v1128_v48, %v1106_v4  ;;  %v1109_v4 = vmul.f32 %v1085_v18, %v1085_v18  ;;  %v1088_v18 = vsel %vm4111_vm12, %v4912_v26, 0.0 }
 0x2c5   :  { %v1090_v13 = vsel %vm7678_vm11, %v4928_v61, 0.0  ;;  %v1091_v22 = vsel %vm7649_vm1, %v4936_v54, 0.0  ;;  %vm7681_vm11 = vnez %v7581_v11  ;;  %vm7683_vm1 = vnez %v7584_v37 }
 0x2c6   :  { %v1130_v12 = vadd.f32 %v1129_v7, %v1107_v46  ;;  %v1110_v46 = vmul.f32 %v1086_v51, %v1086_v51  ;;  %v1089_v51 = vsel %vm4122_vm13, %v4920_v52, 0.0 }
 0x2c7   :  { %v1113_v49 = vmul.f32 %v1089_v51, %v1089_v51  ;;  %v1115_v51 = vmul.f32 %v1091_v22, %v1091_v22 }
 0x2c8   :  { %v1131_v48 = vadd.f32 %v1130_v12, %v1108_v32  ;;  %v1111_v32 = vmul.f32 %v1087_v2, %v1087_v2  ;;  %v7679_v2 = vmax.f32 %v4737_v57, 0.0  ;;  %v7682_v57 = vmax.f32 %v4755_v23, 0.0 }
 0x2c9   :  { %v7686_v23 = vmax.f32 %v4775_v15, 0.0  ;;  %v7689_v15 = vmax.f32 %v4793_v16, 0.0 }
 0x2ca   :  { %v1132_v7 = vadd.f32 %v1131_v48, %v1109_v4  ;;  %v1112_v4 = vmul.f32 %v1088_v18, %v1088_v18  ;;  %v7680_v18 = vmax.f32 %v4749_v31, 0.0  ;;  %v7684_v31 = vmax.f32 %v4766_v36, 0.0 }
 0x2cb   :  { %v7688_v36 = vmax.f32 %v4784_v43, 0.0  ;;  %v3412_v43 = vld [vmem:[#allocation20 + $0x38] sm:$0xff] }
 0x2cc   :  { %v1133_v12 = vadd.f32 %v1132_v7, %v1110_v46  ;;  %v4947_v46 = vsub.f32 %v7679_v2, %v4846_v33  ;;  %v1114_v7 = vmul.f32 %v1090_v13, %v1090_v13  ;;  %v4971_v2 = vsub.f32 %v7684_v31, %v4846_v33  ;;  %1377 = vmatpush.bf16.msrb.mxu2 %v3412_v43 }
 0x2cd   :  { %v4995_v31 = vsub.f32 %v7689_v15, %v4846_v33 }
 0x2ce   :  { %v1134_v48 = vadd.f32 %v1133_v12, %v1111_v32  ;;  %v4955_v32 = vsub.f32 %v7680_v18, %v4846_v33  ;;  %v1092_v12 = vsel %vm7681_vm11, %v4854_v9, 0.0  ;;  %vm7685_vm11 = vnez %v7587_v58 }
 0x2cf   :  { %v1116_v13 = vmul.f32 %v1092_v12, %v1092_v12  ;;  %v4979_v18 = vsub.f32 %v7686_v23, %v4846_v33  ;;  %v7690_v23 = vmax.f32 %v4801_v29, 0.0 }
 0x2d0   :  { %v1135_v35 = vadd.f32 %v1134_v48, %v1112_v4  ;;  %v4963_v48 = vsub.f32 %v7682_v57, %v4846_v33  ;;  %v1094_v22 = vsel %vm7685_vm11, %v4955_v32, 0.0  ;;  %v4987_v57 = vsub.f32 %v7688_v36, %v4846_v33 }
 0x2d1   :  { %v5003_v36 = vsub.f32 %v7690_v23, %v4846_v33  ;;  %v7694_v23 = vmax.f32 %v4817_v3, 0.0  ;;  %v3410_v3 = vld [vmem:[#allocation20 + $0x28] sm:$0xff] }
 0x2d2   :  { %v1136_v47 = vadd.f32 %v1135_v35, %v1113_v49  ;;  %v1093_v35 = vsel %vm7683_vm1, %v4947_v46, 0.0  ;;  %vm7687_vm1 = vnez %v7590_v14 }
 0x2d3   :  { %v1095_v12 = vsel %vm7687_vm1, %v4963_v48, 0.0 }
 0x2d4   :  { %v1137_v4 = vadd.f32 %v1136_v47, %v1114_v7  ;;  %v1117_v7 = vmul.f32 %v1093_v35, %v1093_v35  ;;  %v1096_v35 = vsel %vm7654_vm3, %v4971_v2, 0.0  ;;  %vm7691_vm3 = vnez %v7657_v55 }
 0x2d5   :  { %v5019_v55 = vsub.f32 %v7694_v23, %v4846_v33 }
 0x2d6   :  { %v1138_v49 = vadd.f32 %v1137_v4, %v1115_v51  ;;  %v1118_v51 = vmul.f32 %v1094_v22, %v1094_v22  ;;  %v1097_v22 = vsel %vm7656_vm0, %v4979_v18, 0.0  ;;  %vm7693_vm0 = vnez %v7658_v60 }
 0x2d8   :  { %v1139_v47 = vadd.f32 %v1138_v49, %v1116_v13  ;;  %v1119_v13 = vmul.f32 %v1095_v12, %v1095_v12  ;;  %v1098_v12 = vsel %vm7691_vm3, %v4987_v57, 0.0  ;;  %vm7695_vm3 = vnez %v7659_v41 }
 0x2da   :  { %v1140_v4 = vadd.f32 %v1139_v47, %v1117_v7  ;;  %v1120_v7 = vmul.f32 %v1096_v35, %v1096_v35  ;;  %v1099_v35 = vsel %vm7693_vm0, %v4995_v31, 0.0 }
 0x2dc   :  { %v1141_v49 = vadd.f32 %v1140_v4, %v1118_v51  ;;  %v1121_v51 = vmul.f32 %v1097_v22, %v1097_v22  ;;  %v7692_v4 = vmax.f32 %v4809_v5, 0.0  ;;  %v1100_v22 = vsel %vm7695_vm3, %v5003_v36, 0.0 }
 0x2de   :  { %v1142_v47 = vadd.f32 %v1141_v49, %v1119_v13  ;;  %v5011_v15 = vsub.f32 %v7692_v4, %v4846_v33  ;;  %v1122_v13 = vmul.f32 %v1098_v12, %v1098_v12  ;;  %v3411_v49 = vld [vmem:[#allocation20 + $0x30] sm:$0xff]  ;;  %v1102_v4 = vsel %vm7663_vm15, %v5019_v55, 0.0 }
 0x2df   :  { %1378 = vmatpush.bf16.msrb.mxu2 %v3411_v49 }
 0x2e0   :  { %v1143_v16 = vadd.f32 %v1142_v47, %v1120_v7  ;;  %v1123_v7 = vmul.f32 %v1099_v35, %v1099_v35  ;;  %v7696_v47 = vmax.f32 %v4825_v21, 0.0  ;;  %v1101_v12 = vsel %vm7661_vm14, %v5011_v15, 0.0 }
 0x2e1   :  { %v1125_v23 = vmul.f32 %v1101_v12, %v1101_v12  ;;  %v3406_v12 = vld [vmem:[#allocation20 + $0x8] sm:$0xff] }
 0x2e2   :  { %v1144_v29 = vadd.f32 %v1143_v16, %v1121_v51  ;;  %v1079_v43 = vsub.f32 %v7696_v47, %v4846_v33  ;;  %v1124_v51 = vmul.f32 %v1100_v22, %v1100_v22  ;;  %v3409_v33 = vld [vmem:[#allocation20 + $0x20] sm:$0xff]  ;;  %v3408_v22 = vld [vmem:[#allocation20 + $0x18] sm:$0xff] }
 0x2e3   :  { %1379 = vmatpush.bf16.msrb.mxu2 %v3410_v3  ;;  %v3405_v3 = vld [vmem:[#allocation20] sm:$0xff] }
 0x2e4   :  { %v1145_v5 = vadd.f32 %v1144_v29, %v1122_v13  ;;  %v1103_v35 = vsel %vm7665_vm2, %v1079_v43, 0.0  ;;  %v1126_v13 = vmul.f32 %v1102_v4, %v1102_v4 }
 0x2e5   :  { %v1127_v29 = vmul.f32 %v1103_v35, %v1103_v35 }
 0x2e6   :  { %v1146_v16 = vadd.f32 %v1145_v5, %v1123_v7 }
 0x2e7   :  { %1380 = vmatpush.bf16.msrb.mxu2 %v3409_v33 }
 0x2e8   :  { %v1147_v41 = vadd.f32 %v1146_v16, %v1124_v51 }
 0x2ea   :  { %v1148_v21 = vadd.f32 %v1147_v41, %v1125_v23 }
 0x2eb   :  { %1381 = vmatpush.bf16.msrb.mxu2 %v3408_v22 }
 0x2ec   :  { %v1149_v49 = vadd.f32 %v1148_v21, %v1126_v13 }
 0x2ee   :  { %v1150_v47 = vadd.f32 %v1149_v49, %v1127_v29 }
 0x2ef   :  { %1382 = vmatpush.bf16.msrb.mxu2 %v3407_v45  ;;  %v5036_v45 = vld [vmem:[#allocation17] ss:$0 sm:$0xff] }
 0x2f0   :  { %v1151_v7 = vrot.slane %v1150_v47, 4 }
 0x2f2   :  { %v1152_v5 = vadd.f32 %v1151_v7, %v1150_v47  ;;  %v5044_v47 = vld [vmem:[#allocation19] ss:$0 sm:$0xff] }
 0x2f3   :  { %1383 = vmatpush.bf16.msrb.mxu2 %v3406_v12 }
 0x2f4   :  { %v1153_v6 = vrot.slane %v1152_v5, 2 }
 0x2f6   :  { %v1154_v51 = vadd.f32 %v1153_v6, %v1152_v5 }
 0x2f7   :  { %1384 = vmatpush.bf16.msrb.mxu2 %v3405_v3 }
 0x2f8   :  { %v1155_v16 = vrot.slane %v1154_v51, 1 }
 0x2fa   :  { %v1156_v40 = vadd.f32 %v1155_v16, %v1154_v51 }
 0x2fc   :  { %v1157_v41 = vmul.f32 %v1156_v40, %v4335_v17 }
 0x2fe   :  { %v1158_v4 = vadd.f32 1e-05, %v1157_v41 }
 0x300   :  { %3488 = vrsqrt.f32 %v1158_v4  ;;  %vm1165_vm15 = vweird.f32 %v1158_v4 }
 0x306   :  { %v3489_v23 = vpop.eup %3488 }
 0x307   :  { %v1160_v35 = vmul.f32 %v3489_v23, %v1158_v4  ;;  %vm1166_vm2 = vweird.f32 %v3489_v23 }
 0x308   :  { %vm1167_vm14 = vmor %vm1165_vm15, %vm1166_vm2  ;;  %vm7698_vm15 = vnez %v7575_v34  ;;  %vm7699_vm2 = vnez %v7578_v1 }
 0x309   :  { %v1161_v13 = vmul.f32 %v3489_v23, %v1160_v35 }
 0x30b   :  { %v1162_v21 = vmul.f32 0.5, %v1161_v13 }
 0x30d   :  { %v1163_v33 = vsub.f32 1.5, %v1162_v21 }
 0x30f   :  { %v1164_v29 = vmul.f32 %v3489_v23, %v1163_v33 }
 0x311   :  { %v5038_v6 = vsel %vm1167_vm14, %v3489_v23, %v1164_v29  ;;  %vm7697_vm14 = vnez %v7568_v63 }
 0x312   :  { %v1169_v49 = vmul.f32 %v5038_v6, %v4851_v50  ;;  %v1170_v40 = vmul.f32 %v5038_v6, %v4859_v42  ;;  %v1171_v22 = vmul.f32 %v5038_v6, %v4864_v8  ;;  %v1172_v12 = vmul.f32 %v5038_v6, %v4875_v53 }
 0x313   :  { %v1177_v42 = vmul.f32 %v5038_v6, %v4912_v26  ;;  %v1178_v8 = vmul.f32 %v5038_v6, %v4920_v52  ;;  %v1192_v41 = vmul.f32 %v5038_v6, %v1079_v43  ;;  %v1179_v53 = vmul.f32 %v5038_v6, %v4928_v61 }
 0x314   :  { %v1197_v7 = vmul.f32 %v5036_v45, %v1169_v49  ;;  %v1198_v5 = vmul.f32 %v5036_v45, %v1170_v40  ;;  %v1199_v50 = vmul.f32 %v5036_v45, %v1171_v22  ;;  %v1200_v4 = vmul.f32 %v5036_v45, %v1172_v12 }
 0x315   :  { %v1180_v23 = vmul.f32 %v5038_v6, %v4936_v54  ;;  %v1205_v13 = vmul.f32 %v5036_v45, %v1177_v42  ;;  %v1206_v26 = vmul.f32 %v5036_v45, %v1178_v8  ;;  %v1181_v52 = vmul.f32 %v5038_v6, %v4854_v9 }
 0x316   :  { %v1225_v51 = vadd.f32 %v5044_v47, %v1197_v7  ;;  %v1226_v16 = vadd.f32 %v5044_v47, %v1198_v5  ;;  %v1227_v35 = vadd.f32 %v5044_v47, %v1199_v50  ;;  %v1207_v43 = vmul.f32 %v5036_v45, %v1179_v53 }
 0x317   :  { %v1208_v21 = vmul.f32 %v5036_v45, %v1180_v23  ;;  %v1182_v61 = vmul.f32 %v5038_v6, %v4947_v46  ;;  %v1183_v54 = vmul.f32 %v5038_v6, %v4955_v32  ;;  %v5077_v33 = vadd.f32 %v5044_v47, %v1205_v13 }
 0x318   :  { %v1297_v3 = vpack.c.bf16 %v1226_v16, %v1225_v51  ;;  %v1234_v29 = vadd.f32 %v5044_v47, %v1206_v26  ;;  %v1209_v49 = vmul.f32 %v5036_v45, %v1181_v52  ;;  %v1184_v9 = vmul.f32 %v5038_v6, %v4963_v48 }
 0x319   :  { %v1235_v40 = vadd.f32 %v5044_v47, %v1207_v43  ;;  %v1236_v22 = vadd.f32 %v5044_v47, %v1208_v21  ;;  %v1210_v7 = vmul.f32 %v5036_v45, %v1182_v61  ;;  %v1211_v46 = vmul.f32 %v5036_v45, %v1183_v54 }
 0x31a   :  { %1385 = vmatmul.bf16.vlgmr.msrb.gmra.mxu2 %v1297_v3  ;;  %v1301_v32 = vpack.c.bf16 %v1234_v29, %v5077_v33  ;;  %v1237_v5 = vadd.f32 %v5044_v47, %v1209_v49  ;;  %v1212_v12 = vmul.f32 %v5036_v45, %v1184_v9  ;;  %v1185_v51 = vmul.f32 %v5038_v6, %v4971_v2 }
 0x31b   :  { %v1302_v16 = vpack.c.bf16 %v1236_v22, %v1235_v40  ;;  %v1238_v48 = vadd.f32 %v5044_v47, %v1210_v7  ;;  %v1239_v50 = vadd.f32 %v5044_v47, %v1211_v46  ;;  %v1186_v3 = vmul.f32 %v5038_v6, %v4979_v18 }
 0x31c   :  { %v1240_v42 = vadd.f32 %v5044_v47, %v1212_v12  ;;  %v1213_v8 = vmul.f32 %v5036_v45, %v1185_v51  ;;  %v1187_v53 = vmul.f32 %v5038_v6, %v4987_v57  ;;  %v1188_v23 = vmul.f32 %v5038_v6, %v4995_v31 }
 0x31d   :  { %v1303_v13 = vpack.c.bf16 %v1238_v48, %v1237_v5  ;;  %v1214_v2 = vmul.f32 %v5036_v45, %v1186_v3  ;;  %v1189_v26 = vmul.f32 %v5038_v6, %v5003_v36  ;;  %v1190_v52 = vmul.f32 %v5038_v6, %v5011_v15 }
 0x31e   :  { %v1304_v18 = vpack.c.bf16 %v1240_v42, %v1239_v50  ;;  %v1241_v43 = vadd.f32 %v5044_v47, %v1213_v8  ;;  %v1215_v21 = vmul.f32 %v5036_v45, %v1187_v53  ;;  %v1216_v61 = vmul.f32 %v5036_v45, %v1188_v23 }
 0x31f   :  { %v1242_v57 = vadd.f32 %v5044_v47, %v1214_v2  ;;  %v1217_v31 = vmul.f32 %v5036_v45, %v1189_v26  ;;  %v1218_v54 = vmul.f32 %v5036_v45, %v1190_v52  ;;  %v1191_v33 = vmul.f32 %v5038_v6, %v5019_v55 }
 0x320   :  { %v1228_v36 = vadd.f32 %v5044_v47, %v1200_v4  ;;  %v1243_v15 = vadd.f32 %v5044_v47, %v1215_v21  ;;  %v1244_v29 = vadd.f32 %v5044_v47, %v1216_v61  ;;  %v1220_v49 = vmul.f32 %v5036_v45, %v1192_v41 }
 0x321   :  { %v1305_v9 = vpack.c.bf16 %v1242_v57, %v1241_v43  ;;  %v1245_v40 = vadd.f32 %v5044_v47, %v1217_v31  ;;  %v1246_v22 = vadd.f32 %v5044_v47, %v1218_v54  ;;  %v1219_v7 = vmul.f32 %v5036_v45, %v1191_v33 }
 0x322   :  { %v1306_v46 = vpack.c.bf16 %v1244_v29, %v1243_v15  ;;  %v1248_v5 = vadd.f32 %v5044_v47, %v1220_v49  ;;  %v1298_v4 = vpack.c.bf16 %v1228_v36, %v1227_v35  ;;  %v1173_v48 = vmul.f32 %v5038_v6, %v4880_v0 }
 0x323   :  { %v1307_v12 = vpack.c.bf16 %v1246_v22, %v1245_v40  ;;  %v1247_v55 = vadd.f32 %v5044_v47, %v1219_v7  ;;  %v1174_v41 = vmul.f32 %v5038_v6, %v4888_v20  ;;  %v1175_v35 = vmul.f32 %v5038_v6, %v4896_v39  ;;  %v5143_v39 = vld [vmem:[%s7175_s11] ss:$0 sm:$0xff] }
 0x324   :  { %v1201_v50 = vmul.f32 %v5036_v45, %v1173_v48  ;;  %v1176_v23 = vmul.f32 %v5038_v6, %v4904_v28 }
 0x325   :  { %v1308_v51 = vpack.c.bf16 %v1248_v5, %v1247_v55  ;;  %v1202_v3 = vmul.f32 %v5036_v45, %v1174_v41  ;;  %v1203_v0 = vmul.f32 %v5036_v45, %v1175_v35 }
 0x326   :  { %v1229_v42 = vadd.f32 %v5044_v47, %v1201_v50  ;;  %v1204_v20 = vmul.f32 %v5036_v45, %v1176_v23 }
 0x327   :  { %v1230_v8 = vadd.f32 %v5044_v47, %v1202_v3  ;;  %v1231_v2 = vadd.f32 %v5044_v47, %v1203_v0 }
 0x328   :  { %v1232_v26 = vadd.f32 %v5044_v47, %v1204_v20 }
 0x329   :  { %v1299_v53 = vpack.c.bf16 %v1230_v8, %v1229_v42 }
 0x32a   :  { %1390 = vmatmul.bf16.gmra.mxu2 %v1298_v4  ;;  %v1300_v52 = vpack.c.bf16 %v1232_v26, %v1231_v2 }
 0x33a   :  { %1395 = vmatmul.bf16.gmra.mxu2 %v1299_v53 }
 0x34a   :  { %1400 = vmatmul.bf16.gmra.mxu2 %v1300_v52 }
 0x35a   :  { %1405 = vmatmul.bf16.gmra.mxu2 %v1301_v32 }
 0x36a   :  { %1410 = vmatmul.bf16.gmra.mxu2 %v1302_v16 }
 0x37a   :  { %1415 = vmatmul.bf16.gmra.mxu2 %v1303_v13 }
 0x38a   :  { %1420 = vmatmul.bf16.gmra.mxu2 %v1304_v18 }
 0x39a   :  { %1425 = vmatmul.bf16.gmra.mxu2 %v1305_v9 }
 0x39d   :  { %v1386_v43 = vpop.f32.mrf.mxu2 }
 0x39e   :  { %v5146_v28 = vadd.f32 %v5143_v39, %v1386_v43 }
 0x3a0   :  { %v7312_v6 = vmax.f32 %v5146_v28, 0.0 }
 0x3a2   :  { %v1470_v16 = vsel %vm4016_vm5, %v7312_v6, 0.0 }
 0x3a5   :  { %v1388_v45 = vpop.f32.mrf.mxu2 }
 0x3a6   :  { %v5150_v47 = vadd.f32 %v5143_v39, %v1388_v45 }
 0x3a8   :  { %v7311_v32 = vmax.f32 %v5150_v47, 0.0 }
 0x3aa   :  { %v1471_v13 = vsel %vm4004_vm4, %v7311_v32, 0.0  ;;  %1430 = vmatmul.bf16.gmra.mxu2 %v1306_v46 }
 0x3ab   :  { %v1494_v18 = vadd.f32 %v1471_v13, %v1470_v16 }
 0x3ad   :  { %v1391_v21 = vpop.f32.mrf.mxu2 }
 0x3ae   :  { %v5162_v61 = vadd.f32 %v5143_v39, %v1391_v21 }
 0x3b0   :  { %v7308_v57 = vmax.f32 %v5162_v61, 0.0 }
 0x3b2   :  { %v1472_v31 = vsel %vm4021_vm6, %v7308_v57, 0.0 }
 0x3b3   :  { %v1495_v54 = vadd.f32 %v1494_v18, %v1472_v31 }
 0x3b5   :  { %v1393_v33 = vpop.f32.mrf.mxu2 }
 0x3b6   :  { %v5170_v36 = vadd.f32 %v5143_v39, %v1393_v33 }
 0x3b8   :  { %v7306_v15 = vmax.f32 %v5170_v36, 0.0 }
 0x3ba   :  { %v1473_v29 = vsel %vm4035_vm7, %v7306_v15, 0.0  ;;  %1435 = vmatmul.bf16.gmra.mxu2 %v1307_v12 }
 0x3bb   :  { %v1496_v49 = vadd.f32 %v1495_v54, %v1473_v29 }
 0x3bd   :  { %v1396_v9 = vpop.f32.mrf.mxu2 }
 0x3be   :  { %v5178_v40 = vadd.f32 %v5143_v39, %v1396_v9 }
 0x3c0   :  { %v7303_v22 = vmax.f32 %v5178_v40, 0.0 }
 0x3c2   :  { %v1474_v7 = vsel %vm4053_vm8, %v7303_v22, 0.0 }
 0x3c3   :  { %v1497_v46 = vadd.f32 %v1496_v49, %v1474_v7 }
 0x3c5   :  { %v1398_v5 = vpop.f32.mrf.mxu2 }
 0x3c6   :  { %v5186_v55 = vadd.f32 %v5143_v39, %v1398_v5 }
 0x3c8   :  { %v7302_v4 = vmax.f32 %v5186_v55, 0.0 }
 0x3ca   :  { %v1475_v12 = vsel %vm4067_vm9, %v7302_v4, 0.0  ;;  %1440 = vmatmul.bf16.gmra.mxu2 %v1308_v51 }
 0x3cb   :  { %v1498_v48 = vadd.f32 %v1497_v46, %v1475_v12 }
 0x3cd   :  { %v1401_v41 = vpop.f32.mrf.mxu2 }
 0x3ce   :  { %v5194_v50 = vadd.f32 %v5143_v39, %v1401_v41 }
 0x3d0   :  { %v7300_v3 = vmax.f32 %v5194_v50, 0.0 }
 0x3d2   :  { %v1476_v42 = vsel %vm4083_vm10, %v7300_v3, 0.0 }
 0x3d3   :  { %v1499_v8 = vadd.f32 %v1498_v48, %v1476_v42 }
 0x3d5   :  { %v1403_v53 = vpop.f32.mrf.mxu2 }
 0x3d6   :  { %v5202_v35 = vadd.f32 %v5143_v39, %v1403_v53 }
 0x3d8   :  { %v7298_v23 = vmax.f32 %v5202_v35, 0.0 }
 0x3da   :  { %v1477_v51 = vsel %vm7697_vm14, %v7298_v23, 0.0 }
 0x3db   :  { %v1500_v0 = vadd.f32 %v1499_v8, %v1477_v51 }
 0x3dd   :  { %v1406_v20 = vpop.f32.mrf.mxu2 }
 0x3de   :  { %v5210_v2 = vadd.f32 %v5143_v39, %v1406_v20 }
 0x3e0   :  { %v7296_v26 = vmax.f32 %v5210_v2, 0.0 }
 0x3e2   :  { %v1478_v52 = vsel %vm4111_vm12, %v7296_v26, 0.0 }
 0x3e3   :  { %v1501_v43 = vadd.f32 %v1500_v0, %v1478_v52 }
 0x3e5   :  { %v1408_v45 = vpop.f32.mrf.mxu2 }
 0x3e6   :  { %v5218_v16 = vadd.f32 %v5143_v39, %v1408_v45 }
 0x3e8   :  { %v7291_v13 = vmax.f32 %v5218_v16, 0.0 }
 0x3ea   :  { %v1479_v18 = vsel %vm4122_vm13, %v7291_v13, 0.0 }
 0x3eb   :  { %v1502_v21 = vadd.f32 %v1501_v43, %v1479_v18 }
 0x3ed   :  { %v1411_v31 = vpop.f32.mrf.mxu2 }
 0x3ee   :  { %v5226_v54 = vadd.f32 %v5143_v39, %v1411_v31 }
 0x3f0   :  { %v7290_v33 = vmax.f32 %v5226_v54, 0.0 }
 0x3f2   :  { %v1480_v29 = vsel %vm7698_vm15, %v7290_v33, 0.0  ;;  %vm7700_vm15 = vnez %v7581_v11 }
 0x3f3   :  { %v1503_v49 = vadd.f32 %v1502_v21, %v1480_v29 }
 0x3f5   :  { %v1413_v9 = vpop.f32.mrf.mxu2 }
 0x3f6   :  { %v5234_v7 = vadd.f32 %v5143_v39, %v1413_v9 }
 0x3f8   :  { %v7288_v46 = vmax.f32 %v5234_v7, 0.0 }
 0x3fa   :  { %v1481_v5 = vsel %vm7699_vm2, %v7288_v46, 0.0 }
 0x3fb   :  { %v1504_v12 = vadd.f32 %v1503_v49, %v1481_v5 }
 0x3fd   :  { %v1416_v48 = vpop.f32.mrf.mxu2 }
 0x3fe   :  { %v5242_v41 = vadd.f32 %v5143_v39, %v1416_v48 }
 0x400   :  { %v7287_v42 = vmax.f32 %v5242_v41, 0.0 }
 0x402   :  { %v1482_v8 = vsel %vm7700_vm15, %v7287_v42, 0.0  ;;  %vm7701_vm15 = vnez %v7584_v37 }
 0x403   :  { %v1505_v53 = vadd.f32 %v1504_v12, %v1482_v8 }
 0x405   :  { %v1418_v51 = vpop.f32.mrf.mxu2 }
 0x406   :  { %v5250_v21 = vadd.f32 %v5143_v39, %v1418_v51 }
 0x408   :  { %v7289_v49 = vmax.f32 %v5250_v21, 0.0 }
 0x40a   :  { %v1483_v48 = vsel %vm7701_vm15, %v7289_v49, 0.0 }
 0x40b   :  { %v1506_v46 = vadd.f32 %v1505_v53, %v1483_v48 }
 0x40d   :  { %v1421_v0 = vpop.f32.mrf.mxu2 }
 0x40e   :  { %v5253_v29 = vadd.f32 %v5143_v39, %v1421_v0 }
 0x410   :  { %v7293_v5 = vmax.f32 %v5253_v29, 0.0 }
 0x415   :  { %v1423_v20 = vpop.f32.mrf.mxu2 }
 0x416   :  { %v5257_v9 = vadd.f32 %v5143_v39, %v1423_v20  ;;  %v1484_v20 = vsel %vm7685_vm11, %v7293_v5, 0.0  ;;  %vm7702_vm11 = vnez %v7593_v62 }
 0x417   :  { %v1507_v13 = vadd.f32 %v1506_v46, %v1484_v20 }
 0x418   :  { %v7295_v8 = vmax.f32 %v5257_v9, 0.0 }
 0x41a   :  { %v1485_v49 = vsel %vm7687_vm1, %v7295_v8, 0.0  ;;  %vm7703_vm1 = vnez %v7655_v59 }
 0x41b   :  { %v1508_v48 = vadd.f32 %v1507_v13, %v1485_v49 }
 0x41d   :  { %v1426_v52 = vpop.f32.mrf.mxu2 }
 0x41e   :  { %v5261_v12 = vadd.f32 %v5143_v39, %v1426_v52 }
 0x420   :  { %v7297_v42 = vmax.f32 %v5261_v12, 0.0 }
 0x422   :  { %v1486_v5 = vsel %vm7702_vm11, %v7297_v42, 0.0  ;;  %v7704_v42 = vld [vmem:[#allocation40_spill] sm:$0xff] }
 0x423   :  { %v1509_v20 = vadd.f32 %v1508_v48, %v1486_v5  ;;  %vm7705_vm11 = vnez %v7704_v42  ;;  %v7706_v48 = vld [vmem:[#allocation42_spill] sm:$0xff] }
 0x425   :  { %v1428_v43 = vpop.f32.mrf.mxu2 }
 0x426   :  { %v5269_v51 = vadd.f32 %v5143_v39, %v1428_v43 }
 0x428   :  { %v7299_v43 = vmax.f32 %v5269_v51, 0.0 }
 0x42a   :  { %v1487_v8 = vsel %vm7703_vm1, %v7299_v43, 0.0 }
 0x42b   :  { %v1510_v49 = vadd.f32 %v1509_v20, %v1487_v8 }
 0x42d   :  { %v1431_v45 = vpop.f32.mrf.mxu2 }
 0x42e   :  { %v5277_v52 = vadd.f32 %v5143_v39, %v1431_v45 }
 0x430   :  { %v7301_v45 = vmax.f32 %v5277_v52, 0.0 }
 0x432   :  { %v1488_v23 = vsel %vm7705_vm11, %v7301_v45, 0.0 }
 0x433   :  { %v1511_v5 = vadd.f32 %v1510_v49, %v1488_v23 }
 0x435   :  { %v1433_v18 = vpop.f32.mrf.mxu2 }
 0x436   :  { %v5285_v33 = vadd.f32 %v5143_v39, %v1433_v18 }
 0x438   :  { %v7304_v18 = vmax.f32 %v5285_v33, 0.0 }
 0x43a   :  { %v1489_v43 = vsel %vm7693_vm0, %v7304_v18, 0.0  ;;  %v7709_v18 = vld [vmem:[#allocation44_spill] sm:$0xff] }
 0x43b   :  { %v1512_v4 = vadd.f32 %v1511_v5, %v1489_v43  ;;  %vm7710_vm0 = vnez %v7709_v18  ;;  %v7711_v43 = vld [vmem:[#allocation45_spill] sm:$0xff] }
 0x43d   :  { %v1436_v31 = vpop.f32.mrf.mxu2 }
 0x43e   :  { %v5293_v53 = vadd.f32 %v5143_v39, %v1436_v31 }
 0x440   :  { %v7307_v31 = vmax.f32 %v5293_v53, 0.0 }
 0x442   :  { %v1490_v3 = vsel %vm7695_vm3, %v7307_v31, 0.0  ;;  %vm7712_vm3 = vnez %v7711_v43 }
 0x443   :  { %v1513_v20 = vadd.f32 %v1512_v4, %v1490_v3 }
 0x445   :  { %v1438_v0 = vpop.f32.mrf.mxu2 }
 0x446   :  { %v5301_v46 = vadd.f32 %v5143_v39, %v1438_v0 }
 0x448   :  { %v7310_v0 = vmax.f32 %v5301_v46, 0.0 }
 0x44d   :  { %v1441_v26 = vpop.f32.mrf.mxu2 }
 0x44e   :  { %v5309_v13 = vadd.f32 %v5143_v39, %v1441_v26  ;;  %v7707_v26 = vld [vmem:[#allocation43_spill] sm:$0xff] }
 0x44f   :  { %vm7708_vm11 = vnez %v7707_v26 }
 0x450   :  { %v7313_v45 = vmax.f32 %v5309_v13, 0.0  ;;  %v1491_v8 = vsel %vm7708_vm11, %v7310_v0, 0.0 }
 0x451   :  { %v1514_v15 = vadd.f32 %v1513_v20, %v1491_v8 }
 0x452   :  { %v1492_v23 = vsel %vm7710_vm0, %v7313_v45, 0.0 }
 0x453   :  { %v1515_v57 = vadd.f32 %v1514_v15, %v1492_v23  ;;  %v7714_v15 = vmax.f32 %v5150_v47, 0.0  ;;  %v7718_v47 = vmax.f32 %v5186_v55, 0.0  ;;  %v7722_v55 = vmax.f32 %v5218_v16, 0.0 }
 0x455   :  { %v1443_v22 = vpop.f32.mrf.mxu2 }
 0x456   :  { %v5330_v49 = vadd.f32 %v5143_v39, %v1443_v22  ;;  %v7713_v39 = vmax.f32 %v5146_v28, 0.0  ;;  %v7717_v28 = vmax.f32 %v5178_v40, 0.0  ;;  %v7721_v40 = vmax.f32 %v5210_v2, 0.0 }
 0x457   :  { %v7725_v2 = vmax.f32 %v5242_v41, 0.0 }
 0x458   :  { %v7317_v31 = vmax.f32 %v5330_v49, 0.0 }
 0x45a   :  { %v1493_v5 = vsel %vm7712_vm3, %v7317_v31, 0.0  ;;  %v3436_v31 = vld [vmem:[#allocation22 + $0xb8] sm:$0xf0] }
 0x45b   :  { %v1516_v0 = vadd.f32 %v1515_v57, %v1493_v5  ;;  %v7715_v57 = vmax.f32 %v5162_v61, 0.0  ;;  %v7719_v61 = vmax.f32 %v5194_v50, 0.0  ;;  %v7723_v50 = vmax.f32 %v5226_v54, 0.0 }
 0x45d   :  { %v1517_v4 = vrot.slane %v1516_v0, 4 }
 0x45f   :  { %v1518_v3 = vadd.f32 %v1517_v4, %v1516_v0 }
 0x461   :  { %v1519_v32 = vrot.slane %v1518_v3, 2 }
 0x463   :  { %v1520_v6 = vadd.f32 %v1519_v32, %v1518_v3 }
 0x465   :  { %v1521_v26 = vrot.slane %v1520_v6, 1 }
 0x467   :  { %v1522_v18 = vadd.f32 %v1521_v26, %v1520_v6  ;;  %v7716_v6 = vmax.f32 %v5170_v36, 0.0  ;;  %v7720_v36 = vmax.f32 %v5202_v35, 0.0  ;;  %v7724_v35 = vmax.f32 %v5234_v7, 0.0 }
 0x469   :  { %v5338_v45 = vmul.f32 %v1522_v18, %v4335_v17 }
 0x46b   :  { %v5343_v22 = vsub.f32 %v7713_v39, %v5338_v45  ;;  %v5348_v8 = vsub.f32 %v7714_v15, %v5338_v45  ;;  %v5353_v0 = vsub.f32 %v7715_v57, %v5338_v45  ;;  %v5358_v32 = vsub.f32 %v7716_v6, %v5338_v45 }
 0x46c   :  { %v5363_v18 = vsub.f32 %v7717_v28, %v5338_v45  ;;  %v5368_v26 = vsub.f32 %v7718_v47, %v5338_v45  ;;  %v5373_v20 = vsub.f32 %v7719_v61, %v5338_v45  ;;  %v5378_v23 = vsub.f32 %v7720_v36, %v5338_v45 }
 0x46d   :  { %v5383_v5 = vsub.f32 %v7721_v40, %v5338_v45  ;;  %v5388_v4 = vsub.f32 %v7722_v55, %v5338_v45  ;;  %v5393_v3 = vsub.f32 %v7723_v50, %v5338_v45  ;;  %v5398_v39 = vsub.f32 %v7724_v35, %v5338_v45 }
 0x46e   :  { %v5403_v15 = vsub.f32 %v7725_v2, %v5338_v45  ;;  %v1548_v16 = vsel %vm4016_vm5, %v5343_v22, 0.0  ;;  %v1549_v54 = vsel %vm4004_vm4, %v5348_v8, 0.0  ;;  %v1550_v7 = vsel %vm4021_vm6, %v5353_v0, 0.0 }
 0x46f   :  { %v1572_v57 = vmul.f32 %v1548_v16, %v1548_v16  ;;  %v1573_v6 = vmul.f32 %v1549_v54, %v1549_v54  ;;  %v1551_v41 = vsel %vm4035_vm7, %v5358_v32, 0.0  ;;  %v1574_v28 = vmul.f32 %v1550_v7, %v1550_v7 }
 0x470   :  { %v1552_v61 = vsel %vm4053_vm8, %v5363_v18, 0.0  ;;  %v1575_v36 = vmul.f32 %v1551_v41, %v1551_v41  ;;  %v1553_v55 = vsel %vm4067_vm9, %v5368_v26, 0.0  ;;  %v1554_v2 = vsel %vm4083_vm10, %v5373_v20, 0.0 }
 0x471   :  { %v1596_v47 = vadd.f32 %v1573_v6, %v1572_v57  ;;  %v1576_v50 = vmul.f32 %v1552_v61, %v1552_v61  ;;  %v1577_v16 = vmul.f32 %v1553_v55, %v1553_v55  ;;  %v1555_v57 = vsel %vm7697_vm14, %v5378_v23, 0.0 }
 0x472   :  { %v1578_v6 = vmul.f32 %v1554_v2, %v1554_v2  ;;  %v1556_v41 = vsel %vm4111_vm12, %v5383_v5, 0.0  ;;  %v1557_v61 = vsel %vm4122_vm13, %v5388_v4, 0.0  ;;  %vm7726_vm10 = vnez %v7575_v34 }
 0x473   :  { %v1597_v40 = vadd.f32 %v1596_v47, %v1574_v28  ;;  %v1579_v28 = vmul.f32 %v1555_v57, %v1555_v57  ;;  %v1558_v55 = vsel %vm7726_vm10, %v5393_v3, 0.0  ;;  %v7727_v2 = vmax.f32 %v5250_v21, 0.0 }
 0x474   :  { %v1582_v57 = vmul.f32 %v1558_v55, %v1558_v55  ;;  %vm7729_vm10 = vnez %v7581_v11  ;;  %v7730_v21 = vmax.f32 %v5257_v9, 0.0 }
 0x475   :  { %v1598_v35 = vadd.f32 %v1597_v40, %v1575_v36  ;;  %v1580_v36 = vmul.f32 %v1556_v41, %v1556_v41 }
 0x477   :  { %v1599_v54 = vadd.f32 %v1598_v35, %v1576_v50  ;;  %v1581_v50 = vmul.f32 %v1557_v61, %v1557_v61 }
 0x479   :  { %v1600_v7 = vadd.f32 %v1599_v54, %v1577_v16  ;;  %v5441_v16 = vsub.f32 %v7727_v2, %v5338_v45  ;;  %v1559_v54 = vsel %vm7699_vm2, %v5398_v39, 0.0  ;;  %v7732_v2 = vmax.f32 %v5269_v51, 0.0 }
 0x47a   :  { %v7736_v51 = vmax.f32 %v5285_v33, 0.0 }
 0x47b   :  { %v1601_v47 = vadd.f32 %v1600_v7, %v1578_v6  ;;  %v7728_v7 = vmax.f32 %v5253_v29, 0.0  ;;  %v7731_v29 = vmax.f32 %v5261_v12, 0.0  ;;  %v7735_v12 = vmax.f32 %v5277_v52, 0.0  ;;  %v3434_v52 = vld [vmem:[#allocation22 + $0xac] sm:$0xf] }
 0x47d   :  { %v1602_v40 = vadd.f32 %v1601_v47, %v1579_v28  ;;  %v5449_v41 = vsub.f32 %v7728_v7, %v5338_v45  ;;  %v1560_v28 = vsel %vm7729_vm10, %v5403_v15, 0.0  ;;  %v1583_v47 = vmul.f32 %v1559_v54, %v1559_v54 }
 0x47e   :  { %v1584_v55 = vmul.f32 %v1560_v28, %v1560_v28  ;;  %v5470_v54 = vsub.f32 %v7732_v2, %v5338_v45  ;;  %vm7733_vm10 = vnez %v7587_v58  ;;  %v3379_v2 = vld [vmem:[#allocation22 + $0xa8] sm:$0xf] }
 0x47f   :  { %v1603_v35 = vadd.f32 %v1602_v40, %v1580_v36  ;;  %v5457_v36 = vsub.f32 %v7730_v21, %v5338_v45  ;;  %v1561_v40 = vsel %vm7701_vm15, %v5441_v16, 0.0  ;;  %v1562_v9 = vsel %vm7733_vm10, %v5449_v41, 0.0 }
 0x480   :  { %vm7734_vm15 = vnez %v7590_v14  ;;  %v1586_v28 = vmul.f32 %v1562_v9, %v1562_v9  ;;  %v5486_v21 = vsub.f32 %v7736_v51, %v5338_v45  ;;  %vm7737_vm10 = vnez %v7593_v62  ;;  %v3435_v9 = vld [vmem:[#allocation22 + $0xb0] sm:$0xf0] }
 0x481   :  { %v1604_v6 = vadd.f32 %v1603_v35, %v1581_v50  ;;  %v5465_v35 = vsub.f32 %v7731_v29, %v5338_v45  ;;  %v1563_v7 = vsel %vm7734_vm15, %v5457_v36, 0.0  ;;  %v7738_v62 = vmax.f32 %v5293_v53, 0.0  ;;  %v3432_v53 = vld [vmem:[#allocation22 + $0x98] sm:$0xf0] }
 0x483   :  { %v1605_v61 = vadd.f32 %v1604_v6, %v1582_v57  ;;  %v1585_v57 = vmul.f32 %v1561_v40, %v1561_v40  ;;  %v1564_v40 = vsel %vm7737_vm10, %v5465_v35, 0.0  ;;  %v5497_v37 = vsub.f32 %v7738_v62, %v5338_v45  ;;  %v3367_v62 = vld [vmem:[#allocation22 + $0x90] sm:$0xf] }
 0x484   :  { %v1588_v33 = vmul.f32 %v1564_v40, %v1564_v40  ;;  %vm7741_vm10 = vnez %v7658_v60  ;;  %v7742_v60 = vmax.f32 %v5309_v13, 0.0  ;;  %v3429_v13 = vld [vmem:[#allocation22 + $0x80] sm:$0xf0] }
 0x485   :  { %v1606_v50 = vadd.f32 %v1605_v61, %v1583_v47  ;;  %v5481_v61 = vsub.f32 %v7735_v12, %v5338_v45  ;;  %v3387_v12 = vld [vmem:[#allocation22 + $0xb0] sm:$0xf]  ;;  %v1567_v40 = vsel %vm7741_vm10, %v5486_v21, 0.0  ;;  %vm7744_vm10 = vnez %v7706_v48 }
 0x486   :  { %v3388_v58 = vor.u32 %v3436_v31, %v3387_v12  ;;  %v5513_v59 = vsub.f32 %v7742_v60, %v5338_v45  ;;  %v3355_v60 = vld [vmem:[#allocation22 + $0x78] sm:$0xf] }
 0x487   :  { %v1607_v6 = vadd.f32 %v1606_v50, %v1584_v55  ;;  %v1565_v55 = vsel %vm7703_vm1, %v5470_v54, 0.0  ;;  %v1587_v50 = vmul.f32 %v1563_v7, %v1563_v7  ;;  %v7739_v7 = vmax.f32 %v5301_v46, 0.0  ;;  %v3369_v46 = vld [vmem:[#allocation22 + $0x9c] sm:$0xf0] }
 0x488   :  { %vm7740_vm1 = vnez %v7704_v42  ;;  %v1589_v31 = vmul.f32 %v1565_v55, %v1565_v55  ;;  %2083 = vmatpush.bf16.msrb.mxu1 %v3388_v58  ;;  %v1568_v55 = vsel %vm7744_vm10, %v5497_v37, 0.0 }
 0x489   :  { %v1608_v47 = vadd.f32 %v1607_v6, %v1585_v57  ;;  %v3380_v57 = vor.u32 %v3435_v9, %v3379_v2  ;;  %v3381_v6 = vld [vmem:[#allocation22 + $0xb4] sm:$0xf0]  ;;  %v3368_v2 = vor.u32 %v3432_v53, %v3367_v62  ;;  %v3430_v62 = vld [vmem:[#allocation22 + $0x88] sm:$0xf0]  ;;  %v1592_v53 = vmul.f32 %v1568_v55, %v1568_v55 }
 0x48a   :  { %v3384_v14 = vor.u32 %v3434_v52, %v3381_v6  ;;  %v3375_v9 = vld [vmem:[#allocation22 + $0x98] sm:$0xf]  ;;  %v3433_v52 = vld [vmem:[#allocation22 + $0xa0] sm:$0xf0] }
 0x48b   :  { %v1609_v29 = vadd.f32 %v1608_v47, %v1586_v28  ;;  %v5502_v28 = vsub.f32 %v7739_v7, %v5338_v45  ;;  %v1566_v47 = vsel %vm7740_vm1, %v5481_v61, 0.0  ;;  %1945 = vmatpush.bf16.msrb.mxu3 %v3380_v57  ;;  %v3376_v42 = vor.u32 %v3433_v52, %v3375_v9  ;;  %v3424_v52 = vld [vmem:[#allocation22 + $0x58] sm:$0xf0] }
 0x48c   :  { %2014 = vmatpush.bf16.msrb.mxu0 %v3384_v14  ;;  %v1590_v6 = vmul.f32 %v1566_v47, %v1566_v47  ;;  %v7743_v14 = vmax.f32 %v5330_v49, 0.0  ;;  %v3357_v49 = vld [vmem:[#allocation22 + $0x84] sm:$0xf0] }
 0x48d   :  { %v1610_v51 = vadd.f32 %v1609_v29, %v1587_v50  ;;  %v3431_v29 = vld [vmem:[#allocation22 + $0x94] sm:$0xf]  ;;  %2084 = vmatpush.bf16.msrb.mxu1 %v3376_v42 }
 0x48e   :  { %v3372_v7 = vor.u32 %v3431_v29, %v3369_v46  ;;  %v5518_v58 = vsub.f32 %v7743_v14, %v5338_v45  ;;  %v3363_v45 = vld [vmem:[#allocation22 + $0x80] sm:$0xf]  ;;  %v1570_v14 = vsel %vm7710_vm0, %v5513_v59, 0.0 }
 0x48f   :  { %v1611_v50 = vadd.f32 %v1610_v51, %v1588_v33  ;;  %v1569_v33 = vsel %vm7708_vm11, %v5502_v28, 0.0  ;;  %1946 = vmatpush.bf16.msrb.mxu3 %v3368_v2  ;;  %v1591_v51 = vmul.f32 %v1567_v40, %v1567_v40  ;;  %v3364_v9 = vor.u32 %v3430_v62, %v3363_v45 }
 0x490   :  { %2015 = vmatpush.bf16.msrb.mxu0 %v3372_v7  ;;  %v1571_v40 = vsel %vm7712_vm3, %v5518_v58, 0.0  ;;  %v1593_v42 = vmul.f32 %v1569_v33, %v1569_v33  ;;  %v3425_v7 = vld [vmem:[#allocation22 + $0x64] sm:$0xf]  ;;  %v3331_v33 = vld [vmem:[#allocation22 + $0x48] sm:$0xf] }
 0x491   :  { %v1612_v12 = vadd.f32 %v1611_v50, %v1589_v31  ;;  %v3428_v31 = vld [vmem:[#allocation22 + $0x7c] sm:$0xf]  ;;  %v3356_v50 = vor.u32 %v3429_v13, %v3355_v60  ;;  %2085 = vmatpush.bf16.msrb.mxu1 %v3364_v9  ;;  %v3427_v60 = vld [vmem:[#allocation22 + $0x70] sm:$0xf0]  ;;  %v1594_v13 = vmul.f32 %v1570_v14, %v1570_v14  ;;  %v1595_v62 = vmul.f32 %v1571_v40, %v1571_v40  ;;  %v3339_v9 = vld [vmem:[#allocation22 + $0x50] sm:$0xf] }
 0x492   :  { %v3360_v46 = vor.u32 %v3428_v31, %v3357_v49  ;;  %v3340_v57 = vor.u32 %v3424_v52, %v3339_v9  ;;  %v3414_v9 = vld [vmem:[#allocation22 + $0x8] sm:$0xf0] }
 0x493   :  { %v1613_v47 = vadd.f32 %v1612_v12, %v1590_v6  ;;  %1947 = vmatpush.bf16.msrb.mxu3 %v3356_v50  ;;  %v3343_v6 = vld [vmem:[#allocation22 + $0x60] sm:$0xf]  ;;  %v3426_v12 = vld [vmem:[#allocation22 + $0x68] sm:$0xf0]  ;;  %v3423_v50 = vld [vmem:[#allocation22 + $0x50] sm:$0xf0] }
 0x494   :  { %2016 = vmatpush.bf16.msrb.mxu0 %v3360_v46  ;;  %v3344_v55 = vor.u32 %v3426_v12, %v3343_v6  ;;  %v3333_v46 = vld [vmem:[#allocation22 + $0x54] sm:$0xf0] }
 0x495   :  { %v1614_v29 = vadd.f32 %v1613_v47, %v1591_v51  ;;  %v3345_v51 = vld [vmem:[#allocation22 + $0x6c] sm:$0xf0]  ;;  %v3351_v47 = vld [vmem:[#allocation22 + $0x68] sm:$0xf] }
 0x496   :  { %v3348_v49 = vor.u32 %v3425_v7, %v3345_v51  ;;  %v3352_v45 = vor.u32 %v3427_v60, %v3351_v47  ;;  %v3419_v7 = vld [vmem:[#allocation22 + $0x34] sm:$0xf]  ;;  %v3327_v51 = vld [vmem:[#allocation22 + $0x38] sm:$0xf] }
 0x497   :  { %v1615_v2 = vadd.f32 %v1614_v29, %v1592_v53  ;;  %1948 = vmatpush.bf16.msrb.mxu3 %v3344_v55  ;;  %v3422_v53 = vld [vmem:[#allocation22 + $0x4c] sm:$0xf]  ;;  %v3332_v29 = vor.u32 %v3423_v50, %v3331_v33  ;;  %v3321_v55 = vld [vmem:[#allocation22 + $0x3c] sm:$0xf0]  ;;  %v3309_v33 = vld [vmem:[#allocation22 + $0x24] sm:$0xf0] }
 0x498   :  { %2017 = vmatpush.bf16.msrb.mxu0 %v3348_v49  ;;  %2086 = vmatpush.bf16.msrb.mxu1 %v3352_v45  ;;  %v3336_v12 = vor.u32 %v3422_v53, %v3333_v46  ;;  %v3324_v60 = vor.u32 %v3419_v7, %v3321_v55  ;;  %v3417_v45 = vld [vmem:[#allocation22 + $0x20] sm:$0xf0]  ;;  %v3295_v46 = vld [vmem:[#allocation22] sm:$0xf]  ;;  %v3415_v55 = vld [vmem:[#allocation22 + $0x10] sm:$0xf0] }
 0x499   :  { %v1616_v31 = vadd.f32 %v1615_v2, %v1593_v42  ;;  %v3319_v42 = vld [vmem:[#allocation22 + $0x30] sm:$0xf]  ;;  %v3420_v2 = vld [vmem:[#allocation22 + $0x38] sm:$0xf0] }
 0x49a   :  { %v3320_v40 = vor.u32 %v3420_v2, %v3319_v42  ;;  %v3297_v42 = vld [vmem:[#allocation22 + $0xc] sm:$0xf0]  ;;  %v3303_v2 = vld [vmem:[#allocation22 + $0x8] sm:$0xf] }
 0x49b   :  { %v1617_v43 = vadd.f32 %v1616_v31, %v1594_v13  ;;  %1949 = vmatpush.bf16.msrb.mxu3 %v3332_v29  ;;  %v3421_v13 = vld [vmem:[#allocation22 + $0x40] sm:$0xf0]  ;;  %v3418_v29 = vld [vmem:[#allocation22 + $0x28] sm:$0xf0] }
 0x49c   :  { %2018 = vmatpush.bf16.msrb.mxu0 %v3336_v12  ;;  %2087 = vmatpush.bf16.msrb.mxu1 %v3340_v57  ;;  %v3328_v31 = vor.u32 %v3421_v13, %v3327_v51  ;;  %v3315_v57 = vld [vmem:[#allocation22 + $0x20] sm:$0xf]  ;;  %v3296_v12 = vor.u32 %v3414_v9, %v3295_v46  ;;  %v3304_v51 = vor.u32 %v3415_v55, %v3303_v2  ;;  %v5549_v46 = vld [vmem:[%s7177_s13] ss:$0 sm:$0xff] }
 0x49d   :  { %v1618_v6 = vadd.f32 %v1617_v43, %v1595_v62  ;;  %v3307_v43 = vld [vmem:[#allocation22 + $0x18] sm:$0xf]  ;;  %v3416_v62 = vld [vmem:[#allocation22 + $0x1c] sm:$0xf] }
 0x49e   :  { %v3308_v52 = vor.u32 %v3417_v45, %v3307_v43  ;;  %v3312_v53 = vor.u32 %v3416_v62, %v3309_v33  ;;  %v5536_v33 = vld [vmem:[%s7176_s12] ss:$0 sm:$0xff] }
 0x49f   :  { %v1619_v14 = vrot.slane %v1618_v6, 4  ;;  %1950 = vmatpush.bf16.msrb.mxu3 %v3320_v40 }
 0x4a0   :  { %2019 = vmatpush.bf16.msrb.mxu0 %v3324_v60  ;;  %2088 = vmatpush.bf16.msrb.mxu1 %v3328_v31 }
 0x4a1   :  { %v1620_v47 = vadd.f32 %v1619_v14, %v1618_v6  ;;  %v3316_v6 = vor.u32 %v3418_v29, %v3315_v57  ;;  %v3413_v14 = vld [vmem:[#allocation22 + $0x4] sm:$0xf] }
 0x4a2   :  { %v3300_v7 = vor.u32 %v3413_v14, %v3297_v42 }
 0x4a3   :  { %v1621_v49 = vrot.slane %v1620_v47, 2  ;;  %1951 = vmatpush.bf16.msrb.mxu3 %v3308_v52 }
 0x4a4   :  { %2020 = vmatpush.bf16.msrb.mxu0 %v3312_v53  ;;  %2089 = vmatpush.bf16.msrb.mxu1 %v3316_v6 }
 0x4a5   :  { %v1622_v50 = vadd.f32 %v1621_v49, %v1620_v47 }
 0x4a7   :  { %v1623_v40 = vrot.slane %v1622_v50, 1  ;;  %1952 = vmatpush.bf16.msrb.mxu3 %v3296_v12 }
 0x4a8   :  { %2021 = vmatpush.bf16.msrb.mxu0 %v3300_v7  ;;  %2090 = vmatpush.bf16.msrb.mxu1 %v3304_v51 }
 0x4a9   :  { %v1624_v60 = vadd.f32 %v1623_v40, %v1622_v50 }
 0x4ab   :  { %v1625_v47 = vmul.f32 %v1624_v60, %v4335_v17 }
 0x4ad   :  { %v1626_v13 = vadd.f32 1e-05, %v1625_v47 }
 0x4af   :  { %3490 = vrsqrt.f32 %v1626_v13  ;;  %vm1633_vm0 = vweird.f32 %v1626_v13 }
 0x4b5   :  { %v3491_v31 = vpop.eup %3490 }
 0x4b6   :  { %v1628_v49 = vmul.f32 %v3491_v31, %v1626_v13  ;;  %vm1634_vm3 = vweird.f32 %v3491_v31 }
 0x4b7   :  { %vm1635_vm11 = vmor %vm1633_vm0, %vm1634_vm3  ;;  %vm7770_vm0 = vnez %v7575_v34  ;;  %vm7775_vm3 = vnez %v7581_v11 }
 0x4b8   :  { %v1629_v43 = vmul.f32 %v3491_v31, %v1628_v49 }
 0x4ba   :  { %v1630_v45 = vmul.f32 0.5, %v1629_v43 }
 0x4bc   :  { %v1631_v52 = vsub.f32 1.5, %v1630_v45 }
 0x4be   :  { %v1632_v62 = vmul.f32 %v3491_v31, %v1631_v52 }
 0x4c0   :  { %v5538_v57 = vsel %vm1635_vm11, %v3491_v31, %v1632_v62  ;;  %vm7761_vm11 = vnez %v7566_v56 }
 0x4c1   :  { %v1660_v50 = vmul.f32 %v5538_v57, %v5518_v58  ;;  %v1637_v53 = vmul.f32 %v5538_v57, %v5343_v22  ;;  %v1638_v29 = vmul.f32 %v5538_v57, %v5348_v8  ;;  %v1639_v9 = vmul.f32 %v5538_v57, %v5353_v0 }
 0x4c2   :  { %v1640_v6 = vmul.f32 %v5538_v57, %v5358_v32  ;;  %v1645_v0 = vmul.f32 %v5538_v57, %v5383_v5  ;;  %v1646_v32 = vmul.f32 %v5538_v57, %v5388_v4  ;;  %v1647_v55 = vmul.f32 %v5538_v57, %v5393_v3 }
 0x4c3   :  { %v1688_v12 = vmul.f32 %v5536_v33, %v1660_v50  ;;  %v1665_v58 = vmul.f32 %v5536_v33, %v1637_v53  ;;  %v1666_v22 = vmul.f32 %v5536_v33, %v1638_v29  ;;  %v1667_v14 = vmul.f32 %v5536_v33, %v1639_v9 }
 0x4c4   :  { %v1668_v2 = vmul.f32 %v5536_v33, %v1640_v6  ;;  %v1673_v51 = vmul.f32 %v5536_v33, %v1645_v0  ;;  %v1674_v60 = vmul.f32 %v5536_v33, %v1646_v32  ;;  %v1648_v47 = vmul.f32 %v5538_v57, %v5398_v39 }
 0x4c5   :  { %v1693_v8 = vadd.f32 %v5549_v46, %v1665_v58  ;;  %v1694_v42 = vadd.f32 %v5549_v46, %v1666_v22  ;;  %v1695_v7 = vadd.f32 %v5549_v46, %v1667_v14  ;;  %v1675_v13 = vmul.f32 %v5536_v33, %v1647_v55 }
 0x4c6   :  { %v1696_v5 = vadd.f32 %v5549_v46, %v1668_v2  ;;  %v1649_v4 = vmul.f32 %v5538_v57, %v5403_v15  ;;  %v1650_v3 = vmul.f32 %v5538_v57, %v5441_v16  ;;  %v1701_v31 = vadd.f32 %v5549_v46, %v1673_v51 }
 0x4c7   :  { %v1765_v40 = vpack.c.bf16 %v1694_v42, %v1693_v8  ;;  %v1702_v49 = vadd.f32 %v5549_v46, %v1674_v60  ;;  %v1676_v43 = vmul.f32 %v5536_v33, %v1648_v47  ;;  %v1651_v39 = vmul.f32 %v5538_v57, %v5449_v41 }
 0x4c8   :  { %v1703_v45 = vadd.f32 %v5549_v46, %v1675_v13  ;;  %v1677_v52 = vmul.f32 %v5536_v33, %v1649_v4  ;;  %v1678_v62 = vmul.f32 %v5536_v33, %v1650_v3  ;;  %v1652_v15 = vmul.f32 %v5538_v57, %v5457_v36 }
 0x4c9   :  { %1953 = vmatmul.bf16.vlgmr.msrb.gmra.mxu3 %v1765_v40  ;;  %2022 = vmatmul.bf16.vlgmr.msrb.gmra.mxu0 %v1765_v40  ;;  %v1769_v50 = vpack.c.bf16 %v1702_v49, %v1701_v31  ;;  %v1704_v16 = vadd.f32 %v5549_v46, %v1676_v43  ;;  %v1679_v53 = vmul.f32 %v5536_v33, %v1651_v39 }
 0x4ca   :  { %2091 = vmatmul.bf16.vlgmr.msrb.gmra.mxu1 %v1765_v40  ;;  %v1653_v29 = vmul.f32 %v5538_v57, %v5465_v35  ;;  %v1705_v9 = vadd.f32 %v5549_v46, %v1677_v52  ;;  %v1706_v41 = vadd.f32 %v5549_v46, %v1678_v62  ;;  %v1680_v6 = vmul.f32 %v5536_v33, %v1652_v15 }
 0x4cb   :  { %v1654_v58 = vmul.f32 %v5538_v57, %v5470_v54  ;;  %v1770_v22 = vpack.c.bf16 %v1704_v16, %v1703_v45  ;;  %v1707_v36 = vadd.f32 %v5549_v46, %v1679_v53  ;;  %v1655_v8 = vmul.f32 %v5538_v57, %v5481_v61 }
 0x4cc   :  { %v1681_v14 = vmul.f32 %v5536_v33, %v1653_v29  ;;  %v1771_v42 = vpack.c.bf16 %v1706_v41, %v1705_v9  ;;  %v1708_v35 = vadd.f32 %v5549_v46, %v1680_v6  ;;  %v1656_v40 = vmul.f32 %v5538_v57, %v5486_v21 }
 0x4cd   :  { %v1682_v2 = vmul.f32 %v5536_v33, %v1654_v58  ;;  %v1683_v54 = vmul.f32 %v5536_v33, %v1655_v8  ;;  %v1657_v32 = vmul.f32 %v5538_v57, %v5497_v37  ;;  %v1658_v55 = vmul.f32 %v5538_v57, %v5502_v28 }
 0x4ce   :  { %v1709_v0 = vadd.f32 %v5549_v46, %v1681_v14  ;;  %v1772_v51 = vpack.c.bf16 %v1708_v35, %v1707_v36  ;;  %v1684_v60 = vmul.f32 %v5536_v33, %v1656_v40  ;;  %v1659_v47 = vmul.f32 %v5538_v57, %v5513_v59 }
 0x4cf   :  { %v1710_v61 = vadd.f32 %v5549_v46, %v1682_v2  ;;  %v1711_v21 = vadd.f32 %v5549_v46, %v1683_v54  ;;  %v1685_v13 = vmul.f32 %v5536_v33, %v1657_v32  ;;  %v1686_v4 = vmul.f32 %v5536_v33, %v1658_v55 }
 0x4d0   :  { %v1716_v3 = vadd.f32 %v5549_v46, %v1688_v12  ;;  %v1712_v31 = vadd.f32 %v5549_v46, %v1684_v60  ;;  %v1687_v28 = vmul.f32 %v5536_v33, %v1659_v47  ;;  %v1766_v45 = vpack.c.bf16 %v1696_v5, %v1695_v7 }
 0x4d1   :  { %v1773_v37 = vpack.c.bf16 %v1710_v61, %v1709_v0  ;;  %v1713_v49 = vadd.f32 %v5549_v46, %v1685_v13  ;;  %v1714_v43 = vadd.f32 %v5549_v46, %v1686_v4  ;;  %v1641_v12 = vmul.f32 %v5538_v57, %v5363_v18 }
 0x4d2   :  { %v5624_v39 = vpack.c.bf16 %v1712_v31, %v1711_v21  ;;  %v1715_v59 = vadd.f32 %v5549_v46, %v1687_v28  ;;  %v1642_v15 = vmul.f32 %v5538_v57, %v5368_v26  ;;  %v1643_v9 = vmul.f32 %v5538_v57, %v5373_v20  ;;  %v1809_v20 = vld [vmem:[%s7179_s15] sm:$0x7] }
 0x4d3   :  { %v5627_v52 = vpack.c.bf16 %v1714_v43, %v1713_v49  ;;  %v1669_v16 = vmul.f32 %v5536_v33, %v1641_v12  ;;  %v1644_v18 = vmul.f32 %v5538_v57, %v5378_v23 }
 0x4d4   :  { %v5629_v62 = vpack.c.bf16 %v1716_v3, %v1715_v59  ;;  %v1670_v53 = vmul.f32 %v5536_v33, %v1642_v15  ;;  %v1671_v26 = vmul.f32 %v5536_v33, %v1643_v9 }
 0x4d5   :  { %v1697_v29 = vadd.f32 %v5549_v46, %v1669_v16  ;;  %v1672_v41 = vmul.f32 %v5536_v33, %v1644_v18  ;;  %v5650_v33 = vperm.slane %v1809_v20, 1 }
 0x4d6   :  { %v1698_v7 = vadd.f32 %v5549_v46, %v1670_v53  ;;  %v1699_v6 = vadd.f32 %v5549_v46, %v1671_v26 }
 0x4d7   :  { %v1700_v58 = vadd.f32 %v5549_v46, %v1672_v41  ;;  %v5652_v46 = vperm.slane %v1809_v20, 2 }
 0x4d8   :  { %v1767_v5 = vpack.c.bf16 %v1698_v7, %v1697_v29 }
 0x4d9   :  { %1958 = vmatmul.bf16.gmra.mxu3 %v1766_v45  ;;  %2027 = vmatmul.bf16.gmra.mxu0 %v1766_v45  ;;  %v1768_v36 = vpack.c.bf16 %v1700_v58, %v1699_v6 }
 0x4da   :  { %2096 = vmatmul.bf16.gmra.mxu1 %v1766_v45 }
 0x4e9   :  { %1963 = vmatmul.bf16.gmra.mxu3 %v1767_v5  ;;  %2032 = vmatmul.bf16.gmra.mxu0 %v1767_v5 }
 0x4ea   :  { %2101 = vmatmul.bf16.gmra.mxu1 %v1767_v5 }
 0x4f9   :  { %1968 = vmatmul.bf16.gmra.mxu3 %v1768_v36  ;;  %2037 = vmatmul.bf16.gmra.mxu0 %v1768_v36 }
 0x4fa   :  { %2106 = vmatmul.bf16.gmra.mxu1 %v1768_v36 }
 0x509   :  { %1973 = vmatmul.bf16.gmra.mxu3 %v1769_v50  ;;  %2042 = vmatmul.bf16.gmra.mxu0 %v1769_v50 }
 0x50a   :  { %2111 = vmatmul.bf16.gmra.mxu1 %v1769_v50  ;;  %v5654_v50 = vperm.slane %v1809_v20, 0 }
 0x50c   :  { %7747 = vst [vmem:[#allocation42_spill] sm:$0xff] %v5654_v50 }
 0x519   :  { %1978 = vmatmul.bf16.gmra.mxu3 %v1770_v22  ;;  %2047 = vmatmul.bf16.gmra.mxu0 %v1770_v22 }
 0x51a   :  { %2116 = vmatmul.bf16.gmra.mxu1 %v1770_v22 }
 0x529   :  { %1983 = vmatmul.bf16.gmra.mxu3 %v1771_v42  ;;  %2052 = vmatmul.bf16.gmra.mxu0 %v1771_v42 }
 0x52a   :  { %2121 = vmatmul.bf16.gmra.mxu1 %v1771_v42 }
 0x539   :  { %1988 = vmatmul.bf16.gmra.mxu3 %v1772_v51  ;;  %2057 = vmatmul.bf16.gmra.mxu0 %v1772_v51 }
 0x53a   :  { %2126 = vmatmul.bf16.gmra.mxu1 %v1772_v51 }
 0x546   :  { %v2023_v23 = vpop.f32.mrf.mxu0 }
 0x547   :  { %v2092_v57 = vpop.f32.mrf.mxu1  ;;  %v5657_v22 = vadd.f32 %v2023_v23, %v5650_v33 }
 0x548   :  { %v5660_v14 = vadd.f32 %v2092_v57, %v5652_v46 }
 0x549   :  { %1993 = vmatmul.bf16.gmra.mxu3 %v1773_v37  ;;  %2062 = vmatmul.bf16.gmra.mxu0 %v1773_v37  ;;  %v7363_v2 = vmax.f32 %v5657_v22, 0.0 }
 0x54a   :  { %2131 = vmatmul.bf16.gmra.mxu1 %v1773_v37  ;;  %7748 = vst [vmem:[#allocation47_spill] sm:$0xff] %v5660_v14  ;;  %v7347_v54 = vmax.f32 %v5660_v14, 0.0 }
 0x54b   :  { %v2225_v61 = vsel %vm4016_vm5, %v7363_v2, 0.0 }
 0x54c   :  { %v1954_v8 = vpop.f32.mrf.mxu3  ;;  %v2226_v47 = vsel %vm4016_vm5, %v7347_v54, 0.0 }
 0x54d   :  { %v5663_v42 = vadd.f32 %v1954_v8, %v5654_v50 }
 0x54e   :  { %v2025_v35 = vpop.f32.mrf.mxu0 }
 0x54f   :  { %7749 = vst [vmem:[#allocation48_spill] sm:$0xff] %v5663_v42  ;;  %v5667_v40 = vadd.f32 %v2025_v35, %v5650_v33  ;;  %v2094_v0 = vpop.f32.mrf.mxu1  ;;  %v7339_v3 = vmax.f32 %v5663_v42, 0.0 }
 0x550   :  { %v5671_v32 = vadd.f32 %v2094_v0, %v5652_v46 }
 0x551   :  { %v7361_v55 = vmax.f32 %v5667_v40, 0.0  ;;  %v2224_v12 = vsel %vm4016_vm5, %v7339_v3, 0.0 }
 0x552   :  { %7750 = vst [vmem:[#allocation49_spill] sm:$0xff] %v5671_v32  ;;  %v7346_v51 = vmax.f32 %v5671_v32, 0.0 }
 0x553   :  { %v2228_v60 = vsel %vm4004_vm4, %v7361_v55, 0.0 }
 0x554   :  { %v2325_v21 = vadd.f32 %v2228_v60, %v2225_v61  ;;  %v2229_v13 = vsel %vm4004_vm4, %v7346_v51, 0.0  ;;  %v1956_v4 = vpop.f32.mrf.mxu3 }
 0x555   :  { %v2354_v37 = vadd.f32 %v2229_v13, %v2226_v47  ;;  %v5693_v31 = vadd.f32 %v1956_v4, %v5654_v50 }
 0x556   :  { %v2028_v28 = vpop.f32.mrf.mxu0 }
 0x557   :  { %7751 = vst [vmem:[#allocation50_spill] sm:$0xff] %v5693_v31  ;;  %v7338_v49 = vmax.f32 %v5693_v31, 0.0  ;;  %v5697_v43 = vadd.f32 %v2028_v28, %v5650_v33  ;;  %v2097_v59 = vpop.f32.mrf.mxu1 }
 0x558   :  { %v5700_v45 = vadd.f32 %v2097_v59, %v5652_v46 }
 0x559   :  { %v2227_v15 = vsel %vm4004_vm4, %v7338_v49, 0.0  ;;  %v7358_v16 = vmax.f32 %v5697_v43, 0.0  ;;  %1998 = vmatmul.bf16.gmra.mxu3 %v5624_v39  ;;  %2067 = vmatmul.bf16.gmra.mxu0 %v5624_v39 }
 0x55a   :  { %7752 = vst [vmem:[#allocation51_spill] sm:$0xff] %v5700_v45  ;;  %v2296_v53 = vadd.f32 %v2227_v15, %v2224_v12  ;;  %v7345_v29 = vmax.f32 %v5700_v45, 0.0  ;;  %2136 = vmatmul.bf16.gmra.mxu1 %v5624_v39 }
 0x55b   :  { %v2231_v7 = vsel %vm4021_vm6, %v7358_v16, 0.0 }
 0x55c   :  { %v2326_v5 = vadd.f32 %v2325_v21, %v2231_v7  ;;  %v2232_v9 = vsel %vm4021_vm6, %v7345_v29, 0.0  ;;  %v1959_v18 = vpop.f32.mrf.mxu3 }
 0x55d   :  { %v2355_v26 = vadd.f32 %v2354_v37, %v2232_v9  ;;  %v5724_v41 = vadd.f32 %v1959_v18, %v5654_v50 }
 0x55e   :  { %v2030_v6 = vpop.f32.mrf.mxu0 }
 0x55f   :  { %7753 = vst [vmem:[#allocation52_spill] sm:$0xff] %v5724_v41  ;;  %v7336_v58 = vmax.f32 %v5724_v41, 0.0  ;;  %v5728_v39 = vadd.f32 %v2030_v6, %v5650_v33  ;;  %v2099_v36 = vpop.f32.mrf.mxu1 }
 0x560   :  { %v5731_v20 = vadd.f32 %v2099_v36, %v5652_v46 }
 0x561   :  { %v2230_v23 = vsel %vm4021_vm6, %v7336_v58, 0.0  ;;  %v7357_v57 = vmax.f32 %v5728_v39, 0.0 }
 0x562   :  { %7754 = vst [vmem:[#allocation53_spill] sm:$0xff] %v5731_v20  ;;  %v2297_v8 = vadd.f32 %v2296_v53, %v2230_v23  ;;  %v7343_v35 = vmax.f32 %v5731_v20, 0.0 }
 0x563   :  { %v2234_v0 = vsel %vm4035_vm7, %v7357_v57, 0.0 }
 0x564   :  { %v2327_v61 = vadd.f32 %v2326_v5, %v2234_v0  ;;  %v2235_v60 = vsel %vm4035_vm7, %v7343_v35, 0.0  ;;  %v1961_v47 = vpop.f32.mrf.mxu3 }
 0x565   :  { %v2356_v21 = vadd.f32 %v2355_v26, %v2235_v60  ;;  %v5748_v13 = vadd.f32 %v1961_v47, %v5654_v50 }
 0x566   :  { %v2033_v4 = vpop.f32.mrf.mxu0 }
 0x567   :  { %7755 = vst [vmem:[#allocation54_spill] sm:$0xff] %v5748_v13  ;;  %v7335_v37 = vmax.f32 %v5748_v13, 0.0  ;;  %v5752_v28 = vadd.f32 %v2033_v4, %v5650_v33  ;;  %v2102_v59 = vpop.f32.mrf.mxu1 }
 0x568   :  { %v5755_v12 = vadd.f32 %v2102_v59, %v5652_v46 }
 0x569   :  { %v2233_v15 = vsel %vm4035_vm7, %v7335_v37, 0.0  ;;  %v7355_v53 = vmax.f32 %v5752_v28, 0.0  ;;  %2003 = vmatmul.bf16.gmra.mxu3 %v5627_v52  ;;  %2072 = vmatmul.bf16.gmra.mxu0 %v5627_v52 }
 0x56a   :  { %7756 = vst [vmem:[#allocation55_spill] sm:$0xff] %v5755_v12  ;;  %v2298_v7 = vadd.f32 %v2297_v8, %v2233_v15  ;;  %v7341_v5 = vmax.f32 %v5755_v12, 0.0  ;;  %2141 = vmatmul.bf16.gmra.mxu1 %v5627_v52 }
 0x56b   :  { %v2237_v9 = vsel %vm4053_vm8, %v7355_v53, 0.0 }
 0x56c   :  { %v2328_v18 = vadd.f32 %v2327_v61, %v2237_v9  ;;  %v2238_v26 = vsel %vm4053_vm8, %v7341_v5, 0.0  ;;  %v1964_v6 = vpop.f32.mrf.mxu3 }
 0x56d   :  { %v2357_v36 = vadd.f32 %v2356_v21, %v2238_v26  ;;  %v5775_v23 = vadd.f32 %v1964_v6, %v5654_v50 }
 0x56e   :  { %v2035_v8 = vpop.f32.mrf.mxu0 }
 0x56f   :  { %7757 = vst [vmem:[#allocation56_spill] sm:$0xff] %v5775_v23  ;;  %v7334_v0 = vmax.f32 %v5775_v23, 0.0  ;;  %v5779_v52 = vadd.f32 %v2035_v8, %v5650_v33  ;;  %v2104_v60 = vpop.f32.mrf.mxu1 }
 0x570   :  { %v5782_v47 = vadd.f32 %v2104_v60, %v5652_v46 }
 0x571   :  { %v2236_v61 = vsel %vm4053_vm8, %v7334_v0, 0.0  ;;  %v7352_v21 = vmax.f32 %v5779_v52, 0.0 }
 0x572   :  { %7758 = vst [vmem:[#allocation57_spill] sm:$0xff] %v5782_v47  ;;  %v2299_v4 = vadd.f32 %v2298_v7, %v2236_v61  ;;  %v7340_v59 = vmax.f32 %v5782_v47, 0.0 }
 0x573   :  { %v2240_v15 = vsel %vm4067_vm9, %v7352_v21, 0.0 }
 0x574   :  { %v2329_v9 = vadd.f32 %v2328_v18, %v2240_v15  ;;  %v2241_v26 = vsel %vm4067_vm9, %v7340_v59, 0.0  ;;  %v1966_v6 = vpop.f32.mrf.mxu3 }
 0x575   :  { %v2358_v8 = vadd.f32 %v2357_v36, %v2241_v26  ;;  %v5799_v60 = vadd.f32 %v1966_v6, %v5654_v50 }
 0x576   :  { %v2038_v0 = vpop.f32.mrf.mxu0 }
 0x577   :  { %7759 = vst [vmem:[#allocation58_spill] sm:$0xff] %v5799_v60  ;;  %v7337_v7 = vmax.f32 %v5799_v60, 0.0  ;;  %v5803_v61 = vadd.f32 %v2038_v0, %v5650_v33  ;;  %v2107_v37 = vpop.f32.mrf.mxu1  ;;  %v7778_v60 = vld [vmem:[#allocation35_spill] sm:$0xff] }
 0x578   :  { %v5806_v58 = vadd.f32 %v2107_v37, %v5652_v46 }
 0x579   :  { %v2239_v18 = vsel %vm4067_vm9, %v7337_v7, 0.0  ;;  %v7351_v36 = vmax.f32 %v5803_v61, 0.0  ;;  %2008 = vmatmul.bf16.gmra.mxu3 %v5629_v62  ;;  %2077 = vmatmul.bf16.gmra.mxu0 %v5629_v62 }
 0x57a   :  { %7760 = vst [vmem:[#allocation59_spill] sm:$0xff] %v5806_v58  ;;  %v2300_v15 = vadd.f32 %v2299_v4, %v2239_v18  ;;  %v7342_v26 = vmax.f32 %v5806_v58, 0.0  ;;  %2146 = vmatmul.bf16.gmra.mxu1 %v5629_v62 }
 0x57b   :  { %v2243_v37 = vsel %vm7761_vm11, %v7351_v36, 0.0 }
 0x57c   :  { %v2330_v0 = vadd.f32 %v2329_v9, %v2243_v37  ;;  %v2244_v6 = vsel %vm7761_vm11, %v7342_v26, 0.0  ;;  %v1969_v7 = vpop.f32.mrf.mxu3 }
 0x57d   :  { %v2359_v49 = vadd.f32 %v2358_v8, %v2244_v6  ;;  %v5826_v3 = vadd.f32 %v1969_v7, %v5654_v50 }
 0x57e   :  { %v2040_v4 = vpop.f32.mrf.mxu0 }
 0x57f   :  { %7762 = vst [vmem:[#allocation60_spill] sm:$0xff] %v5826_v3  ;;  %v7344_v18 = vmax.f32 %v5826_v3, 0.0  ;;  %v5830_v62 = vadd.f32 %v2040_v4, %v5650_v33  ;;  %v2109_v59 = vpop.f32.mrf.mxu1 }
 0x580   :  { %v5833_v5 = vadd.f32 %v2109_v59, %v5652_v46 }
 0x581   :  { %v2242_v9 = vsel %vm7761_vm11, %v7344_v18, 0.0  ;;  %v7349_v8 = vmax.f32 %v5830_v62, 0.0 }
 0x582   :  { %7763 = vst [vmem:[#allocation61_spill] sm:$0xff] %v5833_v5  ;;  %v2301_v37 = vadd.f32 %v2300_v15, %v2242_v9  ;;  %v7348_v7 = vmax.f32 %v5833_v5, 0.0 }
 0x583   :  { %v2246_v6 = vsel %vm7697_vm14, %v7349_v8, 0.0 }
 0x584   :  { %v2331_v4 = vadd.f32 %v2330_v0, %v2246_v6  ;;  %v2247_v59 = vsel %vm7697_vm14, %v7348_v7, 0.0  ;;  %v1971_v26 = vpop.f32.mrf.mxu3 }
 0x585   :  { %v2360_v35 = vadd.f32 %v2359_v49, %v2247_v59  ;;  %v5850_v18 = vadd.f32 %v1971_v26, %v5654_v50 }
 0x586   :  { %v2043_v29 = vpop.f32.mrf.mxu0 }
 0x587   :  { %7764 = vst [vmem:[#allocation62_spill] sm:$0xff] %v5850_v18  ;;  %v7350_v15 = vmax.f32 %v5850_v18, 0.0  ;;  %v5854_v9 = vadd.f32 %v2043_v29, %v5650_v33  ;;  %v2112_v51 = vpop.f32.mrf.mxu1 }
 0x588   :  { %v5857_v54 = vadd.f32 %v2112_v51, %v5652_v46 }
 0x589   :  { %v2245_v0 = vsel %vm7697_vm14, %v7350_v15, 0.0  ;;  %v7353_v49 = vmax.f32 %v5854_v9, 0.0 }
 0x58a   :  { %7765 = vst [vmem:[#allocation63_spill] sm:$0xff] %v5857_v54  ;;  %v2302_v6 = vadd.f32 %v2301_v37, %v2245_v0  ;;  %v7354_v26 = vmax.f32 %v5857_v54, 0.0 }
 0x58b   :  { %v2249_v29 = vsel %vm4111_vm12, %v7353_v49, 0.0 }
 0x58c   :  { %v2332_v59 = vadd.f32 %v2331_v4, %v2249_v29  ;;  %v2250_v51 = vsel %vm4111_vm12, %v7354_v26, 0.0  ;;  %v1974_v7 = vpop.f32.mrf.mxu3 }
 0x58d   :  { %v2361_v8 = vadd.f32 %v2360_v35, %v2250_v51  ;;  %v5874_v15 = vadd.f32 %v1974_v7, %v5654_v50 }
 0x58e   :  { %v2045_v36 = vpop.f32.mrf.mxu0 }
 0x58f   :  { %7766 = vst [vmem:[#allocation64_spill] sm:$0xff] %v5874_v15  ;;  %v7356_v37 = vmax.f32 %v5874_v15, 0.0  ;;  %v5878_v0 = vadd.f32 %v2045_v36, %v5650_v33  ;;  %v2114_v21 = vpop.f32.mrf.mxu1 }
 0x590   :  { %v5881_v49 = vadd.f32 %v2114_v21, %v5652_v46 }
 0x591   :  { %v2248_v4 = vsel %vm4111_vm12, %v7356_v37, 0.0  ;;  %v7359_v35 = vmax.f32 %v5878_v0, 0.0 }
 0x592   :  { %7767 = vst [vmem:[#allocation65_spill] sm:$0xff] %v5881_v49  ;;  %v2303_v29 = vadd.f32 %v2302_v6, %v2248_v4  ;;  %v7360_v7 = vmax.f32 %v5881_v49, 0.0 }
 0x593   :  { %v2252_v36 = vsel %vm4122_vm13, %v7359_v35, 0.0 }
 0x594   :  { %v2333_v51 = vadd.f32 %v2332_v59, %v2252_v36  ;;  %v2253_v21 = vsel %vm4122_vm13, %v7360_v7, 0.0  ;;  %v1976_v26 = vpop.f32.mrf.mxu3 }
 0x595   :  { %v2362_v53 = vadd.f32 %v2361_v8, %v2253_v21  ;;  %v5898_v37 = vadd.f32 %v1976_v26, %v5654_v50 }
 0x596   :  { %v2048_v57 = vpop.f32.mrf.mxu0 }
 0x597   :  { %7768 = vst [vmem:[#allocation66_spill] sm:$0xff] %v5898_v37  ;;  %v7362_v6 = vmax.f32 %v5898_v37, 0.0  ;;  %v5902_v4 = vadd.f32 %v2048_v57, %v5650_v33  ;;  %v2117_v16 = vpop.f32.mrf.mxu1 }
 0x598   :  { %v5905_v35 = vadd.f32 %v2117_v16, %v5652_v46 }
 0x599   :  { %v2251_v59 = vsel %vm4122_vm13, %v7362_v6, 0.0  ;;  %v7365_v8 = vmax.f32 %v5902_v4, 0.0 }
 0x59a   :  { %7769 = vst [vmem:[#allocation67_spill] sm:$0xff] %v5905_v35  ;;  %v2304_v36 = vadd.f32 %v2303_v29, %v2251_v59  ;;  %v7366_v26 = vmax.f32 %v5905_v35, 0.0 }
 0x59b   :  { %v2255_v57 = vsel %vm7770_vm0, %v7365_v8, 0.0 }
 0x59c   :  { %v2334_v21 = vadd.f32 %v2333_v51, %v2255_v57  ;;  %v2256_v16 = vsel %vm7770_vm0, %v7366_v26, 0.0  ;;  %v1979_v7 = vpop.f32.mrf.mxu3 }
 0x59d   :  { %v2363_v55 = vadd.f32 %v2362_v53, %v2256_v16  ;;  %v5922_v6 = vadd.f32 %v1979_v7, %v5654_v50 }
 0x59e   :  { %v2050_v2 = vpop.f32.mrf.mxu0 }
 0x59f   :  { %7771 = vst [vmem:[#allocation68_spill] sm:$0xff] %v5922_v6  ;;  %v7368_v29 = vmax.f32 %v5922_v6, 0.0  ;;  %v5926_v59 = vadd.f32 %v2050_v2, %v5650_v33  ;;  %v2119_v37 = vpop.f32.mrf.mxu1 }
 0x5a0   :  { %v5929_v8 = vadd.f32 %v2119_v37, %v5652_v46 }
 0x5a1   :  { %v2254_v51 = vsel %vm7770_vm0, %v7368_v29, 0.0  ;;  %v7371_v53 = vmax.f32 %v5926_v59, 0.0 }
 0x5a2   :  { %7772 = vst [vmem:[#allocation69_spill] sm:$0xff] %v5929_v8  ;;  %v2305_v57 = vadd.f32 %v2304_v36, %v2254_v51  ;;  %v7372_v7 = vmax.f32 %v5929_v8, 0.0 }
 0x5a3   :  { %v2258_v2 = vsel %vm7699_vm2, %v7371_v53, 0.0 }
 0x5a4   :  { %v2335_v16 = vadd.f32 %v2334_v21, %v2258_v2  ;;  %v2259_v37 = vsel %vm7699_vm2, %v7372_v7, 0.0  ;;  %v1981_v26 = vpop.f32.mrf.mxu3 }
 0x5a5   :  { %v2364_v6 = vadd.f32 %v2363_v55, %v2259_v37  ;;  %v5946_v29 = vadd.f32 %v1981_v26, %v5654_v50 }
 0x5a6   :  { %v2053_v15 = vpop.f32.mrf.mxu0 }
 0x5a7   :  { %7773 = vst [vmem:[#allocation70_spill] sm:$0xff] %v5946_v29  ;;  %v7374_v36 = vmax.f32 %v5946_v29, 0.0  ;;  %v5950_v51 = vadd.f32 %v2053_v15, %v5650_v33  ;;  %v2122_v18 = vpop.f32.mrf.mxu1 }
 0x5a8   :  { %v5953_v53 = vadd.f32 %v2122_v18, %v5652_v46 }
 0x5a9   :  { %v2257_v21 = vsel %vm7699_vm2, %v7374_v36, 0.0  ;;  %v7376_v55 = vmax.f32 %v5950_v51, 0.0  ;;  %vm7779_vm2 = vnez %v7778_v60 }
 0x5aa   :  { %7774 = vst [vmem:[#allocation71_spill] sm:$0xff] %v5953_v53  ;;  %v2306_v2 = vadd.f32 %v2305_v57, %v2257_v21  ;;  %v7377_v26 = vmax.f32 %v5953_v53, 0.0 }
 0x5ab   :  { %v2261_v15 = vsel %vm7775_vm3, %v7376_v55, 0.0 }
 0x5ac   :  { %v5965_v37 = vadd.f32 %v2335_v16, %v2261_v15  ;;  %v2262_v18 = vsel %vm7775_vm3, %v7377_v26, 0.0  ;;  %v1984_v7 = vpop.f32.mrf.mxu3 }
 0x5ad   :  { %v5971_v29 = vadd.f32 %v2364_v6, %v2262_v18  ;;  %v5974_v36 = vadd.f32 %v1984_v7, %v5654_v50 }
 0x5ae   :  { %v2055_v57 = vpop.f32.mrf.mxu0 }
 0x5af   :  { %7776 = vst [vmem:[#allocation72_spill] sm:$0xff] %v5974_v36  ;;  %v7384_v21 = vmax.f32 %v5974_v36, 0.0  ;;  %v5977_v3 = vpop.f32.mrf.mxu1  ;;  %v6042_v20 = vadd.f32 %v2055_v57, %v5650_v33 }
 0x5b1   :  { %v2260_v16 = vsel %vm7775_vm3, %v7384_v21, 0.0  ;;  %v7781_v21 = vld [vmem:[#allocation36_spill] sm:$0xff] }
 0x5b2   :  { %v2307_v15 = vadd.f32 %v2306_v2, %v2260_v16  ;;  %vm7782_vm3 = vnez %v7781_v21 }
 0x5b4   :  { %v1986_v55 = vpop.f32.mrf.mxu3 }
 0x5b5   :  { %v5984_v26 = vadd.f32 %v1986_v55, %v5654_v50 }
 0x5b6   :  { %v2058_v6 = vpop.f32.mrf.mxu0 }
 0x5b7   :  { %7777 = vst [vmem:[#allocation73_spill] sm:$0xff] %v5984_v26  ;;  %v7391_v18 = vmax.f32 %v5984_v26, 0.0  ;;  %v5987_v7 = vpop.f32.mrf.mxu1 }
 0x5b9   :  { %v2263_v23 = vsel %vm7779_vm2, %v7391_v18, 0.0 }
 0x5ba   :  { %v2308_v13 = vadd.f32 %v2307_v15, %v2263_v23 }
 0x5bc   :  { %v1989_v36 = vpop.f32.mrf.mxu3 }
 0x5bd   :  { %v5994_v41 = vadd.f32 %v1989_v36, %v5654_v50 }
 0x5be   :  { %v2060_v2 = vpop.f32.mrf.mxu0 }
 0x5bf   :  { %7780 = vst [vmem:[#allocation74_spill] sm:$0xff] %v5994_v41  ;;  %v7397_v16 = vmax.f32 %v5994_v41, 0.0  ;;  %v5997_v55 = vpop.f32.mrf.mxu1 }
 0x5c1   :  { %v2266_v31 = vsel %vm7782_vm3, %v7397_v16, 0.0 }
 0x5c2   :  { %v2309_v42 = vadd.f32 %v2308_v13, %v2266_v31 }
 0x5c4   :  { %v1991_v26 = vpop.f32.mrf.mxu3 }
 0x5c5   :  { %v6004_v11 = vadd.f32 %v1991_v26, %v5654_v50  ;;  %v7786_v26 = vld [vmem:[#allocation38_spill] sm:$0xff] }
 0x5c6   :  { %v2063_v23 = vpop.f32.mrf.mxu0  ;;  %vm7787_vm0 = vnez %v7786_v26  ;;  %v7994_v21 = vld [vmem:[#allocation74_spill] sm:$0xff] }
 0x5c7   :  { %7783 = vst [vmem:[#allocation75_spill] sm:$0xff] %v6004_v11  ;;  %v7402_v15 = vmax.f32 %v6004_v11, 0.0  ;;  %v6011_v8 = vpop.f32.mrf.mxu1 }
 0x5c9   :  { %v2269_v18 = vsel %vm7734_vm15, %v7402_v15, 0.0 }
 0x5ca   :  { %v2310_v53 = vadd.f32 %v2309_v42, %v2269_v18 }
 0x5cc   :  { %v1994_v41 = vpop.f32.mrf.mxu3 }
 0x5cd   :  { %v6014_v35 = vadd.f32 %v1994_v41, %v5654_v50  ;;  %v7789_v41 = vld [vmem:[#allocation39_spill] sm:$0xff] }
 0x5ce   :  { %v2065_v31 = vpop.f32.mrf.mxu0  ;;  %vm7790_vm13 = vnez %v7789_v41  ;;  %v7997_v60 = vld [vmem:[#allocation75_spill] sm:$0xff] }
 0x5cf   :  { %7785 = vst [vmem:[#allocation76_spill] sm:$0xff] %v6014_v35  ;;  %v7409_v13 = vmax.f32 %v6014_v35, 0.0  ;;  %v6021_v11 = vpop.f32.mrf.mxu1  ;;  %v6071_v34 = vadd.f32 %v2065_v31, %v5650_v33 }
 0x5d1   :  { %v2272_v16 = vsel %vm7787_vm0, %v7409_v13, 0.0 }
 0x5d2   :  { %v2311_v1 = vadd.f32 %v2310_v53, %v2272_v16 }
 0x5d4   :  { %v1996_v49 = vpop.f32.mrf.mxu3 }
 0x5d5   :  { %v6024_v42 = vadd.f32 %v1996_v49, %v5654_v50  ;;  %v7792_v49 = vld [vmem:[#allocation40_spill] sm:$0xff] }
 0x5d6   :  { %v2068_v18 = vpop.f32.mrf.mxu0  ;;  %7793 = vst [vmem:[#allocation40_spill] sm:$0xff] %v6042_v20 }
 0x5d7   :  { %7788 = vst [vmem:[#allocation77_spill] sm:$0xff] %v6024_v42  ;;  %v7414_v15 = vmax.f32 %v6024_v42, 0.0  ;;  %v6034_v53 = vpop.f32.mrf.mxu1 }
 0x5d9   :  { %v2275_v54 = vsel %vm7790_vm13, %v7414_v15, 0.0 }
 0x5da   :  { %v2312_v5 = vadd.f32 %v2311_v1, %v2275_v54 }
 0x5dc   :  { %v1999_v35 = vpop.f32.mrf.mxu3 }
 0x5dd   :  { %v6032_v58 = vadd.f32 %v1999_v35, %v5654_v50  ;;  %v6048_v35 = vadd.f32 %v2058_v6, %v5650_v33  ;;  %v6063_v6 = vadd.f32 %v2063_v23, %v5650_v33 }
 0x5de   :  { %v2070_v16 = vpop.f32.mrf.mxu0 }
 0x5df   :  { %7791 = vst [vmem:[#allocation78_spill] sm:$0xff] %v6032_v58  ;;  %v7417_v13 = vmax.f32 %v6032_v58, 0.0  ;;  %v6051_v45 = vpop.f32.mrf.mxu1  ;;  %v7426_v58 = vmax.f32 %v6042_v20, 0.0 }
 0x5e0   :  { %7795 = vst [vmem:[#allocation80_spill] sm:$0xff] %v6048_v35 }
 0x5e1   :  { %v2278_v47 = vsel %vm7740_vm1, %v7417_v13, 0.0  ;;  %v6055_v13 = vadd.f32 %v2060_v2, %v5650_v33  ;;  %v2264_v14 = vsel %vm7779_vm2, %v7426_v58, 0.0 }
 0x5e2   :  { %v2313_v12 = vadd.f32 %v2312_v5, %v2278_v47  ;;  %v7797_v5 = vld [vmem:[#allocation41_spill] sm:$0xff]  ;;  %v2337_v2 = vadd.f32 %v5965_v37, %v2264_v14  ;;  %v7804_v14 = vmax.f32 %v6063_v6, 0.0 }
 0x5e3   :  { %7796 = vst [vmem:[#allocation81_spill] sm:$0xff] %v6055_v13  ;;  %vm7798_vm12 = vnez %v7797_v5  ;;  %v7802_v31 = vmax.f32 %v6055_v13, 0.0 }
 0x5e4   :  { %v2001_v42 = vpop.f32.mrf.mxu3  ;;  %7799 = vst [vmem:[#allocation41_spill] sm:$0xff] %v6071_v34  ;;  %v2273_v37 = vsel %vm7787_vm0, %v7804_v14, 0.0 }
 0x5e5   :  { %v6045_v1 = vadd.f32 %v2001_v42, %v5654_v50  ;;  %v7429_v42 = vmax.f32 %v6048_v35, 0.0  ;;  %v6092_v35 = vadd.f32 %v2070_v16, %v5650_v33 }
 0x5e6   :  { %v2073_v54 = vpop.f32.mrf.mxu0 }
 0x5e7   :  { %7794 = vst [vmem:[#allocation79_spill] sm:$0xff] %v6045_v1  ;;  %v7425_v15 = vmax.f32 %v6045_v1, 0.0  ;;  %v2267_v23 = vsel %vm7782_vm3, %v7429_v42, 0.0  ;;  %v6106_v20 = vadd.f32 %v2073_v54, %v5650_v33 }
 0x5e8   :  { %7803 = vst [vmem:[#allocation84_spill] sm:$0xff] %v6092_v35  ;;  %v2338_v42 = vadd.f32 %v2337_v2, %v2267_v23 }
 0x5e9   :  { %v2281_v47 = vsel %vm7798_vm12, %v7425_v15, 0.0  ;;  %v6082_v15 = vadd.f32 %v2068_v18, %v5650_v33 }
 0x5ea   :  { %v2314_v57 = vadd.f32 %v2313_v12, %v2281_v47  ;;  %v6098_v47 = vpop.f32.mrf.mxu1 }
 0x5eb   :  { %7801 = vst [vmem:[#allocation83_spill] sm:$0xff] %v6082_v15 }
 0x5ec   :  { %v2004_v32 = vpop.f32.mrf.mxu3 }
 0x5ed   :  { %v6074_v1 = vadd.f32 %v2004_v32, %v5654_v50  ;;  %v2270_v32 = vsel %vm7734_vm15, %v7802_v31, 0.0  ;;  %v7436_v31 = vmax.f32 %v6082_v15, 0.0 }
 0x5ee   :  { %v2075_v12 = vpop.f32.mrf.mxu0  ;;  %v2339_v16 = vadd.f32 %v2338_v42, %v2270_v32  ;;  %v6139_v42 = vadd.f32 %v5977_v3, %v5652_v46 }
 0x5ef   :  { %7800 = vst [vmem:[#allocation82_spill] sm:$0xff] %v6074_v1  ;;  %v7434_v58 = vmax.f32 %v6074_v1, 0.0  ;;  %v7805_v1 = vmax.f32 %v6071_v34, 0.0  ;;  %v2279_v54 = vsel %vm7740_vm1, %v7436_v31, 0.0 }
 0x5f0   :  { %v2340_v14 = vadd.f32 %v2339_v16, %v2273_v37  ;;  %v7808_v16 = vld [vmem:[#allocation43_spill] sm:$0xff]  ;;  %7810 = vst [vmem:[#allocation86_spill] sm:$0xff] %v6139_v42 }
 0x5f1   :  { %v2284_v18 = vsel %vm7744_vm10, %v7434_v58, 0.0  ;;  %v2276_v2 = vsel %vm7790_vm13, %v7805_v1, 0.0  ;;  %vm7809_vm14 = vnez %v7808_v16 }
 0x5f2   :  { %v2315_v27 = vadd.f32 %v2314_v57, %v2284_v18  ;;  %v6114_v57 = vadd.f32 %v2075_v12, %v5650_v33  ;;  %v2341_v23 = vadd.f32 %v2340_v14, %v2276_v2  ;;  %v7807_v12 = vmax.f32 %v6092_v35, 0.0  ;;  %v2144_v37 = vpop.f32.mrf.mxu1 }
 0x5f3   :  { %v7811_v2 = vmax.f32 %v6106_v20, 0.0 }
 0x5f4   :  { %v2006_v13 = vpop.f32.mrf.mxu3  ;;  %v2342_v15 = vadd.f32 %v2341_v23, %v2279_v54 }
 0x5f5   :  { %v6117_v18 = vadd.f32 %v2006_v13, %v5654_v50  ;;  %v2282_v13 = vsel %vm7798_vm12, %v7807_v12, 0.0  ;;  %v2285_v14 = vsel %vm7744_vm10, %v7811_v2, 0.0 }
 0x5f6   :  { %v2078_v58 = vpop.f32.mrf.mxu0  ;;  %v2343_v35 = vadd.f32 %v2342_v15, %v2282_v13  ;;  %v6160_v15 = vadd.f32 %v5997_v55, %v5652_v46 }
 0x5f7   :  { %7806 = vst [vmem:[#allocation85_spill] sm:$0xff] %v6117_v18  ;;  %v7441_v32 = vmax.f32 %v6117_v18, 0.0  ;;  %v6126_v1 = vadd.f32 %v2078_v58, %v5650_v33  ;;  %v6148_v18 = vadd.f32 %v5987_v7, %v5652_v46  ;;  %v7816_v7 = vld [vmem:[#allocation44_spill] sm:$0xff] }
 0x5f8   :  { %v2344_v23 = vadd.f32 %v2343_v35, %v2285_v14  ;;  %7815 = vst [vmem:[#allocation89_spill] sm:$0xff] %v6160_v15  ;;  %vm7817_vm11 = vnez %v7816_v7  ;;  %v6173_v35 = vadd.f32 %v6011_v8, %v5652_v46  ;;  %v6189_v8 = vadd.f32 %v6021_v11, %v5652_v46 }
 0x5f9   :  { %v2287_v31 = vsel %vm7809_vm14, %v7441_v32, 0.0  ;;  %v7444_v12 = vmax.f32 %v6126_v1, 0.0  ;;  %7812 = vst [vmem:[#allocation87_spill] sm:$0xff] %v6148_v18  ;;  %v7813_v32 = vmax.f32 %v6114_v57, 0.0 }
 0x5fa   :  { %v2316_v58 = vadd.f32 %v2315_v27, %v2287_v31 }
 0x5fb   :  { %v2288_v3 = vsel %vm7809_vm14, %v7813_v32, 0.0  ;;  %v2291_v13 = vsel %vm7817_vm11, %v7444_v12, 0.0 }
 0x5fc   :  { %v2009_v34 = vpop.f32.mrf.mxu3 }
 0x5fd   :  { %v6155_v27 = vadd.f32 %v2009_v34, %v5654_v50  ;;  %v2345_v34 = vadd.f32 %v2344_v23, %v2288_v3 }
 0x5fe   :  { %v2080_v54 = vpop.f32.mrf.mxu0 }
 0x5ff   :  { %7814 = vst [vmem:[#allocation88_spill] sm:$0xff] %v6155_v27  ;;  %v7447_v2 = vmax.f32 %v6155_v27, 0.0  ;;  %v6168_v32 = vadd.f32 %v2080_v54, %v5650_v33  ;;  %v2346_v12 = vadd.f32 %v2345_v34, %v2291_v13  ;;  %v7818_v33 = vmax.f32 %v6139_v42, 0.0  ;;  %v7819_v54 = vld [vmem:[#allocation45_spill] sm:$0xff] }
 0x600   :  { %vm7820_vm9 = vnez %v7819_v54  ;;  %v7823_v27 = vmax.f32 %v6160_v15, 0.0 }
 0x601   :  { %v2290_v55 = vsel %vm7817_vm11, %v7447_v2, 0.0  ;;  %v7449_v14 = vmax.f32 %v6168_v32, 0.0  ;;  %v2265_v3 = vsel %vm7779_vm2, %v7818_v33, 0.0  ;;  %v2147_v33 = vpop.f32.mrf.mxu1 }
 0x602   :  { %v6180_v31 = vadd.f32 %v2316_v58, %v2290_v55  ;;  %v7821_v58 = vmax.f32 %v6148_v18, 0.0  ;;  %v6202_v55 = vadd.f32 %v6034_v53, %v5652_v46  ;;  %v2366_v11 = vadd.f32 %v5971_v29, %v2265_v3 }
 0x603   :  { %v2294_v2 = vsel %vm7820_vm9, %v7449_v14, 0.0  ;;  %v7825_v53 = vmax.f32 %v6173_v35, 0.0 }
 0x604   :  { %v2347_v50 = vadd.f32 %v2346_v12, %v2294_v2  ;;  %v2268_v13 = vsel %vm7782_vm3, %v7821_v58, 0.0  ;;  %7822 = vst [vmem:[#allocation90_spill] sm:$0xff] %v6202_v55  ;;  %v2271_v12 = vsel %vm7734_vm15, %v7823_v27, 0.0  ;;  %v7453_v2 = vmax.f32 %v6189_v8, 0.0 }
 0x605   :  { %v6212_v58 = vadd.f32 %v6051_v45, %v5652_v46  ;;  %v2367_v14 = vadd.f32 %v2366_v11, %v2268_v13  ;;  %v2274_v29 = vsel %vm7787_vm0, %v7825_v53, 0.0  ;;  %v7455_v3 = vmax.f32 %v6202_v55, 0.0 }
 0x606   :  { %v2348_v23 = vrot.slane %v2347_v50, 4  ;;  %v2277_v27 = vsel %vm7790_vm13, %v7453_v2, 0.0  ;;  %v6226_v45 = vadd.f32 %v6098_v47, %v5652_v46  ;;  %v6238_v2 = vadd.f32 %v2144_v37, %v5652_v46 }
 0x607   :  { %7824 = vst [vmem:[#allocation91_spill] sm:$0xff] %v6212_v58  ;;  %v2368_v18 = vadd.f32 %v2367_v14, %v2271_v12  ;;  %v7454_v42 = vmax.f32 %v6212_v58, 0.0  ;;  %v2280_v13 = vsel %vm7740_vm1, %v7455_v3, 0.0  ;;  %v6241_v47 = vadd.f32 %v2147_v33, %v5652_v46  ;;  %v7907_v58 = vld [vmem:[#allocation80_spill] sm:$0xff] }
 0x608   :  { %v2349_v34 = vadd.f32 %v2348_v23, %v2347_v50  ;;  %7826 = vst [vmem:[#allocation92_spill] sm:$0xff] %v6226_v45  ;;  %v7460_v53 = vmax.f32 %v6226_v45, 0.0  ;;  %v7830_v33 = vmax.f32 %v5657_v22, 0.0  ;;  %v7838_v22 = vmax.f32 %v5752_v28, 0.0 }
 0x609   :  { %v2369_v50 = vadd.f32 %v2368_v18, %v2274_v29  ;;  %v2283_v12 = vsel %vm7798_vm12, %v7454_v42, 0.0  ;;  %7827 = vst [vmem:[#allocation93_spill] sm:$0xff] %v6238_v2  ;;  %v7456_v42 = vmax.f32 %v6238_v2, 0.0  ;;  %v7458_v37 = vmax.f32 %v6241_v47, 0.0 }
 0x60a   :  { %v2350_v15 = vrot.slane %v2349_v34, 2  ;;  %7828 = vst [vmem:[#allocation94_spill] sm:$0xff] %v6241_v47  ;;  %v7846_v28 = vmax.f32 %v5854_v9, 0.0 }
 0x60b   :  { %v2370_v14 = vadd.f32 %v2369_v50, %v2277_v27  ;;  %v2286_v50 = vsel %vm7744_vm10, %v7460_v53, 0.0  ;;  %v2289_v9 = vsel %vm7809_vm14, %v7456_v42, 0.0  ;;  %vm7858_vm14 = vnez %v7570_v10 }
 0x60c   :  { %v2351_v23 = vadd.f32 %v2350_v15, %v2349_v34  ;;  %v2149_v34 = vpop.f32.mrf.mxu1 }
 0x60d   :  { %v2371_v18 = vadd.f32 %v2370_v14, %v2280_v13  ;;  %v6253_v3 = vadd.f32 %v2149_v34, %v5652_v46  ;;  %v7832_v13 = vmax.f32 %v5667_v40, 0.0  ;;  %v7840_v40 = vmax.f32 %v5779_v52, 0.0 }
 0x60e   :  { %v2352_v11 = vrot.slane %v2351_v23, 1  ;;  %v7848_v52 = vmax.f32 %v5878_v0, 0.0  ;;  %v7854_v0 = vmax.f32 %v5950_v51, 0.0 }
 0x60f   :  { %v2372_v29 = vadd.f32 %v2371_v18, %v2283_v12  ;;  %7829 = vst [vmem:[#allocation95_spill] sm:$0xff] %v6253_v3  ;;  %v7836_v18 = vmax.f32 %v5728_v39, 0.0  ;;  %v7844_v39 = vmax.f32 %v5830_v62, 0.0  ;;  %v7852_v62 = vmax.f32 %v5926_v59, 0.0 }
 0x610   :  { %v2353_v15 = vadd.f32 %v2352_v11, %v2351_v23  ;;  %v7834_v11 = vmax.f32 %v5697_v43, 0.0  ;;  %v7842_v43 = vmax.f32 %v5803_v61, 0.0  ;;  %v7850_v61 = vmax.f32 %v5902_v4, 0.0 }
 0x611   :  { %v2373_v4 = vadd.f32 %v2372_v29, %v2286_v50  ;;  %v2292_v59 = vsel %vm7817_vm11, %v7458_v37, 0.0  ;;  %vm7856_vm11 = vnez %v7566_v56 }
 0x612   :  { %v6244_v27 = vmul.f32 %v2353_v15, %v4335_v17 }
 0x614   :  { %v6258_v23 = vsub.f32 %v7830_v33, %v6244_v27  ;;  %v6263_v14 = vsub.f32 %v7832_v13, %v6244_v27  ;;  %v6268_v12 = vsub.f32 %v7834_v11, %v6244_v27  ;;  %v6273_v46 = vsub.f32 %v7836_v18, %v6244_v27 }
 0x615   :  { %v6278_v15 = vsub.f32 %v7838_v22, %v6244_v27  ;;  %v6283_v34 = vsub.f32 %v7840_v40, %v6244_v27  ;;  %v6288_v33 = vsub.f32 %v7842_v43, %v6244_v27  ;;  %v6293_v13 = vsub.f32 %v7844_v39, %v6244_v27 }
 0x616   :  { %7831 = vst [vmem:[#allocation96_spill] sm:$0xff] %v6258_v23  ;;  %v6298_v11 = vsub.f32 %v7846_v28, %v6244_v27  ;;  %v6303_v18 = vsub.f32 %v7848_v52, %v6244_v27  ;;  %v6308_v22 = vsub.f32 %v7850_v61, %v6244_v27  ;;  %v6313_v40 = vsub.f32 %v7852_v62, %v6244_v27 }
 0x617   :  { %7833 = vst [vmem:[#allocation97_spill] sm:$0xff] %v6263_v14  ;;  %v6322_v43 = vsub.f32 %v7854_v0, %v6244_v27  ;;  %v7457_v39 = vmax.f32 %v6253_v3, 0.0  ;;  %v2374_v28 = vadd.f32 %v2373_v4, %v2289_v9  ;;  %v2459_v51 = vsel %vm4016_vm5, %v6258_v23, 0.0 }
 0x618   :  { %7835 = vst [vmem:[#allocation98_spill] sm:$0xff] %v6268_v12  ;;  %v2462_v29 = vsel %vm4004_vm4, %v6263_v14, 0.0  ;;  %v2531_v50 = vmul.f32 %v2459_v51, %v2459_v51  ;;  %v2465_v9 = vsel %vm4021_vm6, %v6268_v12, 0.0  ;;  %v2468_v4 = vsel %vm4035_vm7, %v6273_v46, 0.0 }
 0x619   :  { %7837 = vst [vmem:[#allocation99_spill] sm:$0xff] %v6273_v46  ;;  %v2295_v52 = vsel %vm7820_vm9, %v7457_v39, 0.0  ;;  %v2375_v61 = vadd.f32 %v2374_v28, %v2292_v59  ;;  %v2534_v0 = vmul.f32 %v2462_v29, %v2462_v29  ;;  %v2537_v59 = vmul.f32 %v2465_v9, %v2465_v9 }
 0x61a   :  { %7839 = vst [vmem:[#allocation100_spill] sm:$0xff] %v6278_v15  ;;  %v2540_v39 = vmul.f32 %v2468_v4, %v2468_v4  ;;  %vm7855_vm9 = vnez %v7564_v44  ;;  %v2477_v9 = vsel %vm7856_vm11, %v6288_v33, 0.0  ;;  %v2483_v4 = vsel %vm7858_vm14, %v6298_v11, 0.0 }
 0x61b   :  { %7841 = vst [vmem:[#allocation101_spill] sm:$0xff] %v6283_v34  ;;  %v2376_v62 = vadd.f32 %v2375_v61, %v2295_v52  ;;  %v2631_v28 = vadd.f32 %v2534_v0, %v2531_v50  ;;  %v2471_v61 = vsel %vm4053_vm8, %v6278_v15, 0.0  ;;  %v2474_v29 = vsel %vm7855_vm9, %v6283_v34, 0.0 }
 0x61c   :  { %7843 = vst [vmem:[#allocation102_spill] sm:$0xff] %v6288_v33  ;;  %v2543_v53 = vmul.f32 %v2471_v61, %v2471_v61  ;;  %v2546_v50 = vmul.f32 %v2474_v29, %v2474_v29  ;;  %vm7857_vm8 = vnez %v7568_v63  ;;  %v7864_v33 = vld [vmem:[#allocation32_spill] sm:$0xff]  ;;  %v2555_v34 = vmul.f32 %v2483_v4, %v2483_v4 }
 0x61d   :  { %7845 = vst [vmem:[#allocation103_spill] sm:$0xff] %v6293_v13  ;;  %v2377_v42 = vrot.slane %v2376_v62, 4  ;;  %v2632_v37 = vadd.f32 %v2631_v28, %v2537_v59  ;;  %v2480_v0 = vsel %vm7857_vm8, %v6293_v13, 0.0  ;;  %v7859_v59 = vld [vmem:[#allocation31_spill] sm:$0xff]  ;;  %vm7865_vm14 = vnez %v7864_v33 }
 0x61e   :  { %7847 = vst [vmem:[#allocation104_spill] sm:$0xff] %v6298_v11  ;;  %vm7860_vm9 = vnez %v7859_v59  ;;  %v2552_v61 = vmul.f32 %v2480_v0, %v2480_v0  ;;  %v2489_v11 = vsel %vm7865_vm14, %v6308_v22, 0.0 }
 0x61f   :  { %7849 = vst [vmem:[#allocation105_spill] sm:$0xff] %v6303_v18  ;;  %v2378_v52 = vadd.f32 %v2377_v42, %v2376_v62  ;;  %v2633_v12 = vadd.f32 %v2632_v37, %v2540_v39  ;;  %v2486_v37 = vsel %vm7860_vm9, %v6303_v18, 0.0  ;;  %v2549_v39 = vmul.f32 %v2477_v9, %v2477_v9  ;;  %v7866_v9 = vld [vmem:[#allocation47_spill] sm:$0xff] }
 0x620   :  { %7851 = vst [vmem:[#allocation106_spill] sm:$0xff] %v6308_v22  ;;  %v2558_v15 = vmul.f32 %v2486_v37, %v2486_v37 }
 0x621   :  { %7853 = vst [vmem:[#allocation107_spill] sm:$0xff] %v6313_v40  ;;  %v2379_v51 = vrot.slane %v2378_v52, 2  ;;  %v2634_v42 = vadd.f32 %v2633_v12, %v2543_v53  ;;  %v7861_v12 = vld [vmem:[#allocation40_spill] sm:$0xff] }
 0x622   :  { %v7862_v29 = vmax.f32 %v7861_v12, 0.0  ;;  %v7875_v12 = vld [vmem:[#allocation53_spill] sm:$0xff] }
 0x623   :  { %v2380_v14 = vadd.f32 %v2379_v51, %v2378_v52  ;;  %v2635_v28 = vadd.f32 %v2634_v42, %v2546_v50  ;;  %v7869_v42 = vld [vmem:[#allocation49_spill] sm:$0xff]  ;;  %v7876_v4 = vmax.f32 %v7875_v12, 0.0 }
 0x624   :  { %v6369_v13 = vsub.f32 %v7862_v29, %v6244_v27  ;;  %v7887_v12 = vld [vmem:[#allocation61_spill] sm:$0xff] }
 0x625   :  { %v2381_v62 = vrot.slane %v2380_v14, 1  ;;  %v2636_v51 = vadd.f32 %v2635_v28, %v2549_v39  ;;  %v7872_v39 = vld [vmem:[#allocation51_spill] sm:$0xff] }
 0x626   :  { %7863 = vst [vmem:[#allocation31_spill] sm:$0xff] %v6369_v13  ;;  %v7873_v28 = vmax.f32 %v7872_v39, 0.0 }
 0x627   :  { %v2382_v52 = vadd.f32 %v2381_v62, %v2380_v14  ;;  %v2637_v18 = vadd.f32 %v2636_v51, %v2552_v61  ;;  %v7867_v14 = vmax.f32 %v7866_v9, 0.0  ;;  %v7870_v62 = vmax.f32 %v7869_v42, 0.0  ;;  %v7878_v61 = vld [vmem:[#allocation55_spill] sm:$0xff]  ;;  %v7881_v9 = vld [vmem:[#allocation57_spill] sm:$0xff] }
 0x628   :  { %v7879_v51 = vmax.f32 %v7878_v61, 0.0  ;;  %v7890_v61 = vld [vmem:[#allocation63_spill] sm:$0xff] }
 0x629   :  { %v6364_v53 = vmul.f32 %v2382_v52, %v4335_v17  ;;  %v2638_v22 = vadd.f32 %v2637_v18, %v2555_v34  ;;  %v7898_v34 = vld [vmem:[#allocation67_spill] sm:$0xff] }
 0x62a   :  { %v7899_v18 = vmax.f32 %v7898_v34, 0.0  ;;  %v7910_v34 = vld [vmem:[#allocation34_spill] sm:$0xff] }
 0x62b   :  { %v6377_v50 = vsub.f32 %v7867_v14, %v6364_v53  ;;  %v6382_v0 = vsub.f32 %v7870_v62, %v6364_v53  ;;  %v6387_v52 = vsub.f32 %v7873_v28, %v6364_v53  ;;  %v6392_v37 = vsub.f32 %v7876_v4, %v6364_v53  ;;  %v7884_v62 = vld [vmem:[#allocation59_spill] sm:$0xff] }
 0x62c   :  { %v6397_v29 = vsub.f32 %v7879_v51, %v6364_v53  ;;  %v7882_v14 = vmax.f32 %v7881_v9, 0.0  ;;  %v7885_v39 = vmax.f32 %v7884_v62, 0.0  ;;  %v7888_v4 = vmax.f32 %v7887_v12, 0.0  ;;  %v7893_v9 = vld [vmem:[#allocation65_spill] sm:$0xff] }
 0x62d   :  { %7868 = vst [vmem:[#allocation40_spill] sm:$0xff] %v6377_v50  ;;  %v7891_v51 = vmax.f32 %v7890_v61, 0.0  ;;  %v7896_v62 = vld [vmem:[#allocation33_spill] sm:$0xff]  ;;  %v6430_v12 = vsub.f32 %v7899_v18, %v6364_v53  ;;  %v2639_v45 = vadd.f32 %v2638_v22, %v2558_v15 }
 0x62e   :  { %7871 = vst [vmem:[#allocation32_spill] sm:$0xff] %v6382_v0  ;;  %v6402_v42 = vsub.f32 %v7882_v14, %v6364_v53  ;;  %v6407_v28 = vsub.f32 %v7885_v39, %v6364_v53  ;;  %v6412_v46 = vsub.f32 %v7888_v4, %v6364_v53  ;;  %v7894_v14 = vmax.f32 %v7893_v9, 0.0  ;;  %v7901_v4 = vld [vmem:[#allocation69_spill] sm:$0xff] }
 0x62f   :  { %7874 = vst [vmem:[#allocation47_spill] sm:$0xff] %v6387_v52  ;;  %v6417_v23 = vsub.f32 %v7891_v51, %v6364_v53  ;;  %vm7897_vm14 = vnez %v7896_v62  ;;  %v7902_v47 = vmax.f32 %v7901_v4, 0.0  ;;  %v7904_v51 = vld [vmem:[#allocation71_spill] sm:$0xff] }
 0x630   :  { %7877 = vst [vmem:[#allocation49_spill] sm:$0xff] %v6392_v37  ;;  %v6422_v3 = vsub.f32 %v7894_v14, %v6364_v53  ;;  %v2492_v39 = vsel %vm7897_vm14, %v6313_v40, 0.0  ;;  %v7905_v2 = vmax.f32 %v7904_v51, 0.0  ;;  %v2561_v14 = vmul.f32 %v2489_v11, %v2489_v11 }
 0x631   :  { %7880 = vst [vmem:[#allocation51_spill] sm:$0xff] %v6397_v29  ;;  %v6435_v61 = vsub.f32 %v7902_v47, %v6364_v53  ;;  %v7908_v40 = vmax.f32 %v7907_v58, 0.0  ;;  %vm7911_vm14 = vnez %v7910_v34  ;;  %v2564_v55 = vmul.f32 %v2492_v39, %v2492_v39  ;;  %v7912_v47 = vld [vmem:[#allocation81_spill] sm:$0xff]  ;;  %v8000_v34 = vld [vmem:[#allocation76_spill] sm:$0xff] }
 0x632   :  { %7883 = vst [vmem:[#allocation53_spill] sm:$0xff] %v6402_v42  ;;  %v6440_v9 = vsub.f32 %v7905_v2, %v6364_v53  ;;  %v2495_v18 = vsel %vm7911_vm14, %v6322_v43, 0.0  ;;  %v2640_v4 = vadd.f32 %v2639_v45, %v2561_v14  ;;  %v7913_v62 = vmax.f32 %v7912_v47, 0.0 }
 0x633   :  { %7886 = vst [vmem:[#allocation55_spill] sm:$0xff] %v6407_v28  ;;  %v6445_v17 = vsub.f32 %v7908_v40, %v6244_v27  ;;  %v2498_v2 = vsel %vm7779_vm2, %v6369_v13, 0.0  ;;  %v2567_v15 = vmul.f32 %v2495_v18, %v2495_v18  ;;  %v7915_v58 = vmax.f32 %v6063_v6, 0.0  ;;  %v7919_v6 = vld [vmem:[#allocation83_spill] sm:$0xff] }
 0x634   :  { %7889 = vst [vmem:[#allocation57_spill] sm:$0xff] %v6412_v46  ;;  %v2641_v11 = vadd.f32 %v2640_v4, %v2564_v55  ;;  %v2570_v40 = vmul.f32 %v2498_v2, %v2498_v2  ;;  %v7920_v47 = vmax.f32 %v7919_v6, 0.0 }
 0x635   :  { %7892 = vst [vmem:[#allocation59_spill] sm:$0xff] %v6417_v23  ;;  %v6461_v22 = vsub.f32 %v7915_v58, %v6244_v27  ;;  %v2501_v45 = vsel %vm7782_vm3, %v6445_v17, 0.0 }
 0x636   :  { %7895 = vst [vmem:[#allocation61_spill] sm:$0xff] %v6422_v3  ;;  %v2642_v39 = vadd.f32 %v2641_v11, %v2567_v15  ;;  %v2573_v18 = vmul.f32 %v2501_v45, %v2501_v45  ;;  %v6477_v58 = vsub.f32 %v7920_v47, %v6244_v27  ;;  %v2460_v15 = vsel %vm4016_vm5, %v6377_v50, 0.0 }
 0x637   :  { %7900 = vst [vmem:[#allocation63_spill] sm:$0xff] %v6430_v12  ;;  %v2507_v2 = vsel %vm7787_vm0, %v6461_v22, 0.0  ;;  %v2463_v11 = vsel %vm4004_vm4, %v6382_v0, 0.0  ;;  %v7923_v50 = vmax.f32 %v6106_v20, 0.0  ;;  %v7926_v20 = vmax.f32 %v6126_v1, 0.0 }
 0x638   :  { %7903 = vst [vmem:[#allocation65_spill] sm:$0xff] %v6435_v61  ;;  %v6453_v61 = vsub.f32 %v7913_v62, %v6244_v27  ;;  %v7917_v62 = vld [vmem:[#allocation41_spill] sm:$0xff]  ;;  %v2643_v4 = vadd.f32 %v2642_v39, %v2570_v40  ;;  %v7921_v40 = vld [vmem:[#allocation84_spill] sm:$0xff]  ;;  %v2579_v47 = vmul.f32 %v2507_v2, %v2507_v2  ;;  %v2466_v2 = vsel %vm4021_vm6, %v6387_v52, 0.0 }
 0x639   :  { %7906 = vst [vmem:[#allocation67_spill] sm:$0xff] %v6440_v9  ;;  %v7918_v51 = vmax.f32 %v7917_v62, 0.0  ;;  %v7922_v39 = vmax.f32 %v7921_v40, 0.0  ;;  %v6499_v13 = vsub.f32 %v7923_v50, %v6244_v27  ;;  %v6515_v50 = vsub.f32 %v7926_v20, %v6244_v27  ;;  %v7930_v20 = vld [vmem:[#allocation42_spill] sm:$0xff] }
 0x63a   :  { %7909 = vst [vmem:[#allocation69_spill] sm:$0xff] %v6445_v17  ;;  %v2504_v55 = vsel %vm7734_vm15, %v6453_v61, 0.0  ;;  %v2644_v45 = vadd.f32 %v2643_v4, %v2573_v18  ;;  %v2535_v17 = vmul.f32 %v2463_v11, %v2463_v11  ;;  %v2513_v4 = vsel %vm7740_vm1, %v6477_v58, 0.0 }
 0x63b   :  { %7914 = vst [vmem:[#allocation71_spill] sm:$0xff] %v6453_v61  ;;  %v6469_v14 = vsub.f32 %v7918_v51, %v6244_v27  ;;  %v2576_v62 = vmul.f32 %v2504_v55, %v2504_v55  ;;  %v6491_v51 = vsub.f32 %v7922_v39, %v6244_v27  ;;  %v2532_v61 = vmul.f32 %v2460_v15, %v2460_v15 }
 0x63c   :  { %7916 = vst [vmem:[#allocation80_spill] sm:$0xff] %v6461_v22  ;;  %v7925_v55 = vmax.f32 %v6114_v57, 0.0  ;;  %v7927_v57 = vmax.f32 %v6168_v32, 0.0  ;;  %v2469_v39 = vsel %vm4035_vm7, %v6392_v37, 0.0  ;;  %v2519_v1 = vsel %vm7744_vm10, %v6499_v13, 0.0 }
 0x63d   :  { %v2510_v6 = vsel %vm7790_vm13, %v6469_v14, 0.0  ;;  %v2645_v22 = vadd.f32 %v2644_v45, %v2576_v62  ;;  %7924 = vst [vmem:[#allocation81_spill] sm:$0xff] %v6499_v13  ;;  %v2011_v62 = vpop.f32.mrf.mxu3  ;;  %v2516_v40 = vsel %vm7798_vm12, %v6491_v51, 0.0  ;;  %vm7928_vm6 = vnez %v7808_v16 }
 0x63e   :  { %v6504_v18 = vsub.f32 %v7925_v55, %v6244_v27  ;;  %v2582_v15 = vmul.f32 %v2510_v6, %v2510_v6  ;;  %v6520_v45 = vsub.f32 %v7927_v57, %v6244_v27  ;;  %v2660_v55 = vadd.f32 %v2535_v17, %v2532_v61 }
 0x63f   :  { %v2646_v11 = vadd.f32 %v2645_v22, %v2579_v47  ;;  %v2585_v22 = vmul.f32 %v2513_v4, %v2513_v4  ;;  %v2538_v47 = vmul.f32 %v2466_v2, %v2466_v2  ;;  %vm7929_vm4 = vnez %v7562_v38 }
 0x640   :  { %v2522_v32 = vsel %vm7928_vm6, %v6504_v18, 0.0  ;;  %v2472_v27 = vsel %vm7929_vm4, %v6397_v29, 0.0  ;;  %v6538_v57 = vadd.f32 %v2011_v62, %v7930_v20  ;;  %v2588_v37 = vmul.f32 %v2516_v40, %v2516_v40 }
 0x641   :  { %v2647_v6 = vadd.f32 %v2646_v11, %v2582_v15  ;;  %v2541_v15 = vmul.f32 %v2469_v39, %v2469_v39  ;;  %v2661_v2 = vadd.f32 %v2660_v55, %v2538_v47  ;;  %vm7931_vm7 = vnez %v7816_v7 }
 0x642   :  { %v2525_v17 = vsel %vm7931_vm7, %v6515_v50, 0.0  ;;  %vm7932_vm5 = vnez %v7564_v44  ;;  %v7502_v11 = vmax.f32 %v6538_v57, 0.0  ;;  %v2591_v52 = vmul.f32 %v2519_v1, %v2519_v1 }
 0x643   :  { %v2648_v4 = vadd.f32 %v2647_v6, %v2585_v22  ;;  %v2475_v61 = vsel %vm7932_vm5, %v6402_v42, 0.0  ;;  %v2544_v29 = vmul.f32 %v2472_v27, %v2472_v27  ;;  %v2662_v13 = vadd.f32 %v2661_v2, %v2541_v15 }
 0x644   :  { %vm7933_vm4 = vnez %v7819_v54  ;;  %v2594_v40 = vmul.f32 %v2522_v32, %v2522_v32  ;;  %v2478_v39 = vsel %vm7856_vm11, %v6407_v28, 0.0  ;;  %v2547_v47 = vmul.f32 %v2475_v61, %v2475_v61  ;;  %v8033_v54 = vld [vmem:[#allocation97_spill] sm:$0xff] }
 0x645   :  { %v2649_v0 = vadd.f32 %v2648_v4, %v2588_v37  ;;  %v2528_v62 = vsel %vm7933_vm4, %v6520_v45, 0.0  ;;  %v2293_v22 = vsel %vm7933_vm4, %v7502_v11, 0.0  ;;  %v2663_v55 = vadd.f32 %v2662_v13, %v2544_v29 }
 0x646   :  { %v2318_v37 = vadd.f32 %v6180_v31, %v2293_v22  ;;  %v2597_v1 = vmul.f32 %v2525_v17, %v2525_v17  ;;  %v2481_v27 = vsel %vm7857_vm8, %v6412_v46, 0.0  ;;  %v2550_v20 = vmul.f32 %v2478_v39, %v2478_v39  ;;  %v7935_v39 = vld [vmem:[#allocation86_spill] sm:$0xff] }
 0x647   :  { %v2650_v6 = vadd.f32 %v2649_v0, %v2591_v52  ;;  %v2664_v4 = vadd.f32 %v2663_v55, %v2547_v47  ;;  %v2600_v2 = vmul.f32 %v2528_v62, %v2528_v62  ;;  %vm7934_vm11 = vnez %v7570_v10 }
 0x648   :  { %v2319_v15 = vrot.slane %v2318_v37, 4  ;;  %v2484_v28 = vsel %vm7934_vm11, %v6417_v23, 0.0  ;;  %v2553_v0 = vmul.f32 %v2481_v27, %v2481_v27  ;;  %v2487_v31 = vsel %vm7860_vm9, %v6422_v3, 0.0  ;;  %v7959_v3 = vld [vmem:[#allocation50_spill] sm:$0xff] }
 0x649   :  { %v2651_v32 = vadd.f32 %v2650_v6, %v2594_v40  ;;  %v2665_v52 = vadd.f32 %v2664_v4, %v2550_v20  ;;  %v2556_v17 = vmul.f32 %v2484_v28, %v2484_v28  ;;  %v7936_v22 = vmax.f32 %v7935_v39, 0.0  ;;  %v7938_v6 = vld [vmem:[#allocation87_spill] sm:$0xff]  ;;  %v7949_v39 = vld [vmem:[#allocation65_spill] sm:$0xff] }
 0x64a   :  { %v2320_v13 = vadd.f32 %v2319_v15, %v2318_v37  ;;  %v7939_v47 = vmax.f32 %v7938_v6, 0.0  ;;  %v7941_v37 = vld [vmem:[#allocation89_spill] sm:$0xff]  ;;  %vm7944_vm9 = vnez %v7864_v33  ;;  %v7945_v15 = vmax.f32 %v6173_v35, 0.0 }
 0x64b   :  { %v2652_v11 = vadd.f32 %v2651_v32, %v2597_v1  ;;  %v2666_v61 = vadd.f32 %v2665_v52, %v2553_v0  ;;  %v6570_v62 = vsub.f32 %v7936_v22, %v6364_v53  ;;  %v7942_v1 = vmax.f32 %v7941_v37, 0.0  ;;  %v7950_v22 = vld [vmem:[#allocation33_spill] sm:$0xff] }
 0x64c   :  { %v2321_v40 = vrot.slane %v2320_v13, 2  ;;  %v6575_v55 = vsub.f32 %v7939_v47, %v6364_v53  ;;  %v2490_v28 = vsel %vm7944_vm9, %v6430_v12, 0.0  ;;  %v2559_v32 = vmul.f32 %v2487_v31, %v2487_v31 }
 0x64d   :  { %v2653_v29 = vadd.f32 %v2652_v11, %v2600_v2  ;;  %7937 = vst [vmem:[#allocation41_spill] sm:$0xff] %v6570_v62  ;;  %v6580_v27 = vsub.f32 %v7942_v1, %v6364_v53  ;;  %v2667_v20 = vadd.f32 %v2666_v61, %v2556_v17  ;;  %v6588_v2 = vsub.f32 %v7945_v15, %v6364_v53 }
 0x64e   :  { %7940 = vst [vmem:[#allocation83_spill] sm:$0xff] %v6575_v55  ;;  %v2322_v4 = vadd.f32 %v2321_v40, %v2320_v13  ;;  %v7947_v0 = vmax.f32 %v6189_v8, 0.0  ;;  %vm7951_vm11 = vnez %v7950_v22  ;;  %v2562_v37 = vmul.f32 %v2490_v28, %v2490_v28 }
 0x64f   :  { %7943 = vst [vmem:[#allocation84_spill] sm:$0xff] %v6580_v27  ;;  %v2654_v11 = vrot.slane %v2653_v29, 4  ;;  %v2493_v6 = vsel %vm7951_vm11, %v7949_v39, 0.0  ;;  %v2668_v1 = vadd.f32 %v2667_v20, %v2559_v32  ;;  %v2496_v13 = vsel %vm7911_vm14, %v6440_v9, 0.0  ;;  %v7955_v9 = vld [vmem:[#allocation46_spill] sm:$0xff] }
 0x650   :  { %7946 = vst [vmem:[#allocation42_spill] sm:$0xff] %v6588_v2  ;;  %v6593_v52 = vsub.f32 %v7947_v0, %v6364_v53  ;;  %v2323_v31 = vrot.slane %v2322_v4, 1  ;;  %v2499_v35 = vsel %vm7779_vm2, %v6570_v62, 0.0  ;;  %v2502_v8 = vsel %vm7782_vm3, %v6575_v55, 0.0 }
 0x651   :  { %v2655_v47 = vadd.f32 %v2654_v11, %v2653_v29  ;;  %v2505_v17 = vsel %vm7734_vm15, %v6580_v27, 0.0  ;;  %v2565_v61 = vmul.f32 %v2493_v6, %v2493_v6  ;;  %v2669_v40 = vadd.f32 %v2668_v1, %v2562_v37  ;;  %v7952_v11 = vld [vmem:[#allocation90_spill] sm:$0xff] }
 0x652   :  { %7948 = vst [vmem:[#allocation86_spill] sm:$0xff] %v6593_v52  ;;  %v2324_v28 = vadd.f32 %v2323_v31, %v2322_v4  ;;  %v7953_v32 = vmax.f32 %v7952_v11, 0.0  ;;  %v2508_v15 = vsel %vm7787_vm0, %v6588_v2, 0.0  ;;  %v2568_v62 = vmul.f32 %v2496_v13, %v2496_v13  ;;  %v7962_v13 = vld [vmem:[#allocation52_spill] sm:$0xff] }
 0x653   :  { %v2656_v29 = vrot.slane %v2655_v47, 2  ;;  %v2670_v55 = vadd.f32 %v2669_v40, %v2565_v61  ;;  %v2511_v6 = vsel %vm7790_vm13, %v6593_v52, 0.0  ;;  %v2571_v37 = vmul.f32 %v2499_v35, %v2499_v35  ;;  %v7965_v40 = vld [vmem:[#allocation54_spill] sm:$0xff]  ;;  %v7968_v35 = vld [vmem:[#allocation56_spill] sm:$0xff] }
 0x654   :  { %v6613_v20 = vsub.f32 %v7953_v32, %v6364_v53  ;;  %v2383_v39 = vmul.f32 %v2324_v28, %v7955_v9  ;;  %v2574_v4 = vmul.f32 %v2502_v8, %v2502_v8  ;;  %v2577_v1 = vmul.f32 %v2505_v17, %v2505_v17  ;;  %v7956_v32 = vld [vmem:[#allocation48_spill] sm:$0xff] }
 0x655   :  { %v2657_v0 = vadd.f32 %v2656_v29, %v2655_v47  ;;  %v2671_v11 = vadd.f32 %v2670_v55, %v2568_v62  ;;  %v7957_v27 = vmax.f32 %v7956_v32, 0.0  ;;  %v7960_v2 = vmax.f32 %v7959_v3, 0.0  ;;  %v7971_v62 = vld [vmem:[#allocation58_spill] sm:$0xff] }
 0x656   :  { %7954 = vst [vmem:[#allocation87_spill] sm:$0xff] %v6613_v20  ;;  %v7963_v29 = vmax.f32 %v7962_v13, 0.0  ;;  %v7966_v28 = vmax.f32 %v7965_v40, 0.0  ;;  %v7969_v8 = vmax.f32 %v7968_v35, 0.0  ;;  %v7972_v55 = vmax.f32 %v7971_v62, 0.0  ;;  %v7977_v13 = vld [vmem:[#allocation62_spill] sm:$0xff] }
 0x657   :  { %v2658_v31 = vrot.slane %v2657_v0, 1  ;;  %v6624_v12 = vsub.f32 %v7957_v27, %v2383_v39  ;;  %v6628_v47 = vsub.f32 %v7960_v2, %v2383_v39  ;;  %v2672_v3 = vadd.f32 %v2671_v11, %v2571_v37  ;;  %v7974_v2 = vld [vmem:[#allocation60_spill] sm:$0xff]  ;;  %v7982_v35 = vld [vmem:[#allocation66_spill] sm:$0xff] }
 0x658   :  { %v6632_v61 = vsub.f32 %v7963_v29, %v2383_v39  ;;  %v6636_v52 = vsub.f32 %v7966_v28, %v2383_v39  ;;  %v6640_v17 = vsub.f32 %v7969_v8, %v2383_v39  ;;  %v6644_v27 = vsub.f32 %v7972_v55, %v2383_v39  ;;  %v7980_v40 = vld [vmem:[#allocation64_spill] sm:$0xff]  ;;  %v7986_v37 = vld [vmem:[#allocation70_spill] sm:$0xff] }
 0x659   :  { %7958 = vst [vmem:[#allocation89_spill] sm:$0xff] %v6624_v12  ;;  %v2659_v32 = vadd.f32 %v2658_v31, %v2657_v0  ;;  %v7975_v23 = vmax.f32 %v7974_v2, 0.0  ;;  %v7978_v29 = vmax.f32 %v7977_v13, 0.0  ;;  %v7981_v28 = vmax.f32 %v7980_v40, 0.0  ;;  %v7984_v62 = vld [vmem:[#allocation68_spill] sm:$0xff] }
 0x65a   :  { %7961 = vst [vmem:[#allocation33_spill] sm:$0xff] %v6628_v47  ;;  %v7983_v8 = vmax.f32 %v7982_v35, 0.0  ;;  %v7985_v55 = vmax.f32 %v7984_v62, 0.0  ;;  %v7987_v31 = vmax.f32 %v7986_v37, 0.0  ;;  %v2673_v2 = vadd.f32 %v2672_v3, %v2574_v4  ;;  %v7988_v13 = vld [vmem:[#allocation72_spill] sm:$0xff] }
 0x65b   :  { %7964 = vst [vmem:[#allocation90_spill] sm:$0xff] %v6632_v61  ;;  %v6648_v46 = vsub.f32 %v7975_v23, %v2383_v39  ;;  %v6652_v41 = vsub.f32 %v7978_v29, %v2383_v39  ;;  %v6656_v42 = vsub.f32 %v7981_v28, %v2383_v39  ;;  %v2690_v11 = vmul.f32 %v2659_v32, %v7955_v9  ;;  %v7991_v28 = vld [vmem:[#allocation73_spill] sm:$0xff] }
 0x65c   :  { %7967 = vst [vmem:[#allocation46_spill] sm:$0xff] %v6636_v52  ;;  %v6660_v26 = vsub.f32 %v7983_v8, %v2383_v39  ;;  %v6664_v0 = vsub.f32 %v7985_v55, %v2383_v39  ;;  %v6668_v23 = vsub.f32 %v7987_v31, %v2383_v39  ;;  %v7989_v29 = vmax.f32 %v7988_v13, 0.0 }
 0x65d   :  { %7970 = vst [vmem:[#allocation48_spill] sm:$0xff] %v6640_v17  ;;  %v7992_v36 = vmax.f32 %v7991_v28, 0.0  ;;  %v2580_v8 = vmul.f32 %v2508_v15, %v2508_v15  ;;  %v7995_v62 = vmax.f32 %v7994_v21, 0.0  ;;  %v7998_v37 = vmax.f32 %v7997_v60, 0.0  ;;  %v8006_v21 = vld [vmem:[#allocation79_spill] sm:$0xff]  ;;  %v8008_v60 = vld [vmem:[#allocation82_spill] sm:$0xff] }
 0x65e   :  { %7973 = vst [vmem:[#allocation50_spill] sm:$0xff] %v6644_v27  ;;  %v6673_v40 = vsub.f32 %v7989_v29, %v2383_v39  ;;  %v8001_v32 = vmax.f32 %v8000_v34, 0.0  ;;  %v2693_v3 = vadd.f32 1e-05, %v2690_v11  ;;  %v2674_v13 = vadd.f32 %v2673_v2, %v2577_v1  ;;  %v8002_v29 = vld [vmem:[#allocation77_spill] sm:$0xff]  ;;  %v8013_v1 = vld [vmem:[#allocation88_spill] sm:$0xff] }
 0x65f   :  { %7976 = vst [vmem:[#allocation52_spill] sm:$0xff] %v6648_v46  ;;  %v6677_v35 = vsub.f32 %v7992_v36, %v2383_v39  ;;  %v6681_v55 = vsub.f32 %v7995_v62, %v2383_v39  ;;  %v6685_v31 = vsub.f32 %v7998_v37, %v2383_v39  ;;  %v8004_v36 = vld [vmem:[#allocation78_spill] sm:$0xff]  ;;  %v8007_v62 = vmax.f32 %v8006_v21, 0.0  ;;  %v8010_v34 = vld [vmem:[#allocation85_spill] sm:$0xff] }
 0x660   :  { %7979 = vst [vmem:[#allocation54_spill] sm:$0xff] %v6652_v41  ;;  %v6689_v4 = vsub.f32 %v8001_v32, %v2383_v39  ;;  %v8005_v15 = vmax.f32 %v8004_v36, 0.0  ;;  %v8009_v37 = vmax.f32 %v8008_v60, 0.0  ;;  %v8011_v32 = vmax.f32 %v8010_v34, 0.0 }
 0x661   :  { %7990 = vst [vmem:[#allocation56_spill] sm:$0xff] %v6673_v40  ;;  %v8003_v40 = vmax.f32 %v8002_v29, 0.0  ;;  %v8014_v2 = vmax.f32 %v8013_v1, 0.0  ;;  %3492 = vrsqrt.f32 %v2693_v3  ;;  %v2675_v29 = vadd.f32 %v2674_v13, %v2580_v8 }
 0x662   :  { %7993 = vst [vmem:[#allocation58_spill] sm:$0xff] %v6677_v35  ;;  %v6697_v35 = vsub.f32 %v8005_v15, %v2383_v39  ;;  %v6709_v11 = vsub.f32 %v8011_v32, %v2383_v39  ;;  %v8016_v36 = vmax.f32 %v6538_v57, 0.0  ;;  %v2583_v21 = vmul.f32 %v2511_v6, %v2511_v6 }
 0x663   :  { %7996 = vst [vmem:[#allocation60_spill] sm:$0xff] %v6681_v55  ;;  %v6693_v28 = vsub.f32 %v8003_v40, %v2383_v39  ;;  %v6701_v55 = vsub.f32 %v8007_v62, %v2383_v39  ;;  %v6713_v40 = vsub.f32 %v8014_v2, %v2383_v39  ;;  %v8018_v62 = vld [vmem:[#allocation91_spill] sm:$0xff]  ;;  %v2514_v34 = vsel %vm7740_vm1, %v6613_v20, 0.0 }
 0x664   :  { %7999 = vst [vmem:[#allocation62_spill] sm:$0xff] %v6685_v31  ;;  %v6705_v31 = vsub.f32 %v8009_v37, %v2383_v39  ;;  %v6717_v15 = vsub.f32 %v8016_v36, %v2383_v39  ;;  %v8019_v60 = vmax.f32 %v8018_v62, 0.0  ;;  %v2676_v32 = vadd.f32 %v2675_v29, %v2583_v21 }
 0x665   :  { %8012 = vst [vmem:[#allocation64_spill] sm:$0xff] %v6709_v11  ;;  %v2586_v1 = vmul.f32 %v2514_v34, %v2514_v34 }
 0x666   :  { %8015 = vst [vmem:[#allocation66_spill] sm:$0xff] %v6713_v40  ;;  %v6722_v37 = vsub.f32 %v8019_v60, %v6364_v53  ;;  %v8021_v40 = vld [vmem:[#allocation92_spill] sm:$0xff]  ;;  %v8024_v60 = vld [vmem:[#allocation93_spill] sm:$0xff] }
 0x667   :  { %8017 = vst [vmem:[#allocation68_spill] sm:$0xff] %v6717_v15  ;;  %v3493_v2 = vpop.eup %3492  ;;  %v8022_v8 = vmax.f32 %v8021_v40, 0.0  ;;  %v2677_v6 = vadd.f32 %v2676_v32, %v2586_v1  ;;  %v8025_v15 = vmax.f32 %v8024_v60, 0.0  ;;  %v8028_v1 = vld [vmem:[#allocation95_spill] sm:$0xff] }
 0x668   :  { %8020 = vst [vmem:[#allocation70_spill] sm:$0xff] %v6722_v37  ;;  %v2517_v57 = vsel %vm7798_vm12, %v6722_v37, 0.0  ;;  %v2706_v39 = vmul.f32 %v3493_v2, %v2693_v3  ;;  %vm2711_vm12 = vweird.f32 %v2693_v3 }
 0x669   :  { %v6730_v13 = vsub.f32 %v8022_v8, %v6364_v53  ;;  %v2589_v62 = vmul.f32 %v2517_v57, %v2517_v57  ;;  %v6738_v20 = vsub.f32 %v8025_v15, %v6364_v53  ;;  %v8026_v8 = vld [vmem:[#allocation94_spill] sm:$0xff]  ;;  %v8029_v57 = vmax.f32 %v8028_v1, 0.0 }
 0x66a   :  { %v2707_v36 = vmul.f32 %v3493_v2, %v2706_v39  ;;  %v8027_v11 = vmax.f32 %v8026_v8, 0.0 }
 0x66b   :  { %8023 = vst [vmem:[#allocation72_spill] sm:$0xff] %v6730_v13  ;;  %v2520_v29 = vsel %vm7744_vm10, %v6730_v13, 0.0  ;;  %v2678_v21 = vadd.f32 %v2677_v6, %v2589_v62  ;;  %v6751_v39 = vsub.f32 %v8029_v57, %v6364_v53  ;;  %v2523_v15 = vsel %vm7928_vm6, %v6738_v20, 0.0  ;;  %v6762_v62 = vld [vmem:[%s7180_s16] sm:$0x7]  ;;  %v8032_v57 = vld [vmem:[#allocation96_spill] sm:$0xff] }
 0x66c   :  { %v2708_v40 = vmul.f32 0.5, %v2707_v36  ;;  %v6746_v37 = vsub.f32 %v8027_v11, %v6364_v53  ;;  %v2592_v32 = vmul.f32 %v2520_v29, %v2520_v29  ;;  %vm2712_vm10 = vweird.f32 %v3493_v2  ;;  %v6767_v53 = vld [vmem:[%s7181_s17] sm:$0x7]  ;;  %s3817_s16 = smov [#allocation23]  }
 0x66d   :  { %8030 = vst [vmem:[#allocation73_spill] sm:$0xff] %v6751_v39  ;;  %v2595_v11 = vmul.f32 %v2523_v15, %v2523_v15  ;;  %vm2713_vm1 = vmor %vm2711_vm12, %vm2712_vm10  ;;  %v2529_v3 = vsel %vm7933_vm4, %v6751_v39, 0.0  ;;  %v6778_v8 = vperm.slane %v6767_v53, 1  ;;  %vm8031_vm10 = vnez %v7556_v24  ;;  %v8046_v13 = vld [vmem:[#allocation105_spill] sm:$0xff]  ;;  %s3177_s17 = sshll.u32 %s3817_s16, 4  ;;  %s3178_s17 = int_to_ptr.vmem [resolvable:$true] %s3177_s17 }
 0x66e   :  { %v2709_v34 = vsub.f32 1.5, %v2708_v40  ;;  %v2679_v36 = vadd.f32 %v2678_v21, %v2592_v32  ;;  %v2526_v6 = vsel %vm7931_vm7, %v6746_v37, 0.0  ;;  %v2601_v32 = vmul.f32 %v2529_v3, %v2529_v3 }
 0x66f   :  { %v2598_v21 = vmul.f32 %v2526_v6, %v2526_v6  ;;  %v2458_v1 = vsel %vm8031_vm10, %v6624_v12, 0.0  ;;  %vm8035_vm12 = vnez %v7554_v19  ;;  %vm8039_vm10 = vnez %v7560_v30 }
 0x670   :  { %v2710_v60 = vmul.f32 %v3493_v2, %v2709_v34  ;;  %v2680_v40 = vadd.f32 %v2679_v36, %v2595_v11  ;;  %v6775_v34 = vperm.slane %v6762_v62, 1  ;;  %v2461_v6 = vsel %vm8035_vm12, %v6628_v47, 0.0  ;;  %v8036_v11 = vld [vmem:[#allocation99_spill] sm:$0xff] }
 0x671   :  { %vm8040_vm12 = vnez %v7562_v38  ;;  %vm8042_vm4 = vnez %v7566_v56  ;;  %v6826_v30 = vsel %vm7857_vm8, %v6652_v41, 0.0  ;;  %v2533_v47 = vmul.f32 %v2461_v6, %v2461_v6 }
 0x672   :  { %v6772_v29 = vsel %vm2713_vm1, %v3493_v2, %v2710_v60  ;;  %v8034_v60 = vld [vmem:[#allocation98_spill] sm:$0xff]  ;;  %v2681_v12 = vadd.f32 %v2680_v40, %v2598_v21  ;;  %vm8038_vm1 = vnez %v7558_v25  ;;  %v2473_v40 = vsel %vm7932_vm5, %v6644_v27, 0.0  ;;  %v8044_v27 = vld [vmem:[#allocation103_spill] sm:$0xff] }
 0x673   :  { %v2726_v15 = vmul.f32 %v6772_v29, %v8032_v57  ;;  %v2729_v2 = vmul.f32 %v6772_v29, %v8033_v54  ;;  %v2732_v36 = vmul.f32 %v6772_v29, %v8034_v60  ;;  %v2735_v3 = vmul.f32 %v6772_v29, %v8036_v11  ;;  %v8037_v54 = vld [vmem:[#allocation100_spill] sm:$0xff]  ;;  %v8041_v11 = vld [vmem:[#allocation101_spill] sm:$0xff]  ;;  %v8043_v21 = vld [vmem:[#allocation102_spill] sm:$0xff] }
 0x674   :  { %v6796_v24 = vmul.f32 %v6772_v29, %v6504_v18  ;;  %v6800_v57 = vmul.f32 %v6772_v29, %v6515_v50  ;;  %v2738_v39 = vmul.f32 %v6772_v29, %v8037_v54  ;;  %v2464_v19 = vsel %vm8038_vm1, %v6632_v61, 0.0  ;;  %v8045_v61 = vld [vmem:[#allocation104_spill] sm:$0xff] }
 0x675   :  { %v2467_v60 = vsel %vm8039_vm10, %v6636_v52, 0.0  ;;  %v2470_v18 = vsel %vm8040_vm12, %v6640_v17, 0.0  ;;  %v2741_v50 = vmul.f32 %v6772_v29, %v8041_v11  ;;  %v6821_v25 = vsel %vm8042_vm4, %v6648_v46, 0.0 }
 0x676   :  { %v2744_v38 = vmul.f32 %v6772_v29, %v8043_v21  ;;  %v2806_v54 = vmul.f32 %v6775_v34, %v2726_v15  ;;  %v2809_v11 = vmul.f32 %v6775_v34, %v2729_v2  ;;  %v2812_v44 = vmul.f32 %v6775_v34, %v2732_v36  ;;  %v8047_v2 = vld [vmem:[#allocation106_spill] sm:$0xff] }
 0x677   :  { %v2747_v17 = vmul.f32 %v6772_v29, %v8044_v27  ;;  %v2815_v56 = vmul.f32 %v6775_v34, %v2735_v3  ;;  %v2682_v46 = vadd.f32 %v2681_v12, %v2601_v32  ;;  %v2530_v52 = vmul.f32 %v2458_v1, %v2458_v1 }
 0x678   :  { %v2750_v63 = vmul.f32 %v6772_v29, %v8045_v61  ;;  %v2818_v41 = vmul.f32 %v6775_v34, %v2738_v39  ;;  %v2536_v21 = vmul.f32 %v2464_v19, %v2464_v19  ;;  %v2753_v15 = vmul.f32 %v6772_v29, %v8046_v13  ;;  %v8048_v39 = vld [vmem:[#allocation107_spill] sm:$0xff] }
 0x679   :  { %v2756_v36 = vmul.f32 %v6772_v29, %v8047_v2  ;;  %v2821_v7 = vmul.f32 %v6775_v34, %v2741_v50  ;;  %v2539_v27 = vmul.f32 %v2467_v60, %v2467_v60  ;;  %v2824_v3 = vmul.f32 %v6775_v34, %v2744_v38 }
 0x67a   :  { %v2886_v12 = vadd.f32 %v6778_v8, %v2806_v54  ;;  %v2889_v32 = vadd.f32 %v6778_v8, %v2809_v11  ;;  %v2892_v61 = vadd.f32 %v6778_v8, %v2812_v44  ;;  %v2759_v1 = vmul.f32 %v6772_v29, %v8048_v39  ;;  %v8049_v11 = vld [vmem:[#allocation31_spill] sm:$0xff] }
 0x67b   :  { %v2827_v6 = vmul.f32 %v6775_v34, %v2747_v17  ;;  %v2895_v13 = vadd.f32 %v6778_v8, %v2815_v56  ;;  %v2683_v19 = vrot.slane %v2682_v46, 4  ;;  %v2762_v50 = vmul.f32 %v6772_v29, %v6322_v43  ;;  %v8050_v56 = vld [vmem:[#allocation69_spill] sm:$0xff] }
 0x67c   :  { %v2830_v60 = vmul.f32 %v6775_v34, %v2750_v63  ;;  %v2898_v38 = vadd.f32 %v6778_v8, %v2818_v41  ;;  %3102 = vst [vmem:[#allocation23 + $0x8] sm:$0xff] %v2886_v12  ;;  %v2602_v54 = vadd.f32 %v2533_v47, %v2530_v52  ;;  %v2765_v44 = vmul.f32 %v6772_v29, %v8049_v11  ;;  %v8051_v12 = vld [vmem:[#allocation71_spill] sm:$0xff]  ;;  %v8052_v47 = vld [vmem:[#allocation80_spill] sm:$0xff] }
 0x67d   :  { %v2833_v2 = vmul.f32 %v6775_v34, %v2753_v15  ;;  %v2901_v39 = vadd.f32 %v6778_v8, %v2821_v7  ;;  %3105 = vst [vmem:[#allocation23 + $0x20] sm:$0xff] %v2889_v32  ;;  %v2542_v17 = vmul.f32 %v2470_v18, %v2470_v18  ;;  %v2768_v16 = vmul.f32 %v6772_v29, %v8050_v56 }
 0x67e   :  { %v2836_v43 = vmul.f32 %v6775_v34, %v2756_v36  ;;  %v2904_v63 = vadd.f32 %v6778_v8, %v2824_v3  ;;  %3108 = vst [vmem:[#allocation23 + $0x38] sm:$0xff] %v2892_v61  ;;  %v2545_v41 = vmul.f32 %v2473_v40, %v2473_v40  ;;  %v2771_v52 = vmul.f32 %v6772_v29, %v8051_v12 }
 0x67f   :  { %v2774_v11 = vmul.f32 %v6772_v29, %v8052_v47  ;;  %v2839_v15 = vmul.f32 %v6775_v34, %v2759_v1  ;;  %v2907_v7 = vadd.f32 %v6778_v8, %v2827_v6  ;;  %3111 = vst [vmem:[#allocation23 + $0x50] sm:$0xff] %v2895_v13  ;;  %v2842_v18 = vmul.f32 %v6775_v34, %v2762_v50 }
 0x680   :  { %v2910_v32 = vadd.f32 %v6778_v8, %v2830_v60  ;;  %3114 = vst [vmem:[#allocation23 + $0x68] sm:$0xff] %v2898_v38  ;;  %v2684_v36 = vadd.f32 %v2683_v19, %v2682_v46  ;;  %v2603_v3 = vadd.f32 %v2602_v54, %v2536_v21  ;;  %v2777_v40 = vmul.f32 %v6772_v29, %v6469_v14  ;;  %v8053_v21 = vld [vmem:[#allocation81_spill] sm:$0xff] }
 0x681   :  { %v2780_v61 = vmul.f32 %v6772_v29, %v6477_v58  ;;  %v2845_v56 = vmul.f32 %v6775_v34, %v2765_v44  ;;  %v2913_v1 = vadd.f32 %v6778_v8, %v2833_v2  ;;  %3117 = vst [vmem:[#allocation23 + $0x80] sm:$0xff] %v2901_v39  ;;  %v2848_v6 = vmul.f32 %v6775_v34, %v2768_v16 }
 0x682   :  { %v2916_v13 = vadd.f32 %v6778_v8, %v2836_v43  ;;  %3120 = vst [vmem:[#allocation23 + $0x98] sm:$0xff] %v2904_v63  ;;  %v2685_v50 = vrot.slane %v2684_v36, 2  ;;  %v2604_v60 = vadd.f32 %v2603_v3, %v2539_v27  ;;  %v2783_v46 = vmul.f32 %v6772_v29, %v6491_v51 }
 0x683   :  { %v2786_v14 = vmul.f32 %v6772_v29, %v8053_v21  ;;  %v2851_v58 = vmul.f32 %v6775_v34, %v2771_v52  ;;  %v2919_v19 = vadd.f32 %v6778_v8, %v2839_v15  ;;  %3123 = vst [vmem:[#allocation23 + $0xb0] sm:$0xff] %v2907_v7  ;;  %v2854_v38 = vmul.f32 %v6775_v34, %v2774_v11 }
 0x684   :  { %v2922_v16 = vadd.f32 %v6778_v8, %v2842_v18  ;;  %3126 = vst [vmem:[#allocation23 + $0xc8] sm:$0xff] %v2910_v32  ;;  %v2686_v54 = vadd.f32 %v2685_v50, %v2684_v36  ;;  %v2605_v44 = vadd.f32 %v2604_v60, %v2542_v17  ;;  %v2857_v27 = vmul.f32 %v6775_v34, %v2777_v40 }
 0x685   :  { %v2925_v2 = vadd.f32 %v6778_v8, %v2845_v56  ;;  %3129 = vst [vmem:[#allocation23 + $0xe0] sm:$0xff] %v2913_v1  ;;  %vm8054_vm4 = vnez %v7570_v10  ;;  %v2548_v39 = vmul.f32 %v6821_v25, %v6821_v25  ;;  %v2860_v43 = vmul.f32 %v6775_v34, %v2780_v61 }
 0x686   :  { %v2482_v51 = vsel %vm8054_vm4, %v6656_v42, 0.0  ;;  %v2928_v63 = vadd.f32 %v6778_v8, %v2848_v6  ;;  %3132 = vst [vmem:[#allocation23 + $0xf8] sm:$0xff] %v2916_v13  ;;  %v2687_v12 = vrot.slane %v2686_v54, 1  ;;  %v2606_v52 = vadd.f32 %v2605_v44, %v2545_v41 }
 0x687   :  { %v2795_v17 = vmul.f32 %v6772_v29, %v6520_v45  ;;  %v2863_v47 = vmul.f32 %v6775_v34, %v2783_v46  ;;  %v2931_v11 = vadd.f32 %v6778_v8, %v2851_v58  ;;  %3135 = vst [vmem:[#allocation23 + $0x110] sm:$0xff] %v2919_v19  ;;  %v2551_v10 = vmul.f32 %v6826_v30, %v6826_v30 }
 0x688   :  { %v2866_v25 = vmul.f32 %v6775_v34, %v2786_v14  ;;  %v2934_v15 = vadd.f32 %v6778_v8, %v2854_v38  ;;  %3138 = vst [vmem:[#allocation23 + $0x128] sm:$0xff] %v2922_v16  ;;  %v2688_v7 = vadd.f32 %v2687_v12, %v2686_v54  ;;  %v2607_v18 = vadd.f32 %v2606_v52, %v2548_v39  ;;  %v8056_v38 = vld [vmem:[#allocation56_spill] sm:$0xff] }
 0x689   :  { %v2869_v41 = vmul.f32 %v6775_v34, %v6796_v24  ;;  %v2937_v45 = vadd.f32 %v6778_v8, %v2857_v27  ;;  %3141 = vst [vmem:[#allocation23 + $0x140] sm:$0xff] %v2925_v2  ;;  %vm8055_vm5 = vnez %v7859_v59  ;;  %v2554_v32 = vmul.f32 %v2482_v51, %v2482_v51  ;;  %v8058_v51 = vld [vmem:[#allocation58_spill] sm:$0xff] }
 0x68a   :  { %v2485_v29 = vsel %vm8055_vm5, %v6660_v26, 0.0  ;;  %v2872_v30 = vmul.f32 %v6775_v34, %v6800_v57  ;;  %v2940_v36 = vadd.f32 %v6778_v8, %v2860_v43  ;;  %3144 = vst [vmem:[#allocation23 + $0x158] sm:$0xff] %v2928_v63  ;;  %v2691_v3 = vmul.f32 %v2688_v7, %v7955_v9 }
 0x68b   :  { %v2608_v40 = vadd.f32 %v2607_v18, %v2551_v10  ;;  %v2875_v61 = vmul.f32 %v6775_v34, %v2795_v17  ;;  %v2943_v24 = vadd.f32 %v6778_v8, %v2863_v47  ;;  %3147 = vst [vmem:[#allocation23 + $0x170] sm:$0xff] %v2931_v11  ;;  %v2946_v56 = vadd.f32 %v6778_v8, %v2866_v25  ;;  %v8060_v17 = vld [vmem:[#allocation60_spill] sm:$0xff]  ;;  %v8062_v25 = vld [vmem:[#allocation62_spill] sm:$0xff] }
 0x68c   :  { %3150 = vst [vmem:[#allocation23 + $0x188] sm:$0xff] %v2934_v15  ;;  %v2694_v59 = vadd.f32 1e-05, %v2691_v3  ;;  %v2557_v1 = vmul.f32 %v2485_v29, %v2485_v29  ;;  %v2949_v13 = vadd.f32 %v6778_v8, %v2869_v41  ;;  %v2488_v57 = vsel %vm7944_vm9, %v6664_v0, 0.0  ;;  %v8079_v15 = vld [vmem:[#allocation63_spill] sm:$0xff] }
 0x68d   :  { %v2609_v6 = vadd.f32 %v2608_v40, %v2554_v32  ;;  %3153 = vst [vmem:[#allocation23 + $0x1a0] sm:$0xff] %v2937_v45  ;;  %v2952_v50 = vadd.f32 %v6778_v8, %v2872_v30  ;;  %v2955_v60 = vadd.f32 %v6778_v8, %v2875_v61  ;;  %v2560_v46 = vmul.f32 %v2488_v57, %v2488_v57  ;;  %v8066_v40 = vld [vmem:[#allocation32_spill] sm:$0xff] }
 0x68e   :  { %3156 = vst [vmem:[#allocation23 + $0x1b8] sm:$0xff] %v2940_v36  ;;  %3494 = vrsqrt.f32 %v2694_v59  ;;  %v2491_v21 = vsel %vm7951_vm11, %v6668_v23, 0.0  ;;  %v2494_v54 = vsel %vm7911_vm14, %v8056_v38, 0.0  ;;  %v2497_v43 = vsel %vm7779_vm2, %v8058_v51, 0.0  ;;  %v8065_v36 = vld [vmem:[#allocation40_spill] sm:$0xff] }
 0x68f   :  { %v2610_v34 = vadd.f32 %v2609_v6, %v2557_v1  ;;  %3159 = vst [vmem:[#allocation23 + $0x1d0] sm:$0xff] %v2943_v24  ;;  %v2563_v58 = vmul.f32 %v2491_v21, %v2491_v21  ;;  %v2566_v27 = vmul.f32 %v2494_v54, %v2494_v54  ;;  %v2569_v12 = vmul.f32 %v2497_v43, %v2497_v43  ;;  %v8067_v24 = vld [vmem:[#allocation47_spill] sm:$0xff]  ;;  %v8068_v1 = vld [vmem:[#allocation49_spill] sm:$0xff] }
 0x690   :  { %3162 = vst [vmem:[#allocation23 + $0x1e8] sm:$0xff] %v2946_v56  ;;  %v2500_v11 = vsel %vm7782_vm3, %v8060_v17, 0.0  ;;  %vm2721_vm9 = vweird.f32 %v2694_v59  ;;  %v2503_v7 = vsel %vm7734_vm15, %v8062_v25, 0.0  ;;  %v2506_v32 = vsel %vm7787_vm0, %v6689_v4, 0.0 }
 0x691   :  { %3165 = vst [vmem:[#allocation23 + $0x200] sm:$0xff] %v2949_v13  ;;  %v2611_v14 = vadd.f32 %v2610_v34, %v2560_v46  ;;  %v2572_v18 = vmul.f32 %v2500_v11, %v2500_v11  ;;  %v2575_v30 = vmul.f32 %v2503_v7, %v2503_v7  ;;  %v8070_v46 = vld [vmem:[#allocation53_spill] sm:$0xff]  ;;  %vm8074_vm15 = vnez %v7792_v49 }
 0x692   :  { %3168 = vst [vmem:[#allocation23 + $0x218] sm:$0xff] %v2952_v50  ;;  %v8069_v50 = vld [vmem:[#allocation51_spill] sm:$0xff]  ;;  %v2512_v39 = vsel %vm8074_vm15, %v6697_v35, 0.0  ;;  %vm8077_vm2 = vnez %v7706_v48  ;;  %v8078_v11 = vld [vmem:[#allocation61_spill] sm:$0xff] }
 0x693   :  { %3171 = vst [vmem:[#allocation23 + $0x230] sm:$0xff] %v2955_v60  ;;  %v2612_v44 = vadd.f32 %v2611_v14, %v2563_v58  ;;  %v6968_v14 = vperm.slane %v6767_v53, 2  ;;  %v2509_v58 = vsel %vm7790_vm13, %v6693_v28, 0.0  ;;  %vm8075_vm13 = vnez %v7797_v5  ;;  %v8080_v48 = vld [vmem:[#allocation65_spill] sm:$0xff] }
 0x694   :  { %v3495_v33 = vpop.eup %3494  ;;  %v2515_v43 = vsel %vm8075_vm13, %v6701_v55, 0.0  ;;  %v2581_v5 = vmul.f32 %v2509_v58, %v2509_v58  ;;  %v8085_v58 = vld [vmem:[#allocation66_spill] sm:$0xff] }
 0x695   :  { %v2716_v19 = vmul.f32 %v3495_v33, %v2694_v59  ;;  %v2613_v22 = vadd.f32 %v2612_v44, %v2566_v27  ;;  %vm2722_vm8 = vweird.f32 %v3495_v33  ;;  %v6951_v59 = vperm.slane %v6762_v62, 2 }
 0x696   :  { %vm2723_vm14 = vmor %vm2721_vm9, %vm2722_vm8 }
 0x697   :  { %v2717_v8 = vmul.f32 %v3495_v33, %v2716_v19  ;;  %v2614_v10 = vadd.f32 %v2613_v22, %v2569_v12  ;;  %v8072_v19 = vld [vmem:[#allocation55_spill] sm:$0xff] }
 0x698   :  { %v8076_v22 = vld [vmem:[#allocation59_spill] sm:$0xff] }
 0x699   :  { %v2718_v2 = vmul.f32 0.5, %v2717_v8  ;;  %v2615_v45 = vadd.f32 %v2614_v10, %v2572_v18  ;;  %v8073_v8 = vld [vmem:[#allocation57_spill] sm:$0xff] }
 0x69b   :  { %v2719_v63 = vsub.f32 1.5, %v2718_v2  ;;  %v2616_v60 = vadd.f32 %v2615_v45, %v2575_v30 }
 0x69d   :  { %v2720_v52 = vmul.f32 %v3495_v33, %v2719_v63 }
 0x69f   :  { %v6939_v41 = vsel %vm2723_vm14, %v3495_v33, %v2720_v52  ;;  %v2518_v52 = vsel %vm8077_vm2, %v6705_v31, 0.0 }
 0x6a0   :  { %v2727_v3 = vmul.f32 %v6939_v41, %v8065_v36  ;;  %v2730_v61 = vmul.f32 %v6939_v41, %v8066_v40  ;;  %v2733_v56 = vmul.f32 %v6939_v41, %v8067_v24  ;;  %v2736_v6 = vmul.f32 %v6939_v41, %v8068_v1  ;;  %v8081_v40 = vld [vmem:[#allocation64_spill] sm:$0xff] }
 0x6a1   :  { %v6957_v13 = vmul.f32 %v6939_v41, %v6738_v20  ;;  %v6961_v57 = vmul.f32 %v6939_v41, %v6746_v37  ;;  %v2739_v34 = vmul.f32 %v6939_v41, %v8069_v50  ;;  %v2742_v21 = vmul.f32 %v6939_v41, %v8070_v46 }
 0x6a2   :  { %v2578_v20 = vmul.f32 %v2506_v32, %v2506_v32  ;;  %v2745_v16 = vmul.f32 %v6939_v41, %v8072_v19  ;;  %v2807_v37 = vmul.f32 %v6951_v59, %v2727_v3  ;;  %v2810_v54 = vmul.f32 %v6951_v59, %v2730_v61 }
 0x6a3   :  { %v2813_v44 = vmul.f32 %v6951_v59, %v2733_v56  ;;  %v2748_v27 = vmul.f32 %v6939_v41, %v8073_v8  ;;  %v2816_v2 = vmul.f32 %v6951_v59, %v2736_v6  ;;  %v2751_v63 = vmul.f32 %v6939_v41, %v8076_v22  ;;  %v8083_v56 = vld [vmem:[#allocation67_spill] sm:$0xff] }
 0x6a4   :  { %v2819_v12 = vmul.f32 %v6951_v59, %v2739_v34  ;;  %v2617_v47 = vadd.f32 %v2616_v60, %v2578_v20  ;;  %v2754_v10 = vmul.f32 %v6939_v41, %v8078_v11  ;;  %v2757_v49 = vmul.f32 %v6939_v41, %v8079_v15  ;;  %v8084_v60 = vld [vmem:[#allocation41_spill] sm:$0xff] }
 0x6a5   :  { %v2822_v7 = vmul.f32 %v6951_v59, %v2742_v21  ;;  %v2825_v18 = vmul.f32 %v6951_v59, %v2745_v16  ;;  %v2887_v45 = vadd.f32 %v6968_v14, %v2807_v37  ;;  %v2890_v29 = vadd.f32 %v6968_v14, %v2810_v54  ;;  %v8087_v16 = vld [vmem:[#allocation83_spill] sm:$0xff]  ;;  %v8095_v20 = vld [vmem:[#allocation45_spill] sm:$0xff] }
 0x6a6   :  { %v2893_v32 = vadd.f32 %v6968_v14, %v2813_v44  ;;  %v2760_v30 = vmul.f32 %v6939_v41, %v8080_v48  ;;  %v2828_v36 = vmul.f32 %v6951_v59, %v2748_v27  ;;  %v2896_v3 = vadd.f32 %v6968_v14, %v2816_v2  ;;  %v8088_v27 = vld [vmem:[#allocation84_spill] sm:$0xff] }
 0x6a7   :  { %v2521_v24 = vsel %vm7928_vm6, %v8081_v40, 0.0  ;;  %v2763_v1 = vmul.f32 %v6939_v41, %v8083_v56  ;;  %v2831_v6 = vmul.f32 %v6951_v59, %v2751_v63  ;;  %v2899_v50 = vadd.f32 %v6968_v14, %v2819_v12  ;;  %3103 = vst [vmem:[#allocation23 + $0x10] sm:$0xff] %v2887_v45 }
 0x6a8   :  { %v2618_v34 = vadd.f32 %v2617_v47, %v2581_v5  ;;  %v2766_v46 = vmul.f32 %v6939_v41, %v8084_v60  ;;  %v2834_v21 = vmul.f32 %v6951_v59, %v2754_v10  ;;  %v2902_v33 = vadd.f32 %v6968_v14, %v2822_v7  ;;  %3106 = vst [vmem:[#allocation23 + $0x28] sm:$0xff] %v2890_v29  ;;  %v8089_v47 = vld [vmem:[#allocation42_spill] sm:$0xff]  ;;  %v8091_v29 = vld [vmem:[#allocation87_spill] sm:$0xff] }
 0x6a9   :  { %v2524_v19 = vsel %vm7931_vm7, %v8085_v58, 0.0  ;;  %v2769_v37 = vmul.f32 %v6939_v41, %v8087_v16  ;;  %v2837_v54 = vmul.f32 %v6951_v59, %v2757_v49  ;;  %v2905_v44 = vadd.f32 %v6968_v14, %v2825_v18  ;;  %3109 = vst [vmem:[#allocation23 + $0x40] sm:$0xff] %v2893_v32  ;;  %v8090_v7 = vld [vmem:[#allocation86_spill] sm:$0xff] }
 0x6aa   :  { %v2584_v8 = vmul.f32 %v2512_v39, %v2512_v39  ;;  %v2772_v2 = vmul.f32 %v6939_v41, %v8088_v27  ;;  %v2840_v22 = vmul.f32 %v6951_v59, %v2760_v30  ;;  %v2908_v63 = vadd.f32 %v6968_v14, %v2828_v36  ;;  %3112 = vst [vmem:[#allocation23 + $0x58] sm:$0xff] %v2896_v3  ;;  %v8092_v36 = vld [vmem:[#allocation70_spill] sm:$0xff] }
 0x6ab   :  { %v2587_v12 = vmul.f32 %v2515_v43, %v2515_v43  ;;  %v2775_v11 = vmul.f32 %v6939_v41, %v8089_v47  ;;  %v2843_v10 = vmul.f32 %v6951_v59, %v2763_v1  ;;  %v2911_v15 = vadd.f32 %v6968_v14, %v2831_v6  ;;  %3115 = vst [vmem:[#allocation23 + $0x70] sm:$0xff] %v2899_v50  ;;  %v8093_v6 = vld [vmem:[#allocation72_spill] sm:$0xff] }
 0x6ac   :  { %v2619_v49 = vadd.f32 %v2618_v34, %v2584_v8  ;;  %v2778_v39 = vmul.f32 %v6939_v41, %v8090_v7  ;;  %v2846_v5 = vmul.f32 %v6951_v59, %v2766_v46  ;;  %v2914_v18 = vadd.f32 %v6968_v14, %v2834_v21  ;;  %3118 = vst [vmem:[#allocation23 + $0x88] sm:$0xff] %v2902_v33  ;;  %v8094_v33 = vld [vmem:[#allocation68_spill] sm:$0xff]  ;;  %v8097_v8 = vld [vmem:[#allocation73_spill] sm:$0xff] }
 0x6ad   :  { %v2590_v45 = vmul.f32 %v2518_v52, %v2518_v52  ;;  %v2781_v43 = vmul.f32 %v6939_v41, %v8091_v29  ;;  %v2849_v32 = vmul.f32 %v6951_v59, %v2769_v37  ;;  %v2917_v48 = vadd.f32 %v6968_v14, %v2837_v54  ;;  %3121 = vst [vmem:[#allocation23 + $0xa0] sm:$0xff] %v2905_v44 }
 0x6ae   :  { %v2620_v30 = vadd.f32 %v2619_v49, %v2587_v12  ;;  %v2784_v3 = vmul.f32 %v6939_v41, %v8092_v36  ;;  %v2852_v61 = vmul.f32 %v6951_v59, %v2772_v2  ;;  %v2920_v56 = vadd.f32 %v6968_v14, %v2840_v22  ;;  %3124 = vst [vmem:[#allocation23 + $0xb8] sm:$0xff] %v2908_v63 }
 0x6af   :  { %v2593_v1 = vmul.f32 %v2521_v24, %v2521_v24  ;;  %v2787_v52 = vmul.f32 %v6939_v41, %v8093_v6  ;;  %v2855_v50 = vmul.f32 %v6951_v59, %v2775_v11  ;;  %v2923_v34 = vadd.f32 %v6968_v14, %v2843_v10  ;;  %3127 = vst [vmem:[#allocation23 + $0xd0] sm:$0xff] %v2911_v15 }
 0x6b0   :  { %v2621_v60 = vadd.f32 %v2620_v30, %v2590_v45  ;;  %v2858_v46 = vmul.f32 %v6951_v59, %v2778_v39  ;;  %v2926_v21 = vadd.f32 %v6968_v14, %v2846_v5  ;;  %3130 = vst [vmem:[#allocation23 + $0xe8] sm:$0xff] %v2914_v18  ;;  %vm8096_vm6 = vnez %v8095_v20 }
 0x6b1   :  { %v2527_v16 = vsel %vm8096_vm6, %v8094_v33, 0.0  ;;  %v2861_v24 = vmul.f32 %v6951_v59, %v2781_v43  ;;  %v2929_v37 = vadd.f32 %v6968_v14, %v2849_v32  ;;  %3133 = vst [vmem:[#allocation23 + $0x100] sm:$0xff] %v2917_v48  ;;  %v2596_v54 = vmul.f32 %v2524_v19, %v2524_v19 }
 0x6b2   :  { %v2622_v44 = vadd.f32 %v2621_v60, %v2593_v1  ;;  %v2796_v27 = vmul.f32 %v6939_v41, %v8097_v8  ;;  %v2864_v2 = vmul.f32 %v6951_v59, %v2784_v3  ;;  %v2932_v22 = vadd.f32 %v6968_v14, %v2852_v61  ;;  %3136 = vst [vmem:[#allocation23 + $0x118] sm:$0xff] %v2920_v56  ;;  %v8099_v60 = vld [vmem:[#allocation33_spill] sm:$0xff]  ;;  %v8102_v8 = vld [vmem:[#allocation48_spill] sm:$0xff] }
 0x6b3   :  { %v2867_v63 = vmul.f32 %v6951_v59, %v2787_v52  ;;  %v2935_v12 = vadd.f32 %v6968_v14, %v2855_v50  ;;  %3139 = vst [vmem:[#allocation23 + $0x130] sm:$0xff] %v2923_v34  ;;  %v2599_v47 = vmul.f32 %v2527_v16, %v2527_v16  ;;  %v2870_v10 = vmul.f32 %v6951_v59, %v6957_v13  ;;  %v8098_v50 = vld [vmem:[#allocation89_spill] sm:$0xff]  ;;  %v8101_v16 = vld [vmem:[#allocation46_spill] sm:$0xff] }
 0x6b4   :  { %v2623_v11 = vadd.f32 %v2622_v44, %v2596_v54  ;;  %v2938_v19 = vadd.f32 %v6968_v14, %v2858_v46  ;;  %3142 = vst [vmem:[#allocation23 + $0x148] sm:$0xff] %v2926_v21  ;;  %v2873_v41 = vmul.f32 %v6951_v59, %v6961_v57  ;;  %v2941_v15 = vadd.f32 %v6968_v14, %v2861_v24  ;;  %v8100_v21 = vld [vmem:[#allocation90_spill] sm:$0xff] }
 0x6b5   :  { %3145 = vst [vmem:[#allocation23 + $0x160] sm:$0xff] %v2929_v37  ;;  %v2876_v7 = vmul.f32 %v6951_v59, %v2796_v27  ;;  %v2944_v39 = vadd.f32 %v6968_v14, %v2864_v2  ;;  %v2947_v5 = vadd.f32 %v6968_v14, %v2867_v63  ;;  %v2950_v13 = vadd.f32 %v6968_v14, %v2870_v10  ;;  %v8103_v2 = vld [vmem:[#allocation50_spill] sm:$0xff] }
 0x6b6   :  { %v2624_v49 = vadd.f32 %v2623_v11, %v2599_v47  ;;  %3148 = vst [vmem:[#allocation23 + $0x178] sm:$0xff] %v2932_v22  ;;  %v2953_v45 = vadd.f32 %v6968_v14, %v2873_v41  ;;  %v7093_v63 = vperm.slane %v6767_v53, 0 }
 0x6b7   :  { %3151 = vst [vmem:[#allocation23 + $0x190] sm:$0xff] %v2935_v12  ;;  %v2956_v29 = vadd.f32 %v6968_v14, %v2876_v7 }
 0x6b8   :  { %v2625_v18 = vrot.slane %v2624_v49, 4  ;;  %3154 = vst [vmem:[#allocation23 + $0x1a8] sm:$0xff] %v2938_v19 }
 0x6b9   :  { %3157 = vst [vmem:[#allocation23 + $0x1c0] sm:$0xff] %v2941_v15 }
 0x6ba   :  { %v2626_v57 = vadd.f32 %v2625_v18, %v2624_v49  ;;  %3160 = vst [vmem:[#allocation23 + $0x1d8] sm:$0xff] %v2944_v39 }
 0x6bb   :  { %3163 = vst [vmem:[#allocation23 + $0x1f0] sm:$0xff] %v2947_v5 }
 0x6bc   :  { %v2627_v43 = vrot.slane %v2626_v57, 2  ;;  %3166 = vst [vmem:[#allocation23 + $0x208] sm:$0xff] %v2950_v13 }
 0x6bd   :  { %3169 = vst [vmem:[#allocation23 + $0x220] sm:$0xff] %v2953_v45 }
 0x6be   :  { %v2628_v59 = vadd.f32 %v2627_v43, %v2626_v57  ;;  %3172 = vst [vmem:[#allocation23 + $0x238] sm:$0xff] %v2956_v29 }
 0x6c0   :  { %v2629_v32 = vrot.slane %v2628_v59, 1 }
 0x6c2   :  { %v2630_v48 = vadd.f32 %v2629_v32, %v2628_v59 }
 0x6c4   :  { %v2689_v30 = vmul.f32 %v2630_v48, %v7955_v9  ;;  %v7078_v9 = vperm.slane %v6762_v62, 0  ;;  %v8104_v62 = vld [vmem:[#allocation52_spill] sm:$0xff] }
 0x6c6   :  { %v2692_v36 = vadd.f32 1e-05, %v2689_v30 }
 0x6c8   :  { %3496 = vrsqrt.f32 %v2692_v36  ;;  %vm2701_vm11 = vweird.f32 %v2692_v36 }
 0x6ce   :  { %v3497_v3 = vpop.eup %3496 }
 0x6cf   :  { %v2696_v61 = vmul.f32 %v3497_v3, %v2692_v36  ;;  %vm2702_vm7 = vweird.f32 %v3497_v3 }
 0x6d0   :  { %vm2703_vm0 = vmor %vm2701_vm11, %vm2702_vm7 }
 0x6d1   :  { %v2697_v56 = vmul.f32 %v3497_v3, %v2696_v61 }
 0x6d3   :  { %v2698_v1 = vmul.f32 0.5, %v2697_v56 }
 0x6d5   :  { %v2699_v6 = vsub.f32 1.5, %v2698_v1 }
 0x6d7   :  { %v2700_v52 = vmul.f32 %v3497_v3, %v2699_v6 }
 0x6d9   :  { %v2704_v14 = vsel %vm2703_vm0, %v3497_v3, %v2700_v52 }
 0x6da   :  { %v2725_v34 = vmul.f32 %v2704_v14, %v8098_v50  ;;  %v2728_v46 = vmul.f32 %v2704_v14, %v8099_v60  ;;  %v2731_v20 = vmul.f32 %v2704_v14, %v8100_v21  ;;  %v2734_v24 = vmul.f32 %v2704_v14, %v8101_v16 }
 0x6db   :  { %v7082_v37 = vmul.f32 %v2704_v14, %v8081_v40  ;;  %v7085_v54 = vmul.f32 %v2704_v14, %v8085_v58  ;;  %v7088_v44 = vmul.f32 %v2704_v14, %v8094_v33  ;;  %v2737_v27 = vmul.f32 %v2704_v14, %v8102_v8  ;;  %v8105_v58 = vld [vmem:[#allocation54_spill] sm:$0xff] }
 0x6dc   :  { %v2740_v22 = vmul.f32 %v2704_v14, %v8103_v2  ;;  %v2743_v12 = vmul.f32 %v2704_v14, %v8104_v62  ;;  %v2805_v47 = vmul.f32 %v7078_v9, %v2725_v34  ;;  %v2808_v40 = vmul.f32 %v7078_v9, %v2728_v46 }
 0x6dd   :  { %v2811_v11 = vmul.f32 %v7078_v9, %v2731_v20  ;;  %v2746_v10 = vmul.f32 %v2704_v14, %v8105_v58  ;;  %v2814_v33 = vmul.f32 %v7078_v9, %v2734_v24  ;;  %v2749_v19 = vmul.f32 %v2704_v14, %v6656_v42 }
 0x6de   :  { %v2817_v41 = vmul.f32 %v7078_v9, %v2737_v27  ;;  %v2752_v15 = vmul.f32 %v2704_v14, %v6660_v26  ;;  %v2755_v53 = vmul.f32 %v2704_v14, %v6664_v0  ;;  %v2820_v49 = vmul.f32 %v7078_v9, %v2740_v22 }
 0x6df   :  { %v2823_v7 = vmul.f32 %v7078_v9, %v2743_v12  ;;  %v2885_v39 = vadd.f32 %v7093_v63, %v2805_v47  ;;  %v2888_v5 = vadd.f32 %v7093_v63, %v2808_v40  ;;  %v2891_v18 = vadd.f32 %v7093_v63, %v2811_v11 }
 0x6e0   :  { %v2758_v13 = vmul.f32 %v2704_v14, %v6668_v23  ;;  %v2826_v42 = vmul.f32 %v7078_v9, %v2746_v10  ;;  %v2894_v45 = vadd.f32 %v7093_v63, %v2814_v33  ;;  %v2761_v26 = vmul.f32 %v2704_v14, %v8056_v38 }
 0x6e1   :  { %v2829_v0 = vmul.f32 %v7078_v9, %v2749_v19  ;;  %v2897_v57 = vadd.f32 %v7093_v63, %v2817_v41  ;;  %3101 = vst [vmem:[#allocation23] sm:$0xff] %v2885_v39  ;;  %v2764_v29 = vmul.f32 %v2704_v14, %v8058_v51  ;;  %v2832_v43 = vmul.f32 %v7078_v9, %v2752_v15 }
 0x6e2   :  { %v2900_v59 = vadd.f32 %v7093_v63, %v2820_v49  ;;  %3104 = vst [vmem:[#allocation23 + $0x18] sm:$0xff] %v2888_v5  ;;  %v2767_v23 = vmul.f32 %v2704_v14, %v8060_v17  ;;  %v2835_v32 = vmul.f32 %v7078_v9, %v2755_v53  ;;  %v2903_v48 = vadd.f32 %v7093_v63, %v2823_v7 }
 0x6e3   :  { %3107 = vst [vmem:[#allocation23 + $0x30] sm:$0xff] %v2891_v18  ;;  %v2770_v38 = vmul.f32 %v2704_v14, %v8062_v25  ;;  %v2838_v30 = vmul.f32 %v7078_v9, %v2758_v13  ;;  %v2906_v36 = vadd.f32 %v7093_v63, %v2826_v42  ;;  %v2773_v51 = vmul.f32 %v2704_v14, %v6689_v4 }
 0x6e4   :  { %3110 = vst [vmem:[#allocation23 + $0x48] sm:$0xff] %v2894_v45  ;;  %v2841_v3 = vmul.f32 %v7078_v9, %v2761_v26  ;;  %v2909_v61 = vadd.f32 %v7093_v63, %v2829_v0  ;;  %v2776_v17 = vmul.f32 %v2704_v14, %v6693_v28  ;;  %v2844_v56 = vmul.f32 %v7078_v9, %v2764_v29 }
 0x6e5   :  { %3113 = vst [vmem:[#allocation23 + $0x60] sm:$0xff] %v2897_v57  ;;  %v2912_v1 = vadd.f32 %v7093_v63, %v2832_v43  ;;  %v2779_v25 = vmul.f32 %v2704_v14, %v6697_v35  ;;  %v2847_v6 = vmul.f32 %v7078_v9, %v2767_v23  ;;  %v2915_v52 = vadd.f32 %v7093_v63, %v2835_v32 }
 0x6e6   :  { %3116 = vst [vmem:[#allocation23 + $0x78] sm:$0xff] %v2900_v59  ;;  %v2782_v4 = vmul.f32 %v2704_v14, %v6701_v55  ;;  %v2850_v50 = vmul.f32 %v7078_v9, %v2770_v38  ;;  %v2918_v34 = vadd.f32 %v7093_v63, %v2838_v30  ;;  %v2785_v28 = vmul.f32 %v2704_v14, %v6705_v31 }
 0x6e7   :  { %3119 = vst [vmem:[#allocation23 + $0x90] sm:$0xff] %v2903_v48  ;;  %v2853_v60 = vmul.f32 %v7078_v9, %v2773_v51  ;;  %v2921_v46 = vadd.f32 %v7093_v63, %v2841_v3  ;;  %v2856_v35 = vmul.f32 %v7078_v9, %v2776_v17  ;;  %v2924_v21 = vadd.f32 %v7093_v63, %v2844_v56 }
 0x6e8   :  { %3122 = vst [vmem:[#allocation23 + $0xa8] sm:$0xff] %v2906_v36  ;;  %v2859_v20 = vmul.f32 %v7078_v9, %v2779_v25  ;;  %v2927_v55 = vadd.f32 %v7093_v63, %v2847_v6  ;;  %v2862_v16 = vmul.f32 %v7078_v9, %v2782_v4  ;;  %v2930_v24 = vadd.f32 %v7093_v63, %v2850_v50 }
 0x6e9   :  { %3125 = vst [vmem:[#allocation23 + $0xc0] sm:$0xff] %v2909_v61  ;;  %v2865_v31 = vmul.f32 %v7078_v9, %v2785_v28  ;;  %v2933_v14 = vadd.f32 %v7093_v63, %v2853_v60  ;;  %v2868_v8 = vmul.f32 %v7078_v9, %v7082_v37  ;;  %v2936_v27 = vadd.f32 %v7093_v63, %v2856_v35 }
 0x6ea   :  { %3128 = vst [vmem:[#allocation23 + $0xd8] sm:$0xff] %v2912_v1  ;;  %v2871_v2 = vmul.f32 %v7078_v9, %v7085_v54  ;;  %v2939_v22 = vadd.f32 %v7093_v63, %v2859_v20  ;;  %v2874_v62 = vmul.f32 %v7078_v9, %v7088_v44  ;;  %v2942_v12 = vadd.f32 %v7093_v63, %v2862_v16 }
 0x6eb   :  { %3131 = vst [vmem:[#allocation23 + $0xf0] sm:$0xff] %v2915_v52  ;;  %v2945_v47 = vadd.f32 %v7093_v63, %v2865_v31  ;;  %v2948_v37 = vadd.f32 %v7093_v63, %v2868_v8 }
 0x6ec   :  { %3134 = vst [vmem:[#allocation23 + $0x108] sm:$0xff] %v2918_v34  ;;  %v2951_v54 = vadd.f32 %v7093_v63, %v2871_v2  ;;  %v2954_v9 = vadd.f32 %v7093_v63, %v2874_v62 }
 0x6ed   :  { %3137 = vst [vmem:[#allocation23 + $0x120] sm:$0xff] %v2921_v46 }
 0x6ee   :  { %3140 = vst [vmem:[#allocation23 + $0x138] sm:$0xff] %v2924_v21 }
 0x6ef   :  { %3143 = vst [vmem:[#allocation23 + $0x150] sm:$0xff] %v2927_v55 }
 0x6f0   :  { %3146 = vst [vmem:[#allocation23 + $0x168] sm:$0xff] %v2930_v24 }
 0x6f1   :  { %3149 = vst [vmem:[#allocation23 + $0x180] sm:$0xff] %v2933_v14 }
 0x6f2   :  { %3152 = vst [vmem:[#allocation23 + $0x198] sm:$0xff] %v2936_v27 }
 0x6f3   :  { %3155 = vst [vmem:[#allocation23 + $0x1b0] sm:$0xff] %v2939_v22 }
 0x6f4   :  { %3158 = vst [vmem:[#allocation23 + $0x1c8] sm:$0xff] %v2942_v12 }
 0x6f5   :  { %3161 = vst [vmem:[#allocation23 + $0x1e0] sm:$0xff] %v2945_v47 }
 0x6f6   :  { %3164 = vst [vmem:[#allocation23 + $0x1f8] sm:$0xff] %v2948_v37 }
 0x6f7   :  { %3167 = vst [vmem:[#allocation23 + $0x210] sm:$0xff] %v2951_v54 }
 0x6f8   :  { %3170 = vst [vmem:[#allocation23 + $0x228] sm:$0xff] %v2954_v9 }
 0x6f9   :  { %3185 = dma.vmem_to_hbm [thread:$0]  %s3178_s17, 9216, %s3180_s7, [#allocation7], %s3818_s30, %s3818_s30, %s3819_s19  }
 0x6fa   :  { %3798 = dma.done.wait [#allocation7], 9216  }
 0x6fb   :  { %3799 = vsyncadd [#allocation7], 4294958080 }
 0x6fc   :  { %3190 = vsyncpa [#allocation6], 1 }
 0x6fd   :  { %3191 = vsyncpa [#allocation9], 1 }
 0x6fe   :  { %3192 = vsyncpa [#allocation12], 1 }
 0x6ff   :  { %3193 = vsyncpa [#allocation15], 1 }
 0x700   :  { %3194 = vsyncpa [#allocation18], 1 }
 0x701   :  { %3195 = vsyncpa [#allocation21], 1 }
 0x702   :  { %3196 = vsyncpa [#allocation7], 1 }

</bundles_post_ra>
